<compile_context>
chip_gen: v7x
topology: tpu7x:2x2x1
jax: 0.10.0
libtpu: 0.0.40
codegen_flags: <defaults>
</compile_context>

<pallas_src>
from functools import partial

import numpy as np
import jax
import jax.numpy as jnp
from jax.experimental import pallas as pl
from jax.experimental.pallas import tpu as pltpu

SPACE = 2
CHANNEL = 4


# ---------------------------------------------------------------------------
# Constant 0/1 selection matrices (built once on the host, passed as inputs).
# ---------------------------------------------------------------------------
def _w_pair_sel(n: int) -> jnp.ndarray:
    """(n, n) f32: X @ sel -> [even cols | odd cols] halves (each n//2 wide)."""
    m = n // 2
    r = np.arange(n)[:, None]
    c = np.arange(m)[None, :]
    return jnp.asarray(
        np.concatenate([r == 2 * c, r == 2 * c + 1], axis=1).astype(np.float32))


def _c_pair_sel(n: int) -> jnp.ndarray:
    """(n, n) f32: sel @ X -> [even rows ; odd rows] halves (each n//2 tall)."""
    m = n // 2
    r = np.arange(m)[:, None]
    c = np.arange(n)[None, :]
    return jnp.asarray(
        np.concatenate([c == 2 * r, c == 2 * r + 1], axis=0).astype(np.float32))


# ---------------------------------------------------------------------------
# Kernel
# ---------------------------------------------------------------------------
def fused_pool_kernel(x_ref, *rest, space, channel, H):
    """x_ref: (tC*H, W) block, rows ordered (c, h).  o_ref: (L, tCo) output block."""
    sel_w_refs = rest[:space]                      # spatial-round selectors (wc, wc)
    sel_c_refs = rest[space:space + channel]       # channel-round selectors (cc, cc)
    o_ref = rest[space + channel]
    scr_rows_ref = rest[space + channel + 1]       # (tC*H2, W2) rows (c, h2)
    scr_lane_ref = rest[space + channel + 2]       # (tC, L)     lanes (h2, w2)

    f32 = jnp.float32
    RH, W = x_ref.shape
    tC = RH // H
    P = 1 << space
    H2, W2 = H // P, W // P
    L = H2 * W2

    # ---- bulk strided sublane loads: group k holds all rows with h ≡ k (mod P) ----
    # (H % P == 0, so channel boundaries are respected and every group is ordered
    #  (c, m) with h = m*P + k; all later H pairing is elementwise across groups.)
    gsz = tC * H2
    if space == 0:
        groups = [x_ref[...].astype(f32)]
    else:
        groups = [x_ref[pl.ds(k, gsz, stride=P), :].astype(f32) for k in range(P)]

    # ---- spatial rounds: elementwise H-pair + one fused [even|odd] W-pair matmul ----
    wc = W
    for r in range(space):
        sel = sel_w_refs[r][...]                   # (wc, wc)
        wn = wc // 2
        nxt = []
        for k in range(len(groups) // 2):
            a, b = groups[2 * k], groups[2 * k + 1]
            mh = jnp.maximum(a, b)                 # max over the H pair
            sh = a + b                             # sum over the H pair
            me = jnp.dot(mh, sel, preferred_element_type=f32)   # [even | odd] of mh
            se = jnp.dot(sh, sel, preferred_element_type=f32)   # [even | odd] of sh
            mx = jnp.maximum(me[:, :wn], me[:, wn:])            # max over 2x2 window
            sm = se[:, :wn] + se[:, wn:]                        # sum over 2x2 window
            nxt.append((sm * 0.25 + mx) * 0.5)                  # (avg + max) / 2
        groups = nxt
        wc = wn
    y = groups[0]                                  # (tC*H2, W2), rows (c, h2)

    # ---- move h2 from sublanes to lanes: VMEM bounce + strided row reads ----
    scr_rows_ref[...] = y
    for h2 in range(H2):
        scr_lane_ref[:, h2 * W2:(h2 + 1) * W2] = (
            scr_rows_ref[pl.ds(h2, tC, stride=H2), :])
    t = scr_lane_ref[...]                          # (tC, L), lanes = (h2, w2)

    # ---- channel pooling: one fused [even; odd] left-matmul per round ----
    cc = tC
    for q in range(channel):
        sel = sel_c_refs[q][...]                   # (cc, cc)
        cn = cc // 2
        z = jnp.dot(sel, t, preferred_element_type=f32)         # (cc, L)
        ev, od = z[:cn, :], z[cn:, :]
        t = ((ev + od) * 0.5 + jnp.maximum(ev, od)) * 0.5       # (avg + max) / 2
        cc = cn
    # t: (tCo, L)

    # ---- single transposed full-block store: (tCo, L) -> (L, tCo) ----
    o_ref[...] = jnp.transpose(t, (1, 0)).astype(o_ref.dtype)


# ---------------------------------------------------------------------------
# Wrapper
# ---------------------------------------------------------------------------
def _vmem_limit_bytes() -> int:
    """Scoped-VMEM limit: v7x has 64 MiB physical VMEM/core, v5e/v6e have 128 MiB."""
    try:
        kind = jax.devices()[0].device_kind.lower()
    except Exception:
        kind = ""
    return (32 << 20) if "v7" in kind else (64 << 20)


def _choose_tile_c(C, H, W, channel, itemsize, vmem_limit):
    """Largest legal C tile: multiple of 2**channel dividing C, giving a BlockSpec-
    legal output lane dim (tC == C or tC>>channel a multiple of 128), and fitting
    the VMEM budget with pipeline double-buffering."""
    pc = 1 << channel
    cands = [tc for tc in range(pc, C + 1, pc)
             if C % tc == 0 and (tc == C or (tc >> channel) % 128 == 0)]

    def fits(tc):
        blk = tc * H * W * itemsize        # HBM-side input block (double-buffered)
        live = 3 * tc * H * W * 4          # approx f32 working set inside the kernel
        return 2 * blk + live + (4 << 20) <= vmem_limit

    fitting = [tc for tc in cands if fits(tc)]
    if fitting:
        return max(fitting)
    return min(cands)   # smallest legal tile (pathological C*H*W may still be tight)


def input_pooling(x, space=SPACE, channel=CHANNEL):
    B, C, H, W = x.shape
    P, Pc = 1 << space, 1 << channel
    assert H % P == 0 and W % P == 0, "H and W must be divisible by 2**space"
    assert C % Pc == 0, "C must be divisible by 2**channel"
    H2, W2 = H >> space, W >> space
    L, Co = H2 * W2, C >> channel

    vmem_limit = _vmem_limit_bytes()
    tC = _choose_tile_c(C, H, W, channel, x.dtype.itemsize, vmem_limit)
    tCo = tC >> channel
    nC = C // tC

    # Present the NCHW input as (B, C*H, W): a pure layout bitcast when H % 8 == 0,
    # so the kernel works on 2-D (rows, W) slabs with no in-kernel value reshapes.
    x2 = x.reshape(B, C * H, W)

    sel_w = [_w_pair_sel(W >> r) for r in range(space)]
    sel_c = [_c_pair_sel(tC >> q) for q in range(channel)]

    in_specs = [pl.BlockSpec((None, tC * H, W), lambda b, ci: (b, ci, 0))]
    for m in (*sel_w, *sel_c):
        in_specs.append(pl.BlockSpec(m.shape, lambda b, ci: (0, 0)))

    return pl.pallas_call(
        partial(fused_pool_kernel, space=space, channel=channel, H=H),
        out_shape=jax.ShapeDtypeStruct((B, L, Co), x.dtype),
        grid=(B, nC),
        in_specs=in_specs,
        out_specs=pl.BlockSpec((None, L, tCo), lambda b, ci: (b, 0, ci)),
        scratch_shapes=[
            pltpu.VMEM((tC * H2, W2), jnp.float32),   # rows (c, h2) bounce buffer
            pltpu.VMEM((tC, L), jnp.float32),         # lanes (h2, w2) assembly buffer
        ],
        compiler_params=pltpu.CompilerParams(
            dimension_semantics=("parallel", "parallel"),
            vmem_limit_bytes=vmem_limit,
        ),
    )(x2, *sel_w, *sel_c)


# ---------------------------------------------------------------------------
# Pure-JAX reference mirroring the PyTorch module.
# ---------------------------------------------------------------------------
def ref_input_pooling(x, space=SPACE, channel=CHANNEL):
    for _ in range(space):
        B, C, H, W = x.shape
        xr = x.reshape(B, C, H // 2, 2, W // 2, 2)
        x = (xr.mean(axis=(3, 5)) + xr.max(axis=(3, 5))) / 2
    B, C, H, W = x.shape
    x = jnp.transpose(x, (0, 2, 3, 1)).reshape(B, H * W, C)
    for _ in range(channel):
        B, L, C = x.shape
        xr = x.reshape(B, L, C // 2, 2)
        x = (xr.mean(axis=3) + xr.max(axis=3)) / 2
    return x


if __name__ == "__main__":
    key = jax.random.PRNGKey(0)
    # channel=4 halves C four times, so C must be >= 16; use C=64.
    B, C, H, W = 2, 64, 16, 16
    x = jax.random.normal(key, (B, C, H, W), dtype=jnp.float32)

    out = jax.block_until_ready(input_pooling(x))

    expected_shape = (B, (H >> SPACE) * (W >> SPACE), C >> CHANNEL)
    assert out.shape == expected_shape, (out.shape, expected_shape)

    ref = ref_input_pooling(x)
    err = float(jnp.max(jnp.abs(out - ref)))
    assert jnp.allclose(out, ref, atol=2e-5, rtol=2e-5), err

    print("KERNEL_OK")
</pallas_src>

<mosaic_0001>
module attributes {stable_mosaic.version = 11 : i64} {
  func.func @fused_pool_kernel(%arg0: i32, %arg1: i32, %arg2: memref<1x1024x16xf32, #tpu.memory_space<vmem>>, %arg3: memref<16x16xf32, #tpu.memory_space<vmem>>, %arg4: memref<8x8xf32, #tpu.memory_space<vmem>>, %arg5: memref<64x64xf32, #tpu.memory_space<vmem>>, %arg6: memref<32x32xf32, #tpu.memory_space<vmem>>, %arg7: memref<16x16xf32, #tpu.memory_space<vmem>>, %arg8: memref<8x8xf32, #tpu.memory_space<vmem>>, %arg9: memref<1x16x4xf32, #tpu.memory_space<vmem>>, %arg10: memref<256x4xf32, #tpu.memory_space<vmem>>, %arg11: memref<64x16xf32, #tpu.memory_space<vmem>>) attributes {dimension_semantics = [#tpu.dimension_semantics<parallel>, #tpu.dimension_semantics<parallel>], iteration_bounds = array<i64: 2, 1>, scalar_prefetch = 0 : i64, scratch_operands = 2 : i64, tpu.core_type = #tpu.core_type<tc>, window_params = [{transform_indices = @transform_0, window_bounds = array<i64: 1, 1024, 16>}, {pipeline_mode = #tpu.pipeline_mode<synchronous>, transform_indices = @transform_1, window_bounds = array<i64: 16, 16>}, {pipeline_mode = #tpu.pipeline_mode<synchronous>, transform_indices = @transform_2, window_bounds = array<i64: 8, 8>}, {pipeline_mode = #tpu.pipeline_mode<synchronous>, transform_indices = @transform_3, window_bounds = array<i64: 64, 64>}, {pipeline_mode = #tpu.pipeline_mode<synchronous>, transform_indices = @transform_4, window_bounds = array<i64: 32, 32>}, {pipeline_mode = #tpu.pipeline_mode<synchronous>, transform_indices = @transform_5, window_bounds = array<i64: 16, 16>}, {pipeline_mode = #tpu.pipeline_mode<synchronous>, transform_indices = @transform_6, window_bounds = array<i64: 8, 8>}, {transform_indices = @transform_7, window_bounds = array<i64: 1, 16, 4>}]} {
    %c0 = arith.constant 0 : index
    %c0_0 = arith.constant 0 : index
    %c0_1 = arith.constant 0 : index
    %0 = tpu.strided_load %arg2[%c0, %c0_0, %c0_1] {strides = array<i32: 1, 4, 1>} : memref<1x1024x16xf32, #tpu.memory_space<vmem>>, vector<1x256x16xf32>
    %1 = vector.shape_cast %0 : vector<1x256x16xf32> to vector<256x16xf32>
    %c0_2 = arith.constant 0 : index
    %c1 = arith.constant 1 : index
    %c0_3 = arith.constant 0 : index
    %2 = tpu.strided_load %arg2[%c0_2, %c1, %c0_3] {strides = array<i32: 1, 4, 1>} : memref<1x1024x16xf32, #tpu.memory_space<vmem>>, vector<1x256x16xf32>
    %3 = vector.shape_cast %2 : vector<1x256x16xf32> to vector<256x16xf32>
    %c0_4 = arith.constant 0 : index
    %c2 = arith.constant 2 : index
    %c0_5 = arith.constant 0 : index
    %4 = tpu.strided_load %arg2[%c0_4, %c2, %c0_5] {strides = array<i32: 1, 4, 1>} : memref<1x1024x16xf32, #tpu.memory_space<vmem>>, vector<1x256x16xf32>
    %5 = vector.shape_cast %4 : vector<1x256x16xf32> to vector<256x16xf32>
    %c0_6 = arith.constant 0 : index
    %c3 = arith.constant 3 : index
    %c0_7 = arith.constant 0 : index
    %6 = tpu.strided_load %arg2[%c0_6, %c3, %c0_7] {strides = array<i32: 1, 4, 1>} : memref<1x1024x16xf32, #tpu.memory_space<vmem>>, vector<1x256x16xf32>
    %7 = vector.shape_cast %6 : vector<1x256x16xf32> to vector<256x16xf32>
    %c0_8 = arith.constant 0 : index
    %c0_9 = arith.constant 0 : index
    %8 = vector.load %arg3[%c0_8, %c0_9] : memref<16x16xf32, #tpu.memory_space<vmem>>, vector<16x16xf32>
    %9 = arith.maximumf %1, %3 : vector<256x16xf32>
    %10 = arith.addf %1, %3 : vector<256x16xf32>
    %cst = arith.constant dense<0.000000e+00> : vector<256x16xf32>
    %11 = tpu.matmul %9, %8, %cst {dimension_numbers = #tpu.dot_dimension_numbers<[1], [0], [0], [1], [0, 0, 1, 1], [], []>} : vector<256x16xf32>, vector<16x16xf32>, vector<256x16xf32> -> vector<256x16xf32>
    %cst_10 = arith.constant dense<0.000000e+00> : vector<256x16xf32>
    %12 = tpu.matmul %10, %8, %cst_10 {dimension_numbers = #tpu.dot_dimension_numbers<[1], [0], [0], [1], [0, 0, 1, 1], [], []>} : vector<256x16xf32>, vector<16x16xf32>, vector<256x16xf32> -> vector<256x16xf32>
    %13 = vector.extract_strided_slice %11 {offsets = [0, 0], sizes = [256, 8], strides = [1, 1]} : vector<256x16xf32> to vector<256x8xf32>
    %14 = vector.extract_strided_slice %11 {offsets = [0, 8], sizes = [256, 8], strides = [1, 1]} : vector<256x16xf32> to vector<256x8xf32>
    %15 = arith.maximumf %13, %14 : vector<256x8xf32>
    %16 = vector.extract_strided_slice %12 {offsets = [0, 0], sizes = [256, 8], strides = [1, 1]} : vector<256x16xf32> to vector<256x8xf32>
    %17 = vector.extract_strided_slice %12 {offsets = [0, 8], sizes = [256, 8], strides = [1, 1]} : vector<256x16xf32> to vector<256x8xf32>
    %18 = arith.addf %16, %17 : vector<256x8xf32>
    %cst_11 = arith.constant 2.500000e-01 : f32
    %19 = vector.broadcast %cst_11 : f32 to vector<256x8xf32>
    %20 = arith.mulf %18, %19 : vector<256x8xf32>
    %21 = arith.addf %20, %15 : vector<256x8xf32>
    %cst_12 = arith.constant 5.000000e-01 : f32
    %22 = vector.broadcast %cst_12 : f32 to vector<256x8xf32>
    %23 = arith.mulf %21, %22 : vector<256x8xf32>
    %24 = arith.maximumf %5, %7 : vector<256x16xf32>
    %25 = arith.addf %5, %7 : vector<256x16xf32>
    %cst_13 = arith.constant dense<0.000000e+00> : vector<256x16xf32>
    %26 = tpu.matmul %24, %8, %cst_13 {dimension_numbers = #tpu.dot_dimension_numbers<[1], [0], [0], [1], [0, 0, 1, 1], [], []>} : vector<256x16xf32>, vector<16x16xf32>, vector<256x16xf32> -> vector<256x16xf32>
    %cst_14 = arith.constant dense<0.000000e+00> : vector<256x16xf32>
    %27 = tpu.matmul %25, %8, %cst_14 {dimension_numbers = #tpu.dot_dimension_numbers<[1], [0], [0], [1], [0, 0, 1, 1], [], []>} : vector<256x16xf32>, vector<16x16xf32>, vector<256x16xf32> -> vector<256x16xf32>
    %28 = vector.extract_strided_slice %26 {offsets = [0, 0], sizes = [256, 8], strides = [1, 1]} : vector<256x16xf32> to vector<256x8xf32>
    %29 = vector.extract_strided_slice %26 {offsets = [0, 8], sizes = [256, 8], strides = [1, 1]} : vector<256x16xf32> to vector<256x8xf32>
    %30 = arith.maximumf %28, %29 : vector<256x8xf32>
    %31 = vector.extract_strided_slice %27 {offsets = [0, 0], sizes = [256, 8], strides = [1, 1]} : vector<256x16xf32> to vector<256x8xf32>
    %32 = vector.extract_strided_slice %27 {offsets = [0, 8], sizes = [256, 8], strides = [1, 1]} : vector<256x16xf32> to vector<256x8xf32>
    %33 = arith.addf %31, %32 : vector<256x8xf32>
    %cst_15 = arith.constant 2.500000e-01 : f32
    %34 = vector.broadcast %cst_15 : f32 to vector<256x8xf32>
    %35 = arith.mulf %33, %34 : vector<256x8xf32>
    %36 = arith.addf %35, %30 : vector<256x8xf32>
    %cst_16 = arith.constant 5.000000e-01 : f32
    %37 = vector.broadcast %cst_16 : f32 to vector<256x8xf32>
    %38 = arith.mulf %36, %37 : vector<256x8xf32>
    %c0_17 = arith.constant 0 : index
    %c0_18 = arith.constant 0 : index
    %39 = vector.load %arg4[%c0_17, %c0_18] : memref<8x8xf32, #tpu.memory_space<vmem>>, vector<8x8xf32>
    %40 = arith.maximumf %23, %38 : vector<256x8xf32>
    %41 = arith.addf %23, %38 : vector<256x8xf32>
    %cst_19 = arith.constant dense<0.000000e+00> : vector<256x8xf32>
    %42 = tpu.matmul %40, %39, %cst_19 {dimension_numbers = #tpu.dot_dimension_numbers<[1], [0], [0], [1], [0, 0, 1, 1], [], []>} : vector<256x8xf32>, vector<8x8xf32>, vector<256x8xf32> -> vector<256x8xf32>
    %cst_20 = arith.constant dense<0.000000e+00> : vector<256x8xf32>
    %43 = tpu.matmul %41, %39, %cst_20 {dimension_numbers = #tpu.dot_dimension_numbers<[1], [0], [0], [1], [0, 0, 1, 1], [], []>} : vector<256x8xf32>, vector<8x8xf32>, vector<256x8xf32> -> vector<256x8xf32>
    %44 = vector.extract_strided_slice %42 {offsets = [0, 0], sizes = [256, 4], strides = [1, 1]} : vector<256x8xf32> to vector<256x4xf32>
    %45 = vector.extract_strided_slice %42 {offsets = [0, 4], sizes = [256, 4], strides = [1, 1]} : vector<256x8xf32> to vector<256x4xf32>
    %46 = arith.maximumf %44, %45 : vector<256x4xf32>
    %47 = vector.extract_strided_slice %43 {offsets = [0, 0], sizes = [256, 4], strides = [1, 1]} : vector<256x8xf32> to vector<256x4xf32>
    %48 = vector.extract_strided_slice %43 {offsets = [0, 4], sizes = [256, 4], strides = [1, 1]} : vector<256x8xf32> to vector<256x4xf32>
    %49 = arith.addf %47, %48 : vector<256x4xf32>
    %cst_21 = arith.constant 2.500000e-01 : f32
    %50 = vector.broadcast %cst_21 : f32 to vector<256x4xf32>
    %51 = arith.mulf %49, %50 : vector<256x4xf32>
    %52 = arith.addf %51, %46 : vector<256x4xf32>
    %cst_22 = arith.constant 5.000000e-01 : f32
    %53 = vector.broadcast %cst_22 : f32 to vector<256x4xf32>
    %54 = arith.mulf %52, %53 : vector<256x4xf32>
    %c0_23 = arith.constant 0 : index
    %c0_24 = arith.constant 0 : index
    %55 = vector.load %arg10[%c0_23, %c0_24] : memref<256x4xf32, #tpu.memory_space<vmem>>, vector<256x4xf32>
    tpu.vector_store %arg10[%c0_23, %c0_24], %54 {strides = array<i32>} : memref<256x4xf32, #tpu.memory_space<vmem>>, vector<256x4xf32>,
    %c0_25 = arith.constant 0 : index
    %c0_26 = arith.constant 0 : index
    %56 = tpu.strided_load %arg10[%c0_25, %c0_26] {strides = array<i32: 4, 1>} : memref<256x4xf32, #tpu.memory_space<vmem>>, vector<64x4xf32>
    %c0_27 = arith.constant 0 : index
    %c0_28 = arith.constant 0 : index
    %57 = vector.load %arg11[%c0_27, %c0_28] : memref<64x16xf32, #tpu.memory_space<vmem>>, vector<64x4xf32>
    tpu.vector_store %arg11[%c0_27, %c0_28], %56 {strides = array<i32>} : memref<64x16xf32, #tpu.memory_space<vmem>>, vector<64x4xf32>,
    %c1_29 = arith.constant 1 : index
    %c0_30 = arith.constant 0 : index
    %58 = tpu.strided_load %arg10[%c1_29, %c0_30] {strides = array<i32: 4, 1>} : memref<256x4xf32, #tpu.memory_space<vmem>>, vector<64x4xf32>
    %c0_31 = arith.constant 0 : index
    %c4 = arith.constant 4 : index
    %59 = vector.load %arg11[%c0_31, %c4] : memref<64x16xf32, #tpu.memory_space<vmem>>, vector<64x4xf32>
    tpu.vector_store %arg11[%c0_31, %c4], %58 {strides = array<i32>} : memref<64x16xf32, #tpu.memory_space<vmem>>, vector<64x4xf32>,
    %c2_32 = arith.constant 2 : index
    %c0_33 = arith.constant 0 : index
    %60 = tpu.strided_load %arg10[%c2_32, %c0_33] {strides = array<i32: 4, 1>} : memref<256x4xf32, #tpu.memory_space<vmem>>, vector<64x4xf32>
    %c0_34 = arith.constant 0 : index
    %c8 = arith.constant 8 : index
    %61 = vector.load %arg11[%c0_34, %c8] : memref<64x16xf32, #tpu.memory_space<vmem>>, vector<64x4xf32>
    tpu.vector_store %arg11[%c0_34, %c8], %60 {strides = array<i32>} : memref<64x16xf32, #tpu.memory_space<vmem>>, vector<64x4xf32>,
    %c3_35 = arith.constant 3 : index
    %c0_36 = arith.constant 0 : index
    %62 = tpu.strided_load %arg10[%c3_35, %c0_36] {strides = array<i32: 4, 1>} : memref<256x4xf32, #tpu.memory_space<vmem>>, vector<64x4xf32>
    %c0_37 = arith.constant 0 : index
    %c12 = arith.constant 12 : index
    %63 = vector.load %arg11[%c0_37, %c12] : memref<64x16xf32, #tpu.memory_space<vmem>>, vector<64x4xf32>
    tpu.vector_store %arg11[%c0_37, %c12], %62 {strides = array<i32>} : memref<64x16xf32, #tpu.memory_space<vmem>>, vector<64x4xf32>,
    %c0_38 = arith.constant 0 : index
    %c0_39 = arith.constant 0 : index
    %64 = vector.load %arg11[%c0_38, %c0_39] : memref<64x16xf32, #tpu.memory_space<vmem>>, vector<64x16xf32>
    %c0_40 = arith.constant 0 : index
    %c0_41 = arith.constant 0 : index
    %65 = vector.load %arg5[%c0_40, %c0_41] : memref<64x64xf32, #tpu.memory_space<vmem>>, vector<64x64xf32>
    %cst_42 = arith.constant dense<0.000000e+00> : vector<64x16xf32>
    %66 = tpu.matmul %65, %64, %cst_42 {dimension_numbers = #tpu.dot_dimension_numbers<[1], [0], [0], [1], [0, 0, 1, 1], [], []>} : vector<64x64xf32>, vector<64x16xf32>, vector<64x16xf32> -> vector<64x16xf32>
    %67 = vector.extract_strided_slice %66 {offsets = [0, 0], sizes = [32, 16], strides = [1, 1]} : vector<64x16xf32> to vector<32x16xf32>
    %68 = vector.extract_strided_slice %66 {offsets = [32, 0], sizes = [32, 16], strides = [1, 1]} : vector<64x16xf32> to vector<32x16xf32>
    %69 = arith.addf %67, %68 : vector<32x16xf32>
    %cst_43 = arith.constant 5.000000e-01 : f32
    %70 = vector.broadcast %cst_43 : f32 to vector<32x16xf32>
    %71 = arith.mulf %69, %70 : vector<32x16xf32>
    %72 = arith.maximumf %67, %68 : vector<32x16xf32>
    %73 = arith.addf %71, %72 : vector<32x16xf32>
    %cst_44 = arith.constant 5.000000e-01 : f32
    %74 = vector.broadcast %cst_44 : f32 to vector<32x16xf32>
    %75 = arith.mulf %73, %74 : vector<32x16xf32>
    %c0_45 = arith.constant 0 : index
    %c0_46 = arith.constant 0 : index
    %76 = vector.load %arg6[%c0_45, %c0_46] : memref<32x32xf32, #tpu.memory_space<vmem>>, vector<32x32xf32>
    %cst_47 = arith.constant dense<0.000000e+00> : vector<32x16xf32>
    %77 = tpu.matmul %76, %75, %cst_47 {dimension_numbers = #tpu.dot_dimension_numbers<[1], [0], [0], [1], [0, 0, 1, 1], [], []>} : vector<32x32xf32>, vector<32x16xf32>, vector<32x16xf32> -> vector<32x16xf32>
    %78 = vector.extract_strided_slice %77 {offsets = [0, 0], sizes = [16, 16], strides = [1, 1]} : vector<32x16xf32> to vector<16x16xf32>
    %79 = vector.extract_strided_slice %77 {offsets = [16, 0], sizes = [16, 16], strides = [1, 1]} : vector<32x16xf32> to vector<16x16xf32>
    %80 = arith.addf %78, %79 : vector<16x16xf32>
    %cst_48 = arith.constant 5.000000e-01 : f32
    %81 = vector.broadcast %cst_48 : f32 to vector<16x16xf32>
    %82 = arith.mulf %80, %81 : vector<16x16xf32>
    %83 = arith.maximumf %78, %79 : vector<16x16xf32>
    %84 = arith.addf %82, %83 : vector<16x16xf32>
    %cst_49 = arith.constant 5.000000e-01 : f32
    %85 = vector.broadcast %cst_49 : f32 to vector<16x16xf32>
    %86 = arith.mulf %84, %85 : vector<16x16xf32>
    %c0_50 = arith.constant 0 : index
    %c0_51 = arith.constant 0 : index
    %87 = vector.load %arg7[%c0_50, %c0_51] : memref<16x16xf32, #tpu.memory_space<vmem>>, vector<16x16xf32>
    %cst_52 = arith.constant dense<0.000000e+00> : vector<16x16xf32>
    %88 = tpu.matmul %87, %86, %cst_52 {dimension_numbers = #tpu.dot_dimension_numbers<[1], [0], [0], [1], [0, 0, 1, 1], [], []>} : vector<16x16xf32>, vector<16x16xf32>, vector<16x16xf32> -> vector<16x16xf32>
    %89 = vector.extract_strided_slice %88 {offsets = [0, 0], sizes = [8, 16], strides = [1, 1]} : vector<16x16xf32> to vector<8x16xf32>
    %90 = vector.extract_strided_slice %88 {offsets = [8, 0], sizes = [8, 16], strides = [1, 1]} : vector<16x16xf32> to vector<8x16xf32>
    %91 = arith.addf %89, %90 : vector<8x16xf32>
    %cst_53 = arith.constant 5.000000e-01 : f32
    %92 = vector.broadcast %cst_53 : f32 to vector<8x16xf32>
    %93 = arith.mulf %91, %92 : vector<8x16xf32>
    %94 = arith.maximumf %89, %90 : vector<8x16xf32>
    %95 = arith.addf %93, %94 : vector<8x16xf32>
    %cst_54 = arith.constant 5.000000e-01 : f32
    %96 = vector.broadcast %cst_54 : f32 to vector<8x16xf32>
    %97 = arith.mulf %95, %96 : vector<8x16xf32>
    %c0_55 = arith.constant 0 : index
    %c0_56 = arith.constant 0 : index
    %98 = vector.load %arg8[%c0_55, %c0_56] : memref<8x8xf32, #tpu.memory_space<vmem>>, vector<8x8xf32>
    %cst_57 = arith.constant dense<0.000000e+00> : vector<8x16xf32>
    %99 = tpu.matmul %98, %97, %cst_57 {dimension_numbers = #tpu.dot_dimension_numbers<[1], [0], [0], [1], [0, 0, 1, 1], [], []>} : vector<8x8xf32>, vector<8x16xf32>, vector<8x16xf32> -> vector<8x16xf32>
    %100 = vector.extract_strided_slice %99 {offsets = [0, 0], sizes = [4, 16], strides = [1, 1]} : vector<8x16xf32> to vector<4x16xf32>
    %101 = vector.extract_strided_slice %99 {offsets = [4, 0], sizes = [4, 16], strides = [1, 1]} : vector<8x16xf32> to vector<4x16xf32>
    %102 = arith.addf %100, %101 : vector<4x16xf32>
    %cst_58 = arith.constant 5.000000e-01 : f32
    %103 = vector.broadcast %cst_58 : f32 to vector<4x16xf32>
    %104 = arith.mulf %102, %103 : vector<4x16xf32>
    %105 = arith.maximumf %100, %101 : vector<4x16xf32>
    %106 = arith.addf %104, %105 : vector<4x16xf32>
    %cst_59 = arith.constant 5.000000e-01 : f32
    %107 = vector.broadcast %cst_59 : f32 to vector<4x16xf32>
    %108 = arith.mulf %106, %107 : vector<4x16xf32>
    %109 = tpu.transpose %108, [1, 0] : vector<4x16xf32> -> vector<16x4xf32>
    %c0_60 = arith.constant 0 : index
    %c0_61 = arith.constant 0 : index
    %c0_62 = arith.constant 0 : index
    %110 = vector.load %arg9[%c0_60, %c0_61, %c0_62] : memref<1x16x4xf32, #tpu.memory_space<vmem>>, vector<1x16x4xf32>
    %111 = vector.shape_cast %110 : vector<1x16x4xf32> to vector<16x4xf32>
    %112 = vector.shape_cast %109 : vector<16x4xf32> to vector<1x16x4xf32>
    tpu.vector_store %arg9[%c0_60, %c0_61, %c0_62], %112 {strides = array<i32>} : memref<1x16x4xf32, #tpu.memory_space<vmem>>, vector<1x16x4xf32>,
    return
  }
  func.func @transform_0(%arg0: i32, %arg1: i32) -> (i32, i32, i32) {
    %c0_i32 = arith.constant 0 : i32
    %c0_i32_0 = arith.constant 0 : i32
    return %arg0, %arg1, %c0_i32 : i32, i32, i32
  }
  func.func @transform_1(%arg0: i32, %arg1: i32) -> (i32, i32) {
    %c0_i32 = arith.constant 0 : i32
    %c0_i32_0 = arith.constant 0 : i32
    %c0_i32_1 = arith.constant 0 : i32
    return %c0_i32, %c0_i32_0 : i32, i32
  }
  func.func @transform_2(%arg0: i32, %arg1: i32) -> (i32, i32) {
    %c0_i32 = arith.constant 0 : i32
    %c0_i32_0 = arith.constant 0 : i32
    %c0_i32_1 = arith.constant 0 : i32
    return %c0_i32, %c0_i32_0 : i32, i32
  }
  func.func @transform_3(%arg0: i32, %arg1: i32) -> (i32, i32) {
    %c0_i32 = arith.constant 0 : i32
    %c0_i32_0 = arith.constant 0 : i32
    %c0_i32_1 = arith.constant 0 : i32
    return %c0_i32, %c0_i32_0 : i32, i32
  }
  func.func @transform_4(%arg0: i32, %arg1: i32) -> (i32, i32) {
    %c0_i32 = arith.constant 0 : i32
    %c0_i32_0 = arith.constant 0 : i32
    %c0_i32_1 = arith.constant 0 : i32
    return %c0_i32, %c0_i32_0 : i32, i32
  }
  func.func @transform_5(%arg0: i32, %arg1: i32) -> (i32, i32) {
    %c0_i32 = arith.constant 0 : i32
    %c0_i32_0 = arith.constant 0 : i32
    %c0_i32_1 = arith.constant 0 : i32
    return %c0_i32, %c0_i32_0 : i32, i32
  }
  func.func @transform_6(%arg0: i32, %arg1: i32) -> (i32, i32) {
    %c0_i32 = arith.constant 0 : i32
    %c0_i32_0 = arith.constant 0 : i32
    %c0_i32_1 = arith.constant 0 : i32
    return %c0_i32, %c0_i32_0 : i32, i32
  }
  func.func @transform_7(%arg0: i32, %arg1: i32) -> (i32, i32, i32) {
    %c0_i32 = arith.constant 0 : i32
    %c0_i32_0 = arith.constant 0 : i32
    return %arg0, %c0_i32, %arg1 : i32, i32, i32
  }
}

</mosaic_0001>

<bundles_post_ra>
// kernel: tpu_custom_call.1
= control target key start
LH: loop header
LB: loop body
LE: loop exit
PB: predicated region body
PF: predicated region fallthrough
CT: control target
= control target key end

     0   :  { %s8473_s0 = inlined_call_operand.hbm [shape: f32[2,1024,16], index: 0, kind: input, shape index: {}]   ;;  %s8474_s1 = inlined_call_operand.hbm [shape: f32[16,16], index: 1, kind: input, shape index: {}]   ;;  %s8475_s2 = inlined_call_operand.hbm [shape: f32[8,8], index: 2, kind: input, shape index: {}]   ;;  %s8476_s3 = inlined_call_operand.hbm [shape: f32[64,64], index: 3, kind: input, shape index: {}]   ;;  %s8477_s4 = inlined_call_operand.hbm [shape: f32[32,32], index: 4, kind: input, shape index: {}]   ;;  %s8478_s5 = inlined_call_operand.hbm [shape: f32[16,16], index: 5, kind: input, shape index: {}]   ;;  %s8479_s6 = inlined_call_operand.hbm [shape: f32[8,8], index: 6, kind: input, shape index: {}]   ;;  %s8480_s7 = inlined_call_operand.hbm [shape: f32[2,16,4], index: 7, kind: output, shape index: {}]  }
   0x1   :  { %8586 = sst [smem:[#allocation105_spill]] %s8474_s1 }
   0x2   :  { %8587 = sst [smem:[#allocation106_spill]] %s8480_s7 }
   0x3   :  { %12 = vsyncpa [#allocation5], 0 }
   0x4   :  { %14 = vsyncpa [#allocation5 + $0x1], 0 }
   0x5   :  { %15 = vsyncpa [#allocation8], 0 }
   0x6   :  { %16 = vsyncpa [#allocation11], 0 }
   0x7   :  { %17 = vsyncpa [#allocation14], 0 }
   0x8   :  { %18 = vsyncpa [#allocation6], 0 }
   0x9   :  { %20 = vsyncpa [#allocation6 + $0x1], 0  ;;  %s6378_s24 = smov 0   ;;  %s6380_s25 = smov 0  }
   0xa   :  { %s6382_s26 = smov 0   ;;  %s6384_s27 = smov 0  }
   0xb   :  { %s6386_s28 = smov 0   ;;  %s6388_s29 = smov 0  }
   0xc LB: > { %s8481_s30 = sadd.s32 4294967295, %s6318_s29   ;;  %p4894_p0 = scmp.ge.s32.totalorder %s6318_s29, 1  ;;  %s6318_s29 = sphi %s6388_s29, %s26_s29   ;;  %s6314_s28 = sphi %s6386_s28, %s8879_s28   ;;  %s6310_s27 = sphi %s6384_s27, %s8878_s27   ;;  %s6306_s26 = sphi %s6382_s26, %s8877_s26   ;;  %s6302_s25 = sphi %s6380_s25, %s8876_s25   ;;  %s6298_s24 = sphi %s6378_s24, %s8875_s24  }
   0xd   : > { %p6412_p1 = scmp.eq.s32.totalorder %s8481_s30, 0  ;;  %p225_p2 = scmp.lt.s32.totalorder %s6318_s29, 3 }
   0xe   : > { %s6320_s10 = smov [#allocation7]   ;;  %s6321_s13 = smov [#allocation10]  }
   0xf   : > { %s8588_s8 = scalar_select %p6412_p1, 1, 0 }
  0x10   : > { %p6417_p3 = pnand %p4894_p0, %p225_p2  ;;  %s237_s11 = sshll.u32 %s6320_s10, 4  ;;  %s6421_s11 = int_to_ptr.vmem [resolvable:$true] %s237_s11 }
  0x11   : > { %s261_s14 = sshll.u32 %s6321_s13, 4  ;;  %s6322_s15 = smov [#allocation13]   ;;  %s6432_s14 = int_to_ptr.vmem [resolvable:$true] %s261_s14 }
  0x12   : > { %s8589_s9 = scalar_select %p6417_p3, 1, 0 }
  0x13   : > { %p5921_p4 = pneg %p6417_p3  ;;  %s6434_s16 = sshll.u32 %s6322_s15, 4  ;;  %s288_s16 = int_to_ptr.vmem [resolvable:$true] %s6434_s16 }
  0x14   : > { %s8591_s1 = sld [smem:[#allocation105_spill]] }
  0x15   : > { %p6428_p6 = pnand %p5921_p4, %p6412_p1 }
  0x17   : > { %p6444_p8 = pneg %p6428_p6 }
  0x1a   : > { %s6026_s19 = scalar_lea.hbm %s8591_s1, 256 }
  0x1b   : > { %p6027_p7 = scmp.ne.s32.totalorder %s8591_s1, %s6026_s19  ;;  %p6033_p11 = scmp.lt.u32.totalorder %s6026_s19, %s8591_s1 }
  0x1d   : > { %p6029_p9 = pnand %p6444_p8, %p6027_p7 }
  0x1f   : > { %p6030_p10 = pneg %p6029_p9 }
  0x21   : > { %p6035_p12 = pnand %p6033_p11, %p6030_p10 }
  0x23   : > { %6038 = shalt.err (!%p6035_p12)
}
  0x24   : > { %s6039_s13 = scalar_lea.vmem %s6421_s11, 256  ;;  %p6047_p4 = scmp.lt.s32.totalorder %s6421_s11, %s6421_s11 }
  0x25   : > { %p6040_p13 = scmp.ne.s32.totalorder %s6421_s11, %s6039_s13  ;;  %p6048_p5 = scmp.lt.s32.totalorder %s6039_s13, %s6039_s13 }
  0x27   : > { %p6042_p0 = pnand %p6040_p13, %p6444_p8  ;;  %p6049_p7 = por %p6048_p5, %p6047_p4 }
  0x29   : > { %p6043_p2 = pneg %p6042_p0 }
  0x2b   : > { %p6050_p9 = pnand %p6049_p7, %p6043_p2 }
  0x2d   : > { %6053 = shalt.err (!%p6050_p9)
}
  0x2e   : > { %s8486_s15 = smov 128   ;;  %s6324_s17 = smov 8  }
  0x2f   : > { %5924 = dma.hbm_to_vmem [thread:$0]  (!%p6428_p6), %s8591_s1, 256, %s6421_s11, [#allocation8], %s8486_s15, %s8486_s15, %s6324_s17  }
  0x30   : > { %s6054_s23 = scalar_lea.hbm %s8476_s3, 1024 }
  0x31   : > { %p6055_p5 = scmp.ne.s32.totalorder %s8476_s3, %s6054_s23  ;;  %p6061_p12 = scmp.lt.u32.totalorder %s6054_s23, %s8476_s3 }
  0x33   : > { %p6057_p10 = pnand %p6055_p5, %p6444_p8 }
  0x35   : > { %p6058_p11 = pneg %p6057_p10 }
  0x37   : > { %p6063_p13 = pnand %p6061_p12, %p6058_p11 }
  0x39   : > { %6066 = shalt.err (!%p6063_p13)
}
  0x3a   : > { %s6067_s11 = scalar_lea.vmem %s6432_s14, 1024  ;;  %p6075_p7 = scmp.lt.s32.totalorder %s6432_s14, %s6432_s14 }
  0x3b   : > { %p6068_p0 = scmp.ne.s32.totalorder %s6432_s14, %s6067_s11  ;;  %p6076_p9 = scmp.lt.s32.totalorder %s6067_s11, %s6067_s11 }
  0x3d   : > { %p6070_p2 = pnand %p6068_p0, %p6444_p8  ;;  %p6077_p5 = por %p6076_p9, %p6075_p7 }
  0x3f   : > { %p6071_p4 = pneg %p6070_p2 }
  0x41   : > { %p6078_p10 = pnand %p6077_p5, %p6071_p4 }
  0x43   : > { %6081 = shalt.err (!%p6078_p10)
}
  0x44   : > { %5930 = dma.hbm_to_vmem [thread:$0]  (!%p6428_p6), %s8476_s3, 1024, %s6432_s14, [#allocation11], %s8486_s15, %s8486_s15, %s6324_s17  }
  0x45   : > { %s6082_s20 = scalar_lea.hbm %s8478_s5, 256 }
  0x46   : > { %p6083_p11 = scmp.ne.s32.totalorder %s8478_s5, %s6082_s20  ;;  %p6089_p0 = scmp.lt.u32.totalorder %s6082_s20, %s8478_s5 }
  0x48   : > { %p6085_p12 = pnand %p6083_p11, %p6444_p8 }
  0x4a   : > { %p6086_p13 = pneg %p6085_p12 }
  0x4c   : > { %p6091_p2 = pnand %p6089_p0, %p6086_p13 }
  0x4e   : > { %6094 = shalt.err (!%p6091_p2)
}
  0x4f   : > { %s6095_s11 = scalar_lea.vmem %s288_s16, 256  ;;  %p6103_p5 = scmp.lt.s32.totalorder %s288_s16, %s288_s16 }
  0x50   : > { %p6096_p4 = scmp.ne.s32.totalorder %s288_s16, %s6095_s11  ;;  %p6104_p10 = scmp.lt.s32.totalorder %s6095_s11, %s6095_s11 }
  0x52   : > { %p6098_p7 = pnand %p6096_p4, %p6444_p8  ;;  %p6105_p3 = por %p6104_p10, %p6103_p5 }
  0x54   : > { %p6099_p9 = pneg %p6098_p7 }
  0x56   : > { %p6106_p1 = pnand %p6105_p3, %p6099_p9 }
  0x58   : > { %6109 = shalt.err (!%p6106_p1)
}
  0x59   : > { %5936 = dma.hbm_to_vmem [thread:$0]  (!%p6428_p6), %s8478_s5, 256, %s288_s16, [#allocation14], %s8486_s15, %s8486_s15, %s6324_s17  }
  0x5a   : > { %s6325_s30 = smov [#allocation9]   ;;  %s6326_s19 = smov [#allocation12]  }
  0x5b   : > { %s251_s18 = sshll.u32 %s6325_s30, 4  ;;  %s274_s20 = sshll.u32 %s6326_s19, 4  ;;  %s252_s18 = int_to_ptr.vmem [resolvable:$true] %s251_s18  ;;  %s275_s20 = int_to_ptr.vmem [resolvable:$true] %s274_s20 }
  0x5c   : > { %s6110_s10 = scalar_lea.hbm %s8475_s2, 128 }
  0x5d   : > { %p6111_p1 = scmp.ne.s32.totalorder %s8475_s2, %s6110_s10  ;;  %p6117_p12 = scmp.lt.u32.totalorder %s6110_s10, %s8475_s2 }
  0x5f   : > { %p6113_p3 = pnand %p6111_p1, %p6444_p8 }
  0x61   : > { %p6114_p11 = pneg %p6113_p3 }
  0x63   : > { %p6119_p13 = pnand %p6117_p12, %p6114_p11 }
  0x65   : > { %6122 = shalt.err (!%p6119_p13)
}
  0x66   : > { %s6123_s16 = scalar_lea.vmem %s252_s18, 128  ;;  %p6131_p7 = scmp.lt.s32.totalorder %s252_s18, %s252_s18 }
  0x67   : > { %p6124_p0 = scmp.ne.s32.totalorder %s252_s18, %s6123_s16  ;;  %p6132_p9 = scmp.lt.s32.totalorder %s6123_s16, %s6123_s16 }
  0x69   : > { %p6126_p2 = pnand %p6124_p0, %p6444_p8  ;;  %p6133_p5 = por %p6132_p9, %p6131_p7 }
  0x6b   : > { %p6127_p4 = pneg %p6126_p2 }
  0x6d   : > { %p6134_p10 = pnand %p6133_p5, %p6127_p4 }
  0x6f   : > { %6137 = shalt.err (!%p6134_p10)
}
  0x70   : > { %5927 = dma.hbm_to_vmem [thread:$0]  (!%p6428_p6), %s8475_s2, 128, %s252_s18, [#allocation8]  }
  0x71   : > { %s6138_s21 = scalar_lea.hbm %s8477_s4, 512 }
  0x72   : > { %p6139_p1 = scmp.ne.s32.totalorder %s8477_s4, %s6138_s21  ;;  %p6145_p12 = scmp.lt.u32.totalorder %s6138_s21, %s8477_s4 }
  0x74   : > { %p6141_p3 = pnand %p6139_p1, %p6444_p8 }
  0x76   : > { %p6142_p11 = pneg %p6141_p3 }
  0x78   : > { %p6147_p13 = pnand %p6145_p12, %p6142_p11 }
  0x7a   : > { %6150 = shalt.err (!%p6147_p13)
}
  0x7b   : > { %s6151_s14 = scalar_lea.vmem %s275_s20, 512  ;;  %p6159_p7 = scmp.lt.s32.totalorder %s275_s20, %s275_s20 }
  0x7c   : > { %p6152_p0 = scmp.ne.s32.totalorder %s275_s20, %s6151_s14  ;;  %p6160_p9 = scmp.lt.s32.totalorder %s6151_s14, %s6151_s14 }
  0x7e   : > { %p6154_p2 = pnand %p6152_p0, %p6444_p8  ;;  %p6161_p5 = por %p6160_p9, %p6159_p7 }
  0x80   : > { %p6155_p4 = pneg %p6154_p2 }
  0x82   : > { %p6162_p10 = pnand %p6161_p5, %p6155_p4 }
  0x84   : > { %6165 = shalt.err (!%p6162_p10)
}
  0x85   : > { %5933 = dma.hbm_to_vmem [thread:$0]  (!%p6428_p6), %s8477_s4, 512, %s275_s20, [#allocation11], %s8486_s15, %s8486_s15, %s6324_s17  }
  0x86   : > { %s6327_s7 = smov [#allocation15]   ;;  %s6166_s21 = scalar_lea.hbm %s8479_s6, 128 }
  0x87   : > { %s301_s30 = sshll.u32 %s6327_s7, 4  ;;  %p6167_p1 = scmp.ne.s32.totalorder %s8479_s6, %s6166_s21  ;;  %s302_s30 = int_to_ptr.vmem [resolvable:$true] %s301_s30 }
  0x88   : > { %p6173_p12 = scmp.lt.u32.totalorder %s6166_s21, %s8479_s6 }
  0x89   : > { %p6169_p3 = pnand %p6167_p1, %p6444_p8 }
  0x8b   : > { %p6170_p11 = pneg %p6169_p3 }
  0x8d   : > { %p6175_p13 = pnand %p6173_p12, %p6170_p11 }
  0x8f   : > { %6178 = shalt.err (!%p6175_p13)
}
  0x90   : > { %s6179_s20 = scalar_lea.vmem %s302_s30, 128  ;;  %p6187_p7 = scmp.lt.s32.totalorder %s302_s30, %s302_s30 }
  0x91   : > { %p6180_p0 = scmp.ne.s32.totalorder %s302_s30, %s6179_s20  ;;  %p6188_p9 = scmp.lt.s32.totalorder %s6179_s20, %s6179_s20 }
  0x93   : > { %p6182_p2 = pnand %p6180_p0, %p6444_p8  ;;  %p6189_p5 = por %p6188_p9, %p6187_p7 }
  0x95   : > { %p6183_p4 = pneg %p6182_p2 }
  0x97   : > { %p6190_p10 = pnand %p6189_p5, %p6183_p4 }
  0x99   : > { %6193 = shalt.err (!%p6190_p10)
}
  0x9a   : > { %5939 = dma.hbm_to_vmem [thread:$0]  (!%p6428_p6), %s8479_s6, 128, %s302_s30, [#allocation14]  }
  0x9b   : > { %s4893_s22 = sadd.s32 4294967294, %s6318_s29   ;;  %s38_s16 = sadd.s32 1, %s6314_s28 }
  0x9c   : > { %p40_p8 = scmp.ge.s32.totalorder %s38_s16, 2  ;;  %s47_s12 = sadd.s32 1, %s6306_s26 }
  0x9d   : > { %p54_p1 = scmp.ne.s32.totalorder %s6306_s26, %s6302_s25  ;;  %p55_p3 = scmp.eq.s32.totalorder %s6318_s29, 0 }
  0x9e   : > { %s8881_s16 = smov (%p40_p8, %s38_s16), 0  ;;  %p60_p12 = scmp.ne.s32.totalorder %s6302_s25, %s6298_s24 }
  0x9f   : > { %p6581_p11 = por %p55_p3, %p54_p1  ;;  %s42_s30 = ssub.s32 %s6314_s28, %s8881_s16 }
  0xa0   : > { %s8594_s1 = sadd.s32 4294967295, %s6318_s29   ;;  %p45_p13 = scmp.eq.s32.totalorder %s42_s30, 0 }
  0xa1   : > { %p212_p6 = scmp.eq.s32.totalorder %s8594_s1, 1  ;;  %p8595_p0 = scmp.ne.s32.totalorder %s8588_s8, 0 }
  0xa2   : > { %p218_p7 = scmp.eq.s32.totalorder %s4893_s22, 1  ;;  %p5954_p5 = scmp.lt.s32.totalorder %s6318_s29, 2 }
  0xa3   : > { %p6593_p2 = por %p8595_p0, %p60_p12  ;;  %p6597_p4 = por %p212_p6, %p54_p1 }
  0xa4   : > { %s6602_s23 = scalar_select %p45_p13, %s6306_s26, %s47_s12  }
  0xa5   : > { %s8597_s21 = scalar_select %p6597_p4, 1, 0 }
  0xa6   : > { %p6604_p9 = por %p218_p7, %p60_p12  ;;  %s312_s13 = sand.u32 1, %s6306_s26  }
  0xa7   : > { %s5253_s11 = sshll.u32 %s6314_s28, 14  ;;  %s4902_s20 = sshll.u32 %s312_s13, 10 }
  0xa8   : > { %s8598_s10 = scalar_select %p6604_p9, 1, 0 }
  0xa9   : > { %s6614_s30 = scalar_lea.hbm %s8473_s0, %s5253_s11  ;;  %s316_s22 = scalar_lea.vmem [#allocation4], %s4902_s20 }
  0xaa   : > { %s325_s12 = sshll.u32 %s316_s22, 4  ;;  %p6618_p10 = pnand %p5954_p5, %p6581_p11  ;;  %s6622_s12 = int_to_ptr.vmem [resolvable:$true] %s325_s12 }
  0xab   : > { %s6624_s15 = scalar_lea.sflag [#allocation5], %s312_s13  ;;  %s6194_s14 = scalar_lea.hbm %s6614_s30, 16384 }
  0xac   : > { %p6195_p8 = scmp.ne.s32.totalorder %s6614_s30, %s6194_s14  ;;  %p6196_p1 = pneg %p6618_p10 }
  0xad   : > { %s6199_s20 = scalar_lea.hbm %s8473_s0, 32768  ;;  %p6200_p11 = scmp.lt.u32.totalorder %s6614_s30, %s8473_s0 }
  0xae   : > { %p6197_p3 = pnand %p6196_p1, %p6195_p8  ;;  %p6201_p6 = scmp.lt.u32.totalorder %s6199_s20, %s6194_s14 }
  0xaf   : > { %p6203_p0 = scmp.lt.u32.totalorder %s6194_s14, %s6614_s30 }
  0xb0   : > { %p6198_p12 = pneg %p6197_p3  ;;  %p6202_p13 = por %p6201_p6, %p6200_p11 }
  0xb2   : > { %p6204_p7 = por %p6203_p0, %p6202_p13 }
  0xb4   : > { %p6205_p5 = pnand %p6204_p7, %p6198_p12 }
  0xb6   : > { %6208 = shalt.err (!%p6205_p5)
}
  0xb7   : > { %s6209_s13 = scalar_lea.vmem %s6622_s12, 16384  ;;  %s6328_s11 = smov [#allocation4]  }
  0xb8   : > { %p6210_p8 = scmp.ne.s32.totalorder %s6622_s12, %s6209_s13  ;;  %s6214_s7 = sshll.u32 %s6328_s11, 4  ;;  %s6215_s7 = int_to_ptr.vmem [resolvable:$false] %s6214_s7 }
  0xb9   : > { %s6216_s18 = scalar_lea.vmem %s6215_s7, 32768  ;;  %p6217_p4 = scmp.lt.s32.totalorder %s6622_s12, %s6215_s7 }
  0xba   : > { %p6212_p3 = pnand %p6210_p8, %p6196_p1  ;;  %p6218_p11 = scmp.lt.s32.totalorder %s6216_s18, %s6209_s13 }
  0xbc   : > { %p6213_p9 = pneg %p6212_p3  ;;  %p6219_p6 = por %p6218_p11, %p6217_p4 }
  0xbe   : > { %p6220_p13 = pnand %p6219_p6, %p6213_p9 }
  0xc0   : > { %6223 = shalt.err (!%p6220_p13)
}
  0xc1   : > { %s8600_s14 = smov 128   ;;  %p8601_p1 = scmp.ne.s32.totalorder %s8589_s9, 0 }
  0xc2   : > { %5943 = dma.hbm_to_vmem [thread:$0]  (!%p6618_p10), %s6614_s30, 16384, %s6622_s12, %s6624_s15, %s8600_s14, %s8600_s14, %s6324_s17  }
  0xc3   : > { %337 = sbr.rel (%p8601_p1) target bundleno = 2412 (0x96c), region = 48 }
  0xca   : > { %s6658_s20 = sand.u32 1, %s6302_s25  }
  0xcb   : > { %s4906_s22 = sshll.u32 %s6658_s20, 10  ;;  %s340_s13 = scalar_lea.sflag [#allocation5], %s6658_s20 }
  0xcc   : > { %s6662_s11 = scalar_lea.vmem [#allocation4], %s4906_s22 }
  0xcd   : > { %6277 = dma.done.wait (%p6593_p2), %s340_s13, 16384  }
  0xce   : > { %6279 = vsyncadd (%p6593_p2), %s340_s13, 4294950912  ;;  %p8602_p4 = scmp.ne.s32.totalorder %s8588_s8, 0 }
  0xd0   : > { %6281 = dma.done.wait (%p8602_p4), [#allocation8], 384  }
  0xd1   : > { %6283 = vsyncadd (%p8602_p4), [#allocation8], 4294966912 }
  0xd2   : > { %6285 = dma.done.wait (%p8602_p4), [#allocation11], 1536  }
  0xd3   : > { %6287 = vsyncadd (%p8602_p4), [#allocation11], 4294965760 }
  0xd4   : > { %6289 = dma.done.wait (%p8602_p4), [#allocation14], 384  }
  0xd5   : > { %6291 = vsyncadd (%p8602_p4), [#allocation14], 4294966912  ;;  %v654_v0 = vld [vmem:[#allocation7] sm:$0xff]  ;;  %v655_v1 = vld [vmem:[#allocation7 + $0x8] sm:$0xff]  ;;  %vm720_vm0 = vcmask 130048   ;;  %s6329_s8 = smov 120  }
  0xd6   : > { %v399_v2 = vld [vmem:[%s6662_s11] ss:$4 sm:$0xff]  ;;  %v5849_v3 = vpack.c.bf16 %v655_v1, %v654_v0  ;;  %v4945_v4 = vld [vmem:[%s6662_s11 + $0x1] ss:$4 sm:$0xff]  ;;  %vm2966_vm1 = vcmask 64512   ;;  %s6330_s9 = smov 124  }
  0xd7   : > { %v4914_v5 = vld [vmem:[%s6662_s11 + $0x20] ss:$4 sm:$0xff]  ;;  %v4946_v6 = vld [vmem:[%s6662_s11 + $0x21] ss:$4 sm:$0xff]  ;;  %v656_v7 = vmax.f32 %v399_v2, %v4945_v4  ;;  %v688_v8 = vadd.f32 %v4945_v4, %v399_v2  ;;  %vm4025_vm2 = vcmask 31744   ;;  %s6331_s15 = smov 4  }
  0xd8   : > { %v4915_v9 = vld [vmem:[%s6662_s11 + $0x40] ss:$4 sm:$0xff]  ;;  %v4947_v10 = vld [vmem:[%s6662_s11 + $0x41] ss:$4 sm:$0xff]  ;;  %5850 = vmatprep.subr.bf16.mxu0 %v5849_v3  ;;  %5854 = vmatprep.subr.bf16.mxu1 %v5849_v3  ;;  %v657_v11 = vmax.f32 %v4914_v5, %v4946_v6  ;;  %v689_v12 = vadd.f32 %v4946_v6, %v4914_v5  ;;  %s6332_s17 = smov 8   ;;  %s6333_s19 = smov 12  }
  0xd9   : > { %5852 = vmatpush3.bf16.msra.mxu0 %v5849_v3  ;;  %5856 = vmatpush3.bf16.msra.mxu1 %v5849_v3  ;;  %v690_v13 = vadd.f32 %v4947_v10, %v4915_v9  ;;  %v4916_v14 = vld [vmem:[%s6662_s11 + $0x60] ss:$4 sm:$0xff]  ;;  %v4948_v15 = vld [vmem:[%s6662_s11 + $0x61] ss:$4 sm:$0xff]  ;;  %v658_v16 = vmax.f32 %v4915_v9, %v4947_v10  ;;  %vm4129_vm3 = vcmask 64544   ;;  %vm4186_vm4 = vcmask 97344  }
  0xda   : > { %5491 = vmatprep.mubr.msk.f32.mxu0 %vm720_vm0, %v656_v7  ;;  %5543 = vmatprep.mubr.msk.f32.mxu1 %vm720_vm0, %v688_v8  ;;  %v4917_v17 = vld [vmem:[%s6662_s11 + $0x80] ss:$4 sm:$0xff]  ;;  %v4949_v18 = vld [vmem:[%s6662_s11 + $0x81] ss:$4 sm:$0xff]  ;;  %v691_v19 = vadd.f32 %v4948_v15, %v4916_v14  ;;  %v659_v20 = vmax.f32 %v4916_v14, %v4948_v15  ;;  %vm4268_vm5 = vcmask 523264   ;;  %vm4243_vm6 = vcmask 130144  }
  0xdb   : > { %5862 = vmatprep.subr.bf16.mxu1 %v5849_v3  ;;  %v692_v21 = vadd.f32 %v4949_v18, %v4917_v17  ;;  %v4918_v22 = vld [vmem:[%s6662_s11 + $0xa0] ss:$4 sm:$0xff]  ;;  %v4950_v23 = vld [vmem:[%s6662_s11 + $0xa1] ss:$4 sm:$0xff]  ;;  %v660_v24 = vmax.f32 %v4917_v17, %v4949_v18  ;;  %5858 = vmatprep.subr.bf16.mxu0 %v5849_v3  ;;  %vm4422_vm7 = vcmask 261120   ;;  %vm6335_vm8 = vmmov 0  }
  0xdc   : > { %5492 = vmatmul.mubr.msk.f32.vlgmr.msra.gmra.mrb[0].mxu0 %vm720_vm0, %v657_v11  ;;  %5544 = vmatmul.mubr.msk.f32.vlgmr.msra.gmra.mrb[0].mxu1 %vm720_vm0, %v689_v12  ;;  %v4919_v25 = vld [vmem:[%s6662_s11 + $0xc0] ss:$4 sm:$0xff]  ;;  %v4951_v26 = vld [vmem:[%s6662_s11 + $0xc1] ss:$4 sm:$0xff]  ;;  %v693_v27 = vadd.f32 %v4950_v23, %v4918_v22  ;;  %v661_v28 = vmax.f32 %v4918_v22, %v4950_v23  ;;  %s4913_s30 = sshll.u32 %s6658_s20, 4  ;;  %s5254_s7 = sshll.u32 %s6310_s27, 8 }
  0xdd   : > { %5546 = vmatprep.mubr.msk.f32.mxu1 %vm720_vm0, %v690_v13  ;;  %5494 = vmatprep.mubr.msk.f32.mxu0 %vm720_vm0, %v658_v16  ;;  %v694_v29 = vadd.f32 %v4951_v26, %v4919_v25  ;;  %v4920_v30 = vld [vmem:[%s6662_s11 + $0xe0] ss:$4 sm:$0xff]  ;;  %v4952_v31 = vld [vmem:[%s6662_s11 + $0xe1] ss:$4 sm:$0xff]  ;;  %v662_v32 = vmax.f32 %v4919_v25, %v4951_v26  ;;  %s397_s12 = scalar_lea.vmem [#allocation16], %s4913_s30  ;;  %s8871_s22 = sld [smem:[#allocation106_spill]] }
  0xde   : > { %5864 = vmatpush3.bf16.msra.mxu1 %v5849_v3  ;;  %5860 = vmatpush3.bf16.msra.mxu0 %v5849_v3  ;;  %v4921_v33 = vld [vmem:[%s6662_s11 + $0x100] ss:$4 sm:$0xff]  ;;  %v4953_v34 = vld [vmem:[%s6662_s11 + $0x101] ss:$4 sm:$0xff]  ;;  %v695_v35 = vadd.f32 %v4952_v31, %v4920_v30  ;;  %v663_v36 = vmax.f32 %v4920_v30, %v4952_v31  ;;  %s4749_s1 = sshll.u32 %s397_s12, 4  ;;  %p8872_p9 = scmp.ne.s32.totalorder %s8597_s21, 0  ;;  %s8417_s1 = int_to_ptr.vmem [resolvable:$true] %s4749_s1 }
  0xdf   : > { %v696_v37 = vadd.f32 %v4953_v34, %v4921_v33  ;;  %v4922_v38 = vld [vmem:[%s6662_s11 + $0x120] ss:$4 sm:$0xff]  ;;  %v4954_v39 = vld [vmem:[%s6662_s11 + $0x121] ss:$4 sm:$0xff]  ;;  %v664_v40 = vmax.f32 %v4921_v33, %v4953_v34  ;;  %s6336_s27 = smov [#allocation16]  }
  0xe0   : > { %5547 = vmatmul.mubr.msk.f32.gmra.mrb[2].mxu1 %vm720_vm0, %v691_v19  ;;  %5495 = vmatmul.mubr.msk.f32.gmra.mrb[2].mxu0 %vm720_vm0, %v659_v20  ;;  %v4923_v41 = vld [vmem:[%s6662_s11 + $0x140] ss:$4 sm:$0xff]  ;;  %v4955_v42 = vld [vmem:[%s6662_s11 + $0x141] ss:$4 sm:$0xff]  ;;  %v697_v43 = vadd.f32 %v4954_v39, %v4922_v38  ;;  %v665_v44 = vmax.f32 %v4922_v38, %v4954_v39 }
  0xe1   : > { %5549 = vmatprep.mubr.msk.f32.mxu1 %vm720_vm0, %v692_v21  ;;  %5497 = vmatprep.mubr.msk.f32.mxu0 %vm720_vm0, %v660_v24  ;;  %v698_v45 = vadd.f32 %v4955_v42, %v4923_v41  ;;  %v4924_v46 = vld [vmem:[%s6662_s11 + $0x160] ss:$4 sm:$0xff]  ;;  %v4956_v47 = vld [vmem:[%s6662_s11 + $0x161] ss:$4 sm:$0xff]  ;;  %v666_v48 = vmax.f32 %v4923_v41, %v4955_v42 }
  0xe2   : > { %v4925_v49 = vld [vmem:[%s6662_s11 + $0x180] ss:$4 sm:$0xff]  ;;  %v4957_v50 = vld [vmem:[%s6662_s11 + $0x181] ss:$4 sm:$0xff]  ;;  %v699_v51 = vadd.f32 %v4956_v47, %v4924_v46  ;;  %v667_v52 = vmax.f32 %v4924_v46, %v4956_v47 }
  0xe3   : > { %v700_v53 = vadd.f32 %v4957_v50, %v4925_v49  ;;  %v4926_v54 = vld [vmem:[%s6662_s11 + $0x1a0] ss:$4 sm:$0xff]  ;;  %v4958_v55 = vld [vmem:[%s6662_s11 + $0x1a1] ss:$4 sm:$0xff]  ;;  %v668_v56 = vmax.f32 %v4925_v49, %v4957_v50  ;;  %s8422_s13 = scalar_lea.hbm %s8871_s22, %s5254_s7 }
  0xe4   : > { %5550 = vmatmul.mubr.msk.f32.gmra.mrb[4].mxu1 %vm720_vm0, %v693_v27  ;;  %5498 = vmatmul.mubr.msk.f32.gmra.mrb[4].mxu0 %vm720_vm0, %v661_v28  ;;  %v4927_v57 = vld [vmem:[%s6662_s11 + $0x1c0] ss:$4 sm:$0xff]  ;;  %v4959_v58 = vld [vmem:[%s6662_s11 + $0x1c1] ss:$4 sm:$0xff]  ;;  %v701_v59 = vadd.f32 %v4958_v55, %v4926_v54  ;;  %v669_v60 = vmax.f32 %v4926_v54, %v4958_v55 }
  0xe5   : > { %5552 = vmatprep.mubr.msk.f32.mxu1 %vm720_vm0, %v694_v29  ;;  %5500 = vmatprep.mubr.msk.f32.mxu0 %vm720_vm0, %v662_v32  ;;  %v702_v61 = vadd.f32 %v4959_v58, %v4927_v57  ;;  %v4928_v62 = vld [vmem:[%s6662_s11 + $0x1e0] ss:$4 sm:$0xff]  ;;  %v4960_v63 = vld [vmem:[%s6662_s11 + $0x1e1] ss:$4 sm:$0xff]  ;;  %v670_v0 = vmax.f32 %v4927_v57, %v4959_v58 }
  0xe6   : > { %v4929_v1 = vld [vmem:[%s6662_s11 + $0x200] ss:$4 sm:$0xff]  ;;  %v4961_v2 = vld [vmem:[%s6662_s11 + $0x201] ss:$4 sm:$0xff]  ;;  %v703_v3 = vadd.f32 %v4960_v63, %v4928_v62  ;;  %v671_v4 = vmax.f32 %v4928_v62, %v4960_v63 }
  0xe7   : > { %v704_v5 = vadd.f32 %v4961_v2, %v4929_v1  ;;  %v4930_v6 = vld [vmem:[%s6662_s11 + $0x220] ss:$4 sm:$0xff]  ;;  %v4962_v7 = vld [vmem:[%s6662_s11 + $0x221] ss:$4 sm:$0xff]  ;;  %v672_v8 = vmax.f32 %v4929_v1, %v4961_v2  ;;  %v4977_v1 = vld [vmem:[%s6662_s11 + $0x2] ss:$4 sm:$0xff] }
  0xe8   : > { %5553 = vmatmul.mubr.msk.f32.gmra.mrb[6].mxu1 %vm720_vm0, %v695_v35  ;;  %5501 = vmatmul.mubr.msk.f32.gmra.mrb[6].mxu0 %vm720_vm0, %v663_v36  ;;  %v4931_v9 = vld [vmem:[%s6662_s11 + $0x240] ss:$4 sm:$0xff]  ;;  %v4963_v10 = vld [vmem:[%s6662_s11 + $0x241] ss:$4 sm:$0xff]  ;;  %v705_v11 = vadd.f32 %v4962_v7, %v4930_v6  ;;  %v673_v12 = vmax.f32 %v4930_v6, %v4962_v7  ;;  %v5009_v2 = vld [vmem:[%s6662_s11 + $0x3] ss:$4 sm:$0xff] }
  0xe9   : > { %5555 = vmatprep.mubr.msk.f32.mxu1 %vm720_vm0, %v696_v37  ;;  %5503 = vmatprep.mubr.msk.f32.mxu0 %vm720_vm0, %v664_v40  ;;  %v706_v13 = vadd.f32 %v4963_v10, %v4931_v9  ;;  %v4932_v14 = vld [vmem:[%s6662_s11 + $0x260] ss:$4 sm:$0xff]  ;;  %v4964_v15 = vld [vmem:[%s6662_s11 + $0x261] ss:$4 sm:$0xff]  ;;  %v674_v16 = vmax.f32 %v4931_v9, %v4963_v10  ;;  %v4978_v6 = vld [vmem:[%s6662_s11 + $0x22] ss:$4 sm:$0xff] }
  0xea   : > { %v4933_v17 = vld [vmem:[%s6662_s11 + $0x280] ss:$4 sm:$0xff]  ;;  %v4965_v18 = vld [vmem:[%s6662_s11 + $0x281] ss:$4 sm:$0xff]  ;;  %v707_v19 = vadd.f32 %v4964_v15, %v4932_v14  ;;  %v675_v20 = vmax.f32 %v4932_v14, %v4964_v15  ;;  %v5010_v7 = vld [vmem:[%s6662_s11 + $0x23] ss:$4 sm:$0xff] }
  0xeb   : > { %v708_v21 = vadd.f32 %v4965_v18, %v4933_v17  ;;  %v4934_v22 = vld [vmem:[%s6662_s11 + $0x2a0] ss:$4 sm:$0xff]  ;;  %v4966_v23 = vld [vmem:[%s6662_s11 + $0x2a1] ss:$4 sm:$0xff]  ;;  %v676_v24 = vmax.f32 %v4933_v17, %v4965_v18  ;;  %v4979_v9 = vld [vmem:[%s6662_s11 + $0x42] ss:$4 sm:$0xff] }
  0xec   : > { %5556 = vmatmul.mubr.msk.f32.gmra.mrb[8].mxu1 %vm720_vm0, %v697_v43  ;;  %5504 = vmatmul.mubr.msk.f32.gmra.mrb[8].mxu0 %vm720_vm0, %v665_v44  ;;  %v4935_v25 = vld [vmem:[%s6662_s11 + $0x2c0] ss:$4 sm:$0xff]  ;;  %v4967_v26 = vld [vmem:[%s6662_s11 + $0x2c1] ss:$4 sm:$0xff]  ;;  %v709_v27 = vadd.f32 %v4966_v23, %v4934_v22  ;;  %v677_v28 = vmax.f32 %v4934_v22, %v4966_v23  ;;  %v5011_v10 = vld [vmem:[%s6662_s11 + $0x43] ss:$4 sm:$0xff] }
  0xed   : > { %5558 = vmatprep.mubr.msk.f32.mxu1 %vm720_vm0, %v698_v45  ;;  %5506 = vmatprep.mubr.msk.f32.mxu0 %vm720_vm0, %v666_v48  ;;  %v710_v29 = vadd.f32 %v4967_v26, %v4935_v25  ;;  %v4936_v30 = vld [vmem:[%s6662_s11 + $0x2e0] ss:$4 sm:$0xff]  ;;  %v4968_v31 = vld [vmem:[%s6662_s11 + $0x2e1] ss:$4 sm:$0xff]  ;;  %v678_v32 = vmax.f32 %v4935_v25, %v4967_v26  ;;  %v4980_v14 = vld [vmem:[%s6662_s11 + $0x62] ss:$4 sm:$0xff] }
  0xee   : > { %v4937_v33 = vld [vmem:[%s6662_s11 + $0x300] ss:$4 sm:$0xff]  ;;  %v4969_v34 = vld [vmem:[%s6662_s11 + $0x301] ss:$4 sm:$0xff]  ;;  %v711_v35 = vadd.f32 %v4968_v31, %v4936_v30  ;;  %v679_v36 = vmax.f32 %v4936_v30, %v4968_v31  ;;  %v5012_v15 = vld [vmem:[%s6662_s11 + $0x63] ss:$4 sm:$0xff] }
  0xef   : > { %v712_v37 = vadd.f32 %v4969_v34, %v4937_v33  ;;  %v4938_v38 = vld [vmem:[%s6662_s11 + $0x320] ss:$4 sm:$0xff]  ;;  %v4970_v39 = vld [vmem:[%s6662_s11 + $0x321] ss:$4 sm:$0xff]  ;;  %v680_v40 = vmax.f32 %v4937_v33, %v4969_v34  ;;  %v4981_v17 = vld [vmem:[%s6662_s11 + $0x82] ss:$4 sm:$0xff] }
  0xf0   : > { %5559 = vmatmul.mubr.msk.f32.gmra.mrb[10].mxu1 %vm720_vm0, %v699_v51  ;;  %5507 = vmatmul.mubr.msk.f32.gmra.mrb[10].mxu0 %vm720_vm0, %v667_v52  ;;  %v4939_v41 = vld [vmem:[%s6662_s11 + $0x340] ss:$4 sm:$0xff]  ;;  %v4971_v42 = vld [vmem:[%s6662_s11 + $0x341] ss:$4 sm:$0xff]  ;;  %v713_v43 = vadd.f32 %v4970_v39, %v4938_v38  ;;  %v681_v44 = vmax.f32 %v4938_v38, %v4970_v39  ;;  %v5013_v18 = vld [vmem:[%s6662_s11 + $0x83] ss:$4 sm:$0xff] }
  0xf1   : > { %5561 = vmatprep.mubr.msk.f32.mxu1 %vm720_vm0, %v700_v53  ;;  %5509 = vmatprep.mubr.msk.f32.mxu0 %vm720_vm0, %v668_v56  ;;  %v714_v45 = vadd.f32 %v4971_v42, %v4939_v41  ;;  %v4940_v46 = vld [vmem:[%s6662_s11 + $0x360] ss:$4 sm:$0xff]  ;;  %v4972_v47 = vld [vmem:[%s6662_s11 + $0x361] ss:$4 sm:$0xff]  ;;  %v682_v48 = vmax.f32 %v4939_v41, %v4971_v42  ;;  %v4982_v22 = vld [vmem:[%s6662_s11 + $0xa2] ss:$4 sm:$0xff] }
  0xf2   : > { %v4941_v49 = vld [vmem:[%s6662_s11 + $0x380] ss:$4 sm:$0xff]  ;;  %v4973_v50 = vld [vmem:[%s6662_s11 + $0x381] ss:$4 sm:$0xff]  ;;  %v715_v51 = vadd.f32 %v4972_v47, %v4940_v46  ;;  %v683_v52 = vmax.f32 %v4940_v46, %v4972_v47  ;;  %v5014_v23 = vld [vmem:[%s6662_s11 + $0xa3] ss:$4 sm:$0xff] }
  0xf3   : > { %v716_v53 = vadd.f32 %v4973_v50, %v4941_v49  ;;  %v4942_v54 = vld [vmem:[%s6662_s11 + $0x3a0] ss:$4 sm:$0xff]  ;;  %v4974_v55 = vld [vmem:[%s6662_s11 + $0x3a1] ss:$4 sm:$0xff]  ;;  %v684_v56 = vmax.f32 %v4941_v49, %v4973_v50  ;;  %v4983_v25 = vld [vmem:[%s6662_s11 + $0xc2] ss:$4 sm:$0xff] }
  0xf4   : > { %5562 = vmatmul.mubr.msk.f32.gmra.mrb[12].mxu1 %vm720_vm0, %v701_v59  ;;  %5510 = vmatmul.mubr.msk.f32.gmra.mrb[12].mxu0 %vm720_vm0, %v669_v60  ;;  %v4943_v57 = vld [vmem:[%s6662_s11 + $0x3c0] ss:$4 sm:$0xff]  ;;  %v4975_v58 = vld [vmem:[%s6662_s11 + $0x3c1] ss:$4 sm:$0xff]  ;;  %v717_v59 = vadd.f32 %v4974_v55, %v4942_v54  ;;  %v685_v60 = vmax.f32 %v4942_v54, %v4974_v55  ;;  %v5015_v26 = vld [vmem:[%s6662_s11 + $0xc3] ss:$4 sm:$0xff] }
  0xf5   : > { %5564 = vmatprep.mubr.msk.f32.mxu1 %vm720_vm0, %v702_v61  ;;  %5512 = vmatprep.mubr.msk.f32.mxu0 %vm720_vm0, %v670_v0  ;;  %v718_v61 = vadd.f32 %v4975_v58, %v4943_v57  ;;  %v4944_v62 = vld [vmem:[%s6662_s11 + $0x3e0] ss:$4 sm:$0xff]  ;;  %v4976_v63 = vld [vmem:[%s6662_s11 + $0x3e1] ss:$4 sm:$0xff]  ;;  %v686_v0 = vmax.f32 %v4943_v57, %v4975_v58  ;;  %v4984_v30 = vld [vmem:[%s6662_s11 + $0xe2] ss:$4 sm:$0xff] }
  0xf6   : > { %v5016_v31 = vld [vmem:[%s6662_s11 + $0xe3] ss:$4 sm:$0xff]  ;;  %v4985_v33 = vld [vmem:[%s6662_s11 + $0x102] ss:$4 sm:$0xff] }
  0xf7   : > { %v5017_v34 = vld [vmem:[%s6662_s11 + $0x103] ss:$4 sm:$0xff]  ;;  %v4986_v38 = vld [vmem:[%s6662_s11 + $0x122] ss:$4 sm:$0xff] }
  0xf8   : > { %5565 = vmatmul.mubr.msk.f32.gmra.mrb[14].mxu1 %vm720_vm0, %v703_v3  ;;  %5513 = vmatmul.mubr.msk.f32.gmra.mrb[14].mxu0 %vm720_vm0, %v671_v4  ;;  %v719_v3 = vadd.f32 %v4976_v63, %v4944_v62  ;;  %v687_v4 = vmax.f32 %v4944_v62, %v4976_v63  ;;  %v5018_v39 = vld [vmem:[%s6662_s11 + $0x123] ss:$4 sm:$0xff]  ;;  %v4987_v41 = vld [vmem:[%s6662_s11 + $0x142] ss:$4 sm:$0xff] }
  0xf9   : > { %5567 = vmatprep.mubr.msk.f32.mxu1 %vm720_vm0, %v704_v5  ;;  %5515 = vmatprep.mubr.msk.f32.mxu0 %vm720_vm0, %v672_v8  ;;  %v1811_v5 = vadd.f32 %v5009_v2, %v4977_v1  ;;  %v1779_v8 = vmax.f32 %v4977_v1, %v5009_v2  ;;  %v5019_v42 = vld [vmem:[%s6662_s11 + $0x143] ss:$4 sm:$0xff]  ;;  %v4988_v46 = vld [vmem:[%s6662_s11 + $0x162] ss:$4 sm:$0xff] }
  0xfa   : > { %v5020_v47 = vld [vmem:[%s6662_s11 + $0x163] ss:$4 sm:$0xff]  ;;  %v4989_v49 = vld [vmem:[%s6662_s11 + $0x182] ss:$4 sm:$0xff] }
  0xfb   : > { %v5021_v50 = vld [vmem:[%s6662_s11 + $0x183] ss:$4 sm:$0xff]  ;;  %v4990_v54 = vld [vmem:[%s6662_s11 + $0x1a2] ss:$4 sm:$0xff] }
  0xfc   : > { %5568 = vmatmul.mubr.msk.f32.gmra.mrb[16].mxu1 %vm720_vm0, %v705_v11  ;;  %5516 = vmatmul.mubr.msk.f32.gmra.mrb[16].mxu0 %vm720_vm0, %v673_v12  ;;  %v1812_v11 = vadd.f32 %v5010_v7, %v4978_v6  ;;  %v1780_v12 = vmax.f32 %v4978_v6, %v5010_v7  ;;  %v5022_v55 = vld [vmem:[%s6662_s11 + $0x1a3] ss:$4 sm:$0xff]  ;;  %v4991_v57 = vld [vmem:[%s6662_s11 + $0x1c2] ss:$4 sm:$0xff] }
  0xfd   : > { %5570 = vmatprep.mubr.msk.f32.mxu1 %vm720_vm0, %v706_v13  ;;  %5518 = vmatprep.mubr.msk.f32.mxu0 %vm720_vm0, %v674_v16  ;;  %v1813_v13 = vadd.f32 %v5011_v10, %v4979_v9  ;;  %v1781_v16 = vmax.f32 %v4979_v9, %v5011_v10  ;;  %v5023_v58 = vld [vmem:[%s6662_s11 + $0x1c3] ss:$4 sm:$0xff]  ;;  %v4992_v62 = vld [vmem:[%s6662_s11 + $0x1e2] ss:$4 sm:$0xff] }
  0xfe   : > { %v5024_v63 = vld [vmem:[%s6662_s11 + $0x1e3] ss:$4 sm:$0xff]  ;;  %v4993_v1 = vld [vmem:[%s6662_s11 + $0x202] ss:$4 sm:$0xff] }
  0xff   : > { %v5025_v2 = vld [vmem:[%s6662_s11 + $0x203] ss:$4 sm:$0xff]  ;;  %v4994_v6 = vld [vmem:[%s6662_s11 + $0x222] ss:$4 sm:$0xff] }
 0x100   : > { %5571 = vmatmul.mubr.msk.f32.gmra.mrb[18].mxu1 %vm720_vm0, %v707_v19  ;;  %5519 = vmatmul.mubr.msk.f32.gmra.mrb[18].mxu0 %vm720_vm0, %v675_v20  ;;  %v1814_v19 = vadd.f32 %v5012_v15, %v4980_v14  ;;  %v1782_v20 = vmax.f32 %v4980_v14, %v5012_v15  ;;  %v5026_v7 = vld [vmem:[%s6662_s11 + $0x223] ss:$4 sm:$0xff]  ;;  %v4995_v9 = vld [vmem:[%s6662_s11 + $0x242] ss:$4 sm:$0xff] }
 0x101   : > { %5573 = vmatprep.mubr.msk.f32.mxu1 %vm720_vm0, %v708_v21  ;;  %5521 = vmatprep.mubr.msk.f32.mxu0 %vm720_vm0, %v676_v24  ;;  %v1815_v21 = vadd.f32 %v5013_v18, %v4981_v17  ;;  %v1783_v24 = vmax.f32 %v4981_v17, %v5013_v18  ;;  %v5027_v10 = vld [vmem:[%s6662_s11 + $0x243] ss:$4 sm:$0xff]  ;;  %v4996_v14 = vld [vmem:[%s6662_s11 + $0x262] ss:$4 sm:$0xff] }
 0x102   : > { %v5028_v15 = vld [vmem:[%s6662_s11 + $0x263] ss:$4 sm:$0xff]  ;;  %v4997_v17 = vld [vmem:[%s6662_s11 + $0x282] ss:$4 sm:$0xff] }
 0x103   : > { %v5029_v18 = vld [vmem:[%s6662_s11 + $0x283] ss:$4 sm:$0xff] }
 0x104   : > { %5574 = vmatmul.mubr.msk.f32.gmra.mrb[20].mxu1 %vm720_vm0, %v709_v27  ;;  %5522 = vmatmul.mubr.msk.f32.gmra.mrb[20].mxu0 %vm720_vm0, %v677_v28  ;;  %v1816_v27 = vadd.f32 %v5014_v23, %v4982_v22  ;;  %v1784_v28 = vmax.f32 %v4982_v22, %v5014_v23  ;;  %v4998_v22 = vld [vmem:[%s6662_s11 + $0x2a2] ss:$4 sm:$0xff]  ;;  %v5030_v23 = vld [vmem:[%s6662_s11 + $0x2a3] ss:$4 sm:$0xff] }
 0x105   : > { %5576 = vmatprep.mubr.msk.f32.mxu1 %vm720_vm0, %v710_v29  ;;  %5524 = vmatprep.mubr.msk.f32.mxu0 %vm720_vm0, %v678_v32  ;;  %v1817_v29 = vadd.f32 %v5015_v26, %v4983_v25  ;;  %v1785_v32 = vmax.f32 %v4983_v25, %v5015_v26  ;;  %v1832_v25 = vadd.f32 %v5030_v23, %v4998_v22 }
 0x106   : > { %v1800_v26 = vmax.f32 %v4998_v22, %v5030_v23 }
 0x108   : > { %5577 = vmatmul.mubr.msk.f32.gmra.mrb[22].mxu1 %vm720_vm0, %v711_v35  ;;  %5525 = vmatmul.mubr.msk.f32.gmra.mrb[22].mxu0 %vm720_vm0, %v679_v36  ;;  %v1818_v35 = vadd.f32 %v5016_v31, %v4984_v30  ;;  %v1786_v36 = vmax.f32 %v4984_v30, %v5016_v31  ;;  %v5000_v30 = vld [vmem:[%s6662_s11 + $0x2e2] ss:$4 sm:$0xff]  ;;  %v5032_v31 = vld [vmem:[%s6662_s11 + $0x2e3] ss:$4 sm:$0xff] }
 0x109   : > { %5579 = vmatprep.mubr.msk.f32.mxu1 %vm720_vm0, %v712_v37  ;;  %5527 = vmatprep.mubr.msk.f32.mxu0 %vm720_vm0, %v680_v40  ;;  %v1819_v37 = vadd.f32 %v5017_v34, %v4985_v33  ;;  %v1787_v40 = vmax.f32 %v4985_v33, %v5017_v34  ;;  %v1802_v34 = vmax.f32 %v5000_v30, %v5032_v31 }
 0x10c   : > { %5580 = vmatmul.mubr.msk.f32.gmra.mrb[24].mxu1 %vm720_vm0, %v713_v43  ;;  %5528 = vmatmul.mubr.msk.f32.gmra.mrb[24].mxu0 %vm720_vm0, %v681_v44  ;;  %v1820_v43 = vadd.f32 %v5018_v39, %v4986_v38  ;;  %v1788_v44 = vmax.f32 %v4986_v38, %v5018_v39  ;;  %v5002_v38 = vld [vmem:[%s6662_s11 + $0x322] ss:$4 sm:$0xff]  ;;  %v5034_v39 = vld [vmem:[%s6662_s11 + $0x323] ss:$4 sm:$0xff] }
 0x10d   : > { %5582 = vmatprep.mubr.msk.f32.mxu1 %vm720_vm0, %v714_v45  ;;  %5530 = vmatprep.mubr.msk.f32.mxu0 %vm720_vm0, %v682_v48  ;;  %v1821_v45 = vadd.f32 %v5019_v42, %v4987_v41  ;;  %v1789_v48 = vmax.f32 %v4987_v41, %v5019_v42  ;;  %v1804_v42 = vmax.f32 %v5002_v38, %v5034_v39 }
 0x110   : > { %5583 = vmatmul.mubr.msk.f32.gmra.mrb[26].mxu1 %vm720_vm0, %v715_v51  ;;  %5531 = vmatmul.mubr.msk.f32.gmra.mrb[26].mxu0 %vm720_vm0, %v683_v52  ;;  %v1822_v51 = vadd.f32 %v5020_v47, %v4988_v46  ;;  %v1790_v52 = vmax.f32 %v4988_v46, %v5020_v47  ;;  %v5004_v46 = vld [vmem:[%s6662_s11 + $0x362] ss:$4 sm:$0xff]  ;;  %v5036_v47 = vld [vmem:[%s6662_s11 + $0x363] ss:$4 sm:$0xff] }
 0x111   : > { %5585 = vmatprep.mubr.msk.f32.mxu1 %vm720_vm0, %v716_v53  ;;  %5533 = vmatprep.mubr.msk.f32.mxu0 %vm720_vm0, %v684_v56  ;;  %v1823_v53 = vadd.f32 %v5021_v50, %v4989_v49  ;;  %v1791_v56 = vmax.f32 %v4989_v49, %v5021_v50  ;;  %v1806_v50 = vmax.f32 %v5004_v46, %v5036_v47 }
 0x114   : > { %5586 = vmatmul.mubr.msk.f32.gmra.mrb[28].mxu1 %vm720_vm0, %v717_v59  ;;  %5534 = vmatmul.mubr.msk.f32.gmra.mrb[28].mxu0 %vm720_vm0, %v685_v60  ;;  %v1824_v59 = vadd.f32 %v5022_v55, %v4990_v54  ;;  %v1792_v60 = vmax.f32 %v4990_v54, %v5022_v55  ;;  %v5006_v54 = vld [vmem:[%s6662_s11 + $0x3a2] ss:$4 sm:$0xff]  ;;  %v5038_v55 = vld [vmem:[%s6662_s11 + $0x3a3] ss:$4 sm:$0xff] }
 0x115   : > { %5588 = vmatprep.mubr.msk.f32.mxu1 %vm720_vm0, %v718_v61  ;;  %5536 = vmatprep.mubr.msk.f32.mxu0 %vm720_vm0, %v686_v0  ;;  %v1825_v61 = vadd.f32 %v5023_v58, %v4991_v57  ;;  %v1793_v0 = vmax.f32 %v4991_v57, %v5023_v58  ;;  %v1808_v58 = vmax.f32 %v5006_v54, %v5038_v55 }
 0x118   : > { %5589 = vmatmul.mubr.msk.f32.gmra.mrb[30].mxu1 %vm720_vm0, %v719_v3  ;;  %5537 = vmatmul.mubr.msk.f32.gmra.mrb[30].mxu0 %vm720_vm0, %v687_v4  ;;  %v1826_v3 = vadd.f32 %v5024_v63, %v4992_v62  ;;  %v1794_v4 = vmax.f32 %v4992_v62, %v5024_v63  ;;  %v5008_v62 = vld [vmem:[%s6662_s11 + $0x3e2] ss:$4 sm:$0xff]  ;;  %v5040_v63 = vld [vmem:[%s6662_s11 + $0x3e3] ss:$4 sm:$0xff] }
 0x119   : > { %5647 = vmatprep.mubr.msk.f32.mxu1 %vm720_vm0, %v1811_v5  ;;  %5595 = vmatprep.mubr.msk.f32.mxu0 %vm720_vm0, %v1779_v8  ;;  %v1827_v5 = vadd.f32 %v5025_v2, %v4993_v1  ;;  %v1795_v8 = vmax.f32 %v4993_v1, %v5025_v2  ;;  %v1810_v2 = vmax.f32 %v5008_v62, %v5040_v63 }
 0x11c   : > { %5648 = vmatmul.mubr.msk.f32.vlgmr.msra.gmra.mrb[32].mxu1 %vm720_vm0, %v1812_v11  ;;  %5596 = vmatmul.mubr.msk.f32.vlgmr.msra.gmra.mrb[32].mxu0 %vm720_vm0, %v1780_v12  ;;  %v1828_v11 = vadd.f32 %v5026_v7, %v4994_v6  ;;  %v1796_v12 = vmax.f32 %v4994_v6, %v5026_v7 }
 0x11d   : > { %5650 = vmatprep.mubr.msk.f32.mxu1 %vm720_vm0, %v1813_v13  ;;  %5598 = vmatprep.mubr.msk.f32.mxu0 %vm720_vm0, %v1781_v16  ;;  %v1829_v13 = vadd.f32 %v5027_v10, %v4995_v9  ;;  %v1797_v16 = vmax.f32 %v4995_v9, %v5027_v10 }
 0x120   : > { %5651 = vmatmul.mubr.msk.f32.gmra.mrb[34].mxu1 %vm720_vm0, %v1814_v19  ;;  %5599 = vmatmul.mubr.msk.f32.gmra.mrb[34].mxu0 %vm720_vm0, %v1782_v20  ;;  %v1830_v19 = vadd.f32 %v5028_v15, %v4996_v14  ;;  %v1798_v20 = vmax.f32 %v4996_v14, %v5028_v15 }
 0x121   : > { %5653 = vmatprep.mubr.msk.f32.mxu1 %vm720_vm0, %v1815_v21  ;;  %5601 = vmatprep.mubr.msk.f32.mxu0 %vm720_vm0, %v1783_v24  ;;  %v1831_v21 = vadd.f32 %v5029_v18, %v4997_v17  ;;  %v1799_v24 = vmax.f32 %v4997_v17, %v5029_v18 }
 0x124   : > { %5654 = vmatmul.mubr.msk.f32.gmra.mrb[36].mxu1 %vm720_vm0, %v1816_v27  ;;  %5602 = vmatmul.mubr.msk.f32.gmra.mrb[36].mxu0 %vm720_vm0, %v1784_v28  ;;  %v4999_v27 = vld [vmem:[%s6662_s11 + $0x2c2] ss:$4 sm:$0xff]  ;;  %v5031_v28 = vld [vmem:[%s6662_s11 + $0x2c3] ss:$4 sm:$0xff] }
 0x125   : > { %5656 = vmatprep.mubr.msk.f32.mxu1 %vm720_vm0, %v1817_v29  ;;  %5604 = vmatprep.mubr.msk.f32.mxu0 %vm720_vm0, %v1785_v32  ;;  %v1833_v29 = vadd.f32 %v5031_v28, %v4999_v27  ;;  %v1834_v32 = vadd.f32 %v5032_v31, %v5000_v30  ;;  %v1801_v33 = vmax.f32 %v4999_v27, %v5031_v28 }
 0x128   : > { %5657 = vmatmul.mubr.msk.f32.gmra.mrb[38].mxu1 %vm720_vm0, %v1818_v35  ;;  %5605 = vmatmul.mubr.msk.f32.gmra.mrb[38].mxu0 %vm720_vm0, %v1786_v36  ;;  %v5001_v35 = vld [vmem:[%s6662_s11 + $0x302] ss:$4 sm:$0xff]  ;;  %v5033_v36 = vld [vmem:[%s6662_s11 + $0x303] ss:$4 sm:$0xff] }
 0x129   : > { %5659 = vmatprep.mubr.msk.f32.mxu1 %vm720_vm0, %v1819_v37  ;;  %5607 = vmatprep.mubr.msk.f32.mxu0 %vm720_vm0, %v1787_v40  ;;  %v1835_v37 = vadd.f32 %v5033_v36, %v5001_v35  ;;  %v1836_v40 = vadd.f32 %v5034_v39, %v5002_v38  ;;  %v1803_v41 = vmax.f32 %v5001_v35, %v5033_v36 }
 0x12c   : > { %5660 = vmatmul.mubr.msk.f32.gmra.mrb[40].mxu1 %vm720_vm0, %v1820_v43  ;;  %5608 = vmatmul.mubr.msk.f32.gmra.mrb[40].mxu0 %vm720_vm0, %v1788_v44  ;;  %v5003_v43 = vld [vmem:[%s6662_s11 + $0x342] ss:$4 sm:$0xff]  ;;  %v5035_v44 = vld [vmem:[%s6662_s11 + $0x343] ss:$4 sm:$0xff] }
 0x12d   : > { %5662 = vmatprep.mubr.msk.f32.mxu1 %vm720_vm0, %v1821_v45  ;;  %5610 = vmatprep.mubr.msk.f32.mxu0 %vm720_vm0, %v1789_v48  ;;  %v1837_v45 = vadd.f32 %v5035_v44, %v5003_v43  ;;  %v1838_v48 = vadd.f32 %v5036_v47, %v5004_v46  ;;  %v1805_v49 = vmax.f32 %v5003_v43, %v5035_v44 }
 0x130   : > { %5663 = vmatmul.mubr.msk.f32.gmra.mrb[42].mxu1 %vm720_vm0, %v1822_v51  ;;  %5611 = vmatmul.mubr.msk.f32.gmra.mrb[42].mxu0 %vm720_vm0, %v1790_v52  ;;  %v5005_v51 = vld [vmem:[%s6662_s11 + $0x382] ss:$4 sm:$0xff]  ;;  %v5037_v52 = vld [vmem:[%s6662_s11 + $0x383] ss:$4 sm:$0xff] }
 0x131   : > { %5665 = vmatprep.mubr.msk.f32.mxu1 %vm720_vm0, %v1823_v53  ;;  %5613 = vmatprep.mubr.msk.f32.mxu0 %vm720_vm0, %v1791_v56  ;;  %v1839_v53 = vadd.f32 %v5037_v52, %v5005_v51  ;;  %v1840_v56 = vadd.f32 %v5038_v55, %v5006_v54  ;;  %v1807_v57 = vmax.f32 %v5005_v51, %v5037_v52 }
 0x134   : > { %5666 = vmatmul.mubr.msk.f32.gmra.mrb[44].mxu1 %vm720_vm0, %v1824_v59  ;;  %5614 = vmatmul.mubr.msk.f32.gmra.mrb[44].mxu0 %vm720_vm0, %v1792_v60  ;;  %v5007_v59 = vld [vmem:[%s6662_s11 + $0x3c2] ss:$4 sm:$0xff]  ;;  %v5039_v60 = vld [vmem:[%s6662_s11 + $0x3c3] ss:$4 sm:$0xff]  ;;  %s4735_s11 = scalar_lea.sflag [#allocation6], %s6658_s20 }
 0x135   : > { %5668 = vmatprep.mubr.msk.f32.mxu1 %vm720_vm0, %v1825_v61  ;;  %5616 = vmatprep.mubr.msk.f32.mxu0 %vm720_vm0, %v1793_v0  ;;  %v1841_v61 = vadd.f32 %v5039_v60, %v5007_v59  ;;  %v1842_v0 = vadd.f32 %v5040_v63, %v5008_v62  ;;  %v1809_v1 = vmax.f32 %v5007_v59, %v5039_v60 }
 0x138   : > { %5669 = vmatmul.mubr.msk.f32.gmra.mrb[46].mxu1 %vm720_vm0, %v1826_v3  ;;  %5617 = vmatmul.mubr.msk.f32.gmra.mrb[46].mxu0 %vm720_vm0, %v1794_v4 }
 0x139   : > { %5671 = vmatprep.mubr.msk.f32.mxu1 %vm720_vm0, %v1827_v5  ;;  %5619 = vmatprep.mubr.msk.f32.mxu0 %vm720_vm0, %v1795_v8 }
 0x13c   : > { %5672 = vmatmul.mubr.msk.f32.gmra.mrb[48].mxu1 %vm720_vm0, %v1828_v11  ;;  %5620 = vmatmul.mubr.msk.f32.gmra.mrb[48].mxu0 %vm720_vm0, %v1796_v12 }
 0x13d   : > { %5674 = vmatprep.mubr.msk.f32.mxu1 %vm720_vm0, %v1829_v13  ;;  %5622 = vmatprep.mubr.msk.f32.mxu0 %vm720_vm0, %v1797_v16 }
 0x140   : > { %5675 = vmatmul.mubr.msk.f32.gmra.mrb[50].mxu1 %vm720_vm0, %v1830_v19  ;;  %5623 = vmatmul.mubr.msk.f32.gmra.mrb[50].mxu0 %vm720_vm0, %v1798_v20 }
 0x141   : > { %5677 = vmatprep.mubr.msk.f32.mxu1 %vm720_vm0, %v1831_v21  ;;  %5625 = vmatprep.mubr.msk.f32.mxu0 %vm720_vm0, %v1799_v24 }
 0x144   : > { %5678 = vmatmul.mubr.msk.f32.gmra.mrb[52].mxu1 %vm720_vm0, %v1832_v25  ;;  %5626 = vmatmul.mubr.msk.f32.gmra.mrb[52].mxu0 %vm720_vm0, %v1800_v26 }
 0x145   : > { %5680 = vmatprep.mubr.msk.f32.mxu1 %vm720_vm0, %v1833_v29  ;;  %5628 = vmatprep.mubr.msk.f32.mxu0 %vm720_vm0, %v1801_v33 }
 0x148   : > { %5681 = vmatmul.mubr.msk.f32.gmra.mrb[54].mxu1 %vm720_vm0, %v1834_v32  ;;  %5629 = vmatmul.mubr.msk.f32.gmra.mrb[54].mxu0 %vm720_vm0, %v1802_v34 }
 0x149   : > { %5683 = vmatprep.mubr.msk.f32.mxu1 %vm720_vm0, %v1835_v37  ;;  %5631 = vmatprep.mubr.msk.f32.mxu0 %vm720_vm0, %v1803_v41 }
 0x14c   : > { %5684 = vmatmul.mubr.msk.f32.gmra.mrb[56].mxu1 %vm720_vm0, %v1836_v40  ;;  %5632 = vmatmul.mubr.msk.f32.gmra.mrb[56].mxu0 %vm720_vm0, %v1804_v42 }
 0x14d   : > { %5686 = vmatprep.mubr.msk.f32.mxu1 %vm720_vm0, %v1837_v45  ;;  %5634 = vmatprep.mubr.msk.f32.mxu0 %vm720_vm0, %v1805_v49 }
 0x150   : > { %5687 = vmatmul.mubr.msk.f32.gmra.mrb[58].mxu1 %vm720_vm0, %v1838_v48  ;;  %5635 = vmatmul.mubr.msk.f32.gmra.mrb[58].mxu0 %vm720_vm0, %v1806_v50 }
 0x151   : > { %5689 = vmatprep.mubr.msk.f32.mxu1 %vm720_vm0, %v1839_v53  ;;  %5637 = vmatprep.mubr.msk.f32.mxu0 %vm720_vm0, %v1807_v57 }
 0x154   : > { %5690 = vmatmul.mubr.msk.f32.gmra.mrb[60].mxu1 %vm720_vm0, %v1840_v56  ;;  %5638 = vmatmul.mubr.msk.f32.gmra.mrb[60].mxu0 %vm720_vm0, %v1808_v58 }
 0x155   : > { %5692 = vmatprep.mubr.msk.f32.mxu1 %vm720_vm0, %v1841_v61  ;;  %5640 = vmatprep.mubr.msk.f32.mxu0 %vm720_vm0, %v1809_v1 }
 0x158   : > { %5693 = vmatmul.mubr.msk.f32.gmra.mrb[62].mxu1 %vm720_vm0, %v1842_v0  ;;  %5641 = vmatmul.mubr.msk.f32.gmra.mrb[62].mxu0 %vm720_vm0, %v1810_v2 }
 0x1af   : > { %v6936_v3 = vpop.f32.mrb[0].mxu0  ;;  %v6938_v4 = vpop.f32.mrb[0].mxu1 }
 0x1b0   : > { %1557 = vrot.lane.b32.xlu1 %v6938_v4, %s6329_s8  ;;  %v6942_v5 = vpop.f32.mrb[1].mxu1  ;;  %1397 = vrot.lane.b32.xlu0 %v6936_v3, %s6329_s8  ;;  %v6946_v6 = vpop.f32.mrb[1].mxu0 }
 0x1b3   : > { %v6948_v7 = vpop.f32.mrb[2].mxu1  ;;  %v6950_v8 = vpop.f32.mrb[2].mxu0 }
 0x1b4   : > { %v6952_v9 = vpop.f32.mrb[3].mxu1  ;;  %1555 = vrot.lane.b32.xlu0 %v6942_v5, %s6329_s8  ;;  %v6956_v10 = vpop.f32.mrb[3].mxu0 }
 0x1b7   : > { %v6958_v11 = vpop.f32.mrb[4].mxu1  ;;  %v6960_v12 = vpop.f32.mrb[4].mxu0 }
 0x1b8   : > { %v6962_v13 = vpop.f32.mrb[5].mxu1  ;;  %1395 = vrot.lane.b32.xlu0 %v6946_v6, %s6329_s8  ;;  %v6966_v14 = vpop.f32.mrb[5].mxu0 }
 0x1bb   : > { %v6968_v15 = vpop.f32.mrb[6].mxu1  ;;  %v6970_v16 = vpop.f32.mrb[6].mxu0 }
 0x1bc   : > { %v6972_v17 = vpop.f32.mrb[7].mxu1  ;;  %1561 = vrot.lane.b32.xlu0 %v6948_v7, %s6329_s8  ;;  %v6976_v18 = vpop.f32.mrb[7].mxu0 }
 0x1bf   : > { %v6978_v19 = vpop.f32.mrb[8].mxu1  ;;  %v6980_v20 = vpop.f32.mrb[8].mxu0 }
 0x1c0   : > { %8603 = vst [vmem:[#allocation22_spill] sm:$0xff] %v6978_v19  ;;  %8604 = vst [vmem:[#allocation23_spill] sm:$0xff] %v6980_v20  ;;  %v6982_v21 = vpop.f32.mrb[9].mxu1  ;;  %1401 = vrot.lane.b32.xlu0 %v6950_v8, %s6329_s8  ;;  %v6986_v22 = vpop.f32.mrb[9].mxu0 }
 0x1c1   : > { %8605 = vst [vmem:[#allocation24_spill] sm:$0xff] %v6982_v21  ;;  %8606 = vst [vmem:[#allocation25_spill] sm:$0xff] %v6986_v22 }
 0x1c3   : > { %v6988_v23 = vpop.f32.mrb[10].mxu1  ;;  %v6990_v24 = vpop.f32.mrb[10].mxu0 }
 0x1c4   : > { %8607 = vst [vmem:[#allocation26_spill] sm:$0xff] %v6988_v23  ;;  %8608 = vst [vmem:[#allocation27_spill] sm:$0xff] %v6990_v24  ;;  %v6992_v25 = vpop.f32.mrb[11].mxu1  ;;  %1559 = vrot.lane.b32.xlu0 %v6952_v9, %s6329_s8  ;;  %v6996_v26 = vpop.f32.mrb[11].mxu0 }
 0x1c5   : > { %8609 = vst [vmem:[#allocation28_spill] sm:$0xff] %v6992_v25  ;;  %8610 = vst [vmem:[#allocation29_spill] sm:$0xff] %v6996_v26 }
 0x1c7   : > { %v6998_v27 = vpop.f32.mrb[12].mxu1  ;;  %v7000_v28 = vpop.f32.mrb[12].mxu0 }
 0x1c8   : > { %8611 = vst [vmem:[#allocation30_spill] sm:$0xff] %v6998_v27  ;;  %8612 = vst [vmem:[#allocation31_spill] sm:$0xff] %v7000_v28  ;;  %v7002_v29 = vpop.f32.mrb[13].mxu1  ;;  %1399 = vrot.lane.b32.xlu0 %v6956_v10, %s6329_s8  ;;  %v7006_v30 = vpop.f32.mrb[13].mxu0 }
 0x1c9   : > { %8613 = vst [vmem:[#allocation32_spill] sm:$0xff] %v7002_v29  ;;  %8614 = vst [vmem:[#allocation33_spill] sm:$0xff] %v7006_v30 }
 0x1cb   : > { %v7008_v31 = vpop.f32.mrb[14].mxu1  ;;  %v7010_v32 = vpop.f32.mrb[14].mxu0 }
 0x1cc   : > { %8615 = vst [vmem:[#allocation34_spill] sm:$0xff] %v7010_v32  ;;  %v7012_v33 = vpop.f32.mrb[15].mxu1  ;;  %1565 = vrot.lane.b32.xlu0 %v6958_v11, %s6329_s8  ;;  %v7016_v34 = vpop.f32.mrb[15].mxu0 }
 0x1cd   : > { %8616 = vst [vmem:[#allocation35_spill] sm:$0xff] %v7012_v33 }
 0x1cf   : > { %v7018_v35 = vpop.f32.mrb[16].mxu1  ;;  %v7020_v36 = vpop.f32.mrb[16].mxu0 }
 0x1d0   : > { %v7022_v37 = vpop.f32.mrb[17].mxu1  ;;  %1405 = vrot.lane.b32.xlu0 %v6960_v12, %s6329_s8  ;;  %v7026_v38 = vpop.f32.mrb[17].mxu0 }
 0x1d3   : > { %v7028_v39 = vpop.f32.mrb[18].mxu1  ;;  %v7030_v40 = vpop.f32.mrb[18].mxu0 }
 0x1d4   : > { %v7032_v41 = vpop.f32.mrb[19].mxu1  ;;  %1563 = vrot.lane.b32.xlu0 %v6962_v13, %s6329_s8  ;;  %v7036_v42 = vpop.f32.mrb[19].mxu0 }
 0x1d7   : > { %v7038_v43 = vpop.f32.mrb[20].mxu1  ;;  %v7040_v44 = vpop.f32.mrb[20].mxu0 }
 0x1d8   : > { %v7042_v45 = vpop.f32.mrb[21].mxu1  ;;  %1403 = vrot.lane.b32.xlu0 %v6966_v14, %s6329_s8  ;;  %v7046_v46 = vpop.f32.mrb[21].mxu0 }
 0x1d9   : > { %8617 = vst [vmem:[#allocation36_spill] sm:$0xff] %v7046_v46 }
 0x1db   : > { %v7048_v47 = vpop.f32.mrb[22].mxu1  ;;  %v7050_v48 = vpop.f32.mrb[22].mxu0 }
 0x1dc   : > { %8618 = vst [vmem:[#allocation37_spill] sm:$0xff] %v7048_v47  ;;  %8619 = vst [vmem:[#allocation38_spill] sm:$0xff] %v7050_v48  ;;  %v7052_v49 = vpop.f32.mrb[23].mxu1  ;;  %1569 = vrot.lane.b32.xlu0 %v6968_v15, %s6329_s8  ;;  %v7056_v50 = vpop.f32.mrb[23].mxu0 }
 0x1dd   : > { %8620 = vst [vmem:[#allocation39_spill] sm:$0xff] %v7052_v49  ;;  %8621 = vst [vmem:[#allocation40_spill] sm:$0xff] %v7056_v50 }
 0x1df   : > { %v7058_v51 = vpop.f32.mrb[24].mxu1  ;;  %v7060_v52 = vpop.f32.mrb[24].mxu0 }
 0x1e0   : > { %8622 = vst [vmem:[#allocation41_spill] sm:$0xff] %v7058_v51  ;;  %8623 = vst [vmem:[#allocation42_spill] sm:$0xff] %v7060_v52  ;;  %v7062_v53 = vpop.f32.mrb[25].mxu1  ;;  %1409 = vrot.lane.b32.xlu0 %v6970_v16, %s6329_s8  ;;  %v7066_v54 = vpop.f32.mrb[25].mxu0 }
 0x1e1   : > { %8624 = vst [vmem:[#allocation43_spill] sm:$0xff] %v7062_v53  ;;  %8625 = vst [vmem:[#allocation44_spill] sm:$0xff] %v7066_v54 }
 0x1e3   : > { %v7068_v55 = vpop.f32.mrb[26].mxu1  ;;  %v7070_v56 = vpop.f32.mrb[26].mxu0 }
 0x1e4   : > { %8626 = vst [vmem:[#allocation45_spill] sm:$0xff] %v7068_v55  ;;  %8627 = vst [vmem:[#allocation46_spill] sm:$0xff] %v7070_v56  ;;  %v7072_v57 = vpop.f32.mrb[27].mxu1  ;;  %1567 = vrot.lane.b32.xlu0 %v6972_v17, %s6329_s8  ;;  %v7076_v58 = vpop.f32.mrb[27].mxu0 }
 0x1e5   : > { %8628 = vst [vmem:[#allocation47_spill] sm:$0xff] %v7072_v57  ;;  %8629 = vst [vmem:[#allocation48_spill] sm:$0xff] %v7076_v58 }
 0x1e7   : > { %v7078_v59 = vpop.f32.mrb[28].mxu1  ;;  %v7080_v60 = vpop.f32.mrb[28].mxu0 }
 0x1e8   : > { %8630 = vst [vmem:[#allocation49_spill] sm:$0xff] %v7078_v59  ;;  %8631 = vst [vmem:[#allocation50_spill] sm:$0xff] %v7080_v60  ;;  %v7082_v61 = vpop.f32.mrb[29].mxu1  ;;  %1407 = vrot.lane.b32.xlu0 %v6976_v18, %s6329_s8  ;;  %v7086_v62 = vpop.f32.mrb[29].mxu0 }
 0x1e9   : > { %8632 = vst [vmem:[#allocation51_spill] sm:$0xff] %v7082_v61  ;;  %8633 = vst [vmem:[#allocation52_spill] sm:$0xff] %v7086_v62 }
 0x1eb   : > { %v7088_v63 = vpop.f32.mrb[30].mxu1  ;;  %v7090_v0 = vpop.f32.mrb[30].mxu0 }
 0x1ec   : > { %8634 = vst [vmem:[#allocation53_spill] sm:$0xff] %v7088_v63  ;;  %8635 = vst [vmem:[#allocation54_spill] sm:$0xff] %v7090_v0  ;;  %v7092_v1 = vpop.f32.mrb[31].mxu1  ;;  %1573 = vrot.lane.b32.xlu0 %v6978_v19, %s6329_s8  ;;  %v7096_v2 = vpop.f32.mrb[31].mxu0 }
 0x1ed   : > { %8636 = vst [vmem:[#allocation55_spill] sm:$0xff] %v7092_v1  ;;  %8637 = vst [vmem:[#allocation56_spill] sm:$0xff] %v7096_v2 }
 0x1ef   : > { %v7098_v59 = vpop.f32.mrb[32].mxu1  ;;  %v7100_v60 = vpop.f32.mrb[32].mxu0 }
 0x1f0   : > { %8638 = vst [vmem:[#allocation57_spill] sm:$0xff] %v7098_v59  ;;  %8639 = vst [vmem:[#allocation58_spill] sm:$0xff] %v7100_v60  ;;  %2679 = vrot.lane.b32.xlu1 %v7098_v59, %s6329_s8  ;;  %v7104_v61 = vpop.f32.mrb[33].mxu1  ;;  %1413 = vrot.lane.b32.xlu0 %v6980_v20, %s6329_s8  ;;  %v7108_v0 = vpop.f32.mrb[33].mxu0 }
 0x1f1   : > { %8640 = vst [vmem:[#allocation59_spill] sm:$0xff] %v7104_v61  ;;  %8641 = vst [vmem:[#allocation60_spill] sm:$0xff] %v7108_v0 }
 0x1f3   : > { %v7110_v63 = vpop.f32.mrb[34].mxu1  ;;  %v7112_v1 = vpop.f32.mrb[34].mxu0 }
 0x1f4   : > { %8642 = vst [vmem:[#allocation61_spill] sm:$0xff] %v7110_v63  ;;  %8643 = vst [vmem:[#allocation62_spill] sm:$0xff] %v7112_v1  ;;  %1571 = vrot.lane.b32.xlu0 %v6982_v21, %s6329_s8  ;;  %2519 = vrot.lane.b32.xlu1 %v7100_v60, %s6329_s8  ;;  %v7118_v2 = vpop.f32.mrb[35].mxu1  ;;  %v7120_v62 = vpop.f32.mrb[35].mxu0 }
 0x1f5   : > { %8644 = vst [vmem:[#allocation63_spill] sm:$0xff] %v7118_v2  ;;  %8645 = vst [vmem:[#allocation64_spill] sm:$0xff] %v7120_v62 }
 0x1f7   : > { %v7122_v56 = vpop.f32.mrb[36].mxu1  ;;  %v7124_v58 = vpop.f32.mrb[36].mxu0 }
 0x1f8   : > { %8646 = vst [vmem:[#allocation65_spill] sm:$0xff] %v7122_v56  ;;  %8647 = vst [vmem:[#allocation66_spill] sm:$0xff] %v7124_v58  ;;  %1411 = vrot.lane.b32.xlu0 %v6986_v22, %s6329_s8  ;;  %2517 = vrot.lane.b32.xlu1 %v7108_v0, %s6329_s8  ;;  %v7130_v55 = vpop.f32.mrb[37].mxu1  ;;  %v7132_v57 = vpop.f32.mrb[37].mxu0 }
 0x1fb   : > { %v7134_v52 = vpop.f32.mrb[38].mxu1  ;;  %v7136_v54 = vpop.f32.mrb[38].mxu0 }
 0x1fc   : > { %8648 = vst [vmem:[#allocation67_spill] sm:$0xff] %v7134_v52  ;;  %1577 = vrot.lane.b32.xlu0 %v6988_v23, %s6329_s8  ;;  %2683 = vrot.lane.b32.xlu1 %v7110_v63, %s6329_s8  ;;  %v7142_v51 = vpop.f32.mrb[39].mxu1  ;;  %v7144_v53 = vpop.f32.mrb[39].mxu0 }
 0x1fd   : > { %8649 = vst [vmem:[#allocation68_spill] sm:$0xff] %v7142_v51 }
 0x1ff   : > { %v7146_v61 = vpop.f32.mrb[40].mxu1  ;;  %v7148_v0 = vpop.f32.mrb[40].mxu0 }
 0x200   : > { %1417 = vrot.lane.b32.xlu0 %v6990_v24, %s6329_s8  ;;  %2523 = vrot.lane.b32.xlu1 %v7112_v1, %s6329_s8  ;;  %v7154_v22 = vpop.f32.mrb[41].mxu1  ;;  %v7156_v23 = vpop.f32.mrb[41].mxu0 }
 0x203   : > { %v7158_v50 = vpop.f32.mrb[42].mxu1  ;;  %v7160_v63 = vpop.f32.mrb[42].mxu0 }
 0x204   : > { %1575 = vrot.lane.b32.xlu0 %v6992_v25, %s6329_s8  ;;  %2681 = vrot.lane.b32.xlu1 %v7118_v2, %s6329_s8  ;;  %v7166_v60 = vpop.f32.mrb[43].mxu1  ;;  %v7168_v24 = vpop.f32.mrb[43].mxu0 }
 0x207   : > { %v7170_v21 = vpop.f32.mrb[44].mxu1  ;;  %v7172_v1 = vpop.f32.mrb[44].mxu0 }
 0x208   : > { %1415 = vrot.lane.b32.xlu0 %v6996_v26, %s6329_s8  ;;  %2521 = vrot.lane.b32.xlu1 %v7120_v62, %s6329_s8  ;;  %v7178_v49 = vpop.f32.mrb[45].mxu1  ;;  %v7180_v25 = vpop.f32.mrb[45].mxu0 }
 0x209   : > { %8650 = vst [vmem:[#allocation69_spill] sm:$0xff] %v7180_v25 }
 0x20b   : > { %v7182_v20 = vpop.f32.mrb[46].mxu1  ;;  %v7184_v2 = vpop.f32.mrb[46].mxu0 }
 0x20c   : > { %8651 = vst [vmem:[#allocation70_spill] sm:$0xff] %v7182_v20  ;;  %8652 = vst [vmem:[#allocation71_spill] sm:$0xff] %v7184_v2  ;;  %1581 = vrot.lane.b32.xlu0 %v6998_v27, %s6329_s8  ;;  %2687 = vrot.lane.b32.xlu1 %v7122_v56, %s6329_s8  ;;  %v7190_v59 = vpop.f32.mrb[47].mxu1  ;;  %v7192_v26 = vpop.f32.mrb[47].mxu0 }
 0x20d   : > { %8653 = vst [vmem:[#allocation72_spill] sm:$0xff] %v7190_v59  ;;  %8654 = vst [vmem:[#allocation73_spill] sm:$0xff] %v7192_v26 }
 0x20f   : > { %v7194_v48 = vpop.f32.mrb[48].mxu1  ;;  %v7196_v62 = vpop.f32.mrb[48].mxu0 }
 0x210   : > { %8655 = vst [vmem:[#allocation74_spill] sm:$0xff] %v7194_v48  ;;  %8656 = vst [vmem:[#allocation75_spill] sm:$0xff] %v7196_v62  ;;  %1421 = vrot.lane.b32.xlu0 %v7000_v28, %s6329_s8  ;;  %2527 = vrot.lane.b32.xlu1 %v7124_v58, %s6329_s8  ;;  %v7202_v2 = vpop.f32.mrb[49].mxu1  ;;  %v7204_v27 = vpop.f32.mrb[49].mxu0 }
 0x211   : > { %8657 = vst [vmem:[#allocation76_spill] sm:$0xff] %v7202_v2  ;;  %8658 = vst [vmem:[#allocation77_spill] sm:$0xff] %v7204_v27 }
 0x213   : > { %v7206_v19 = vpop.f32.mrb[50].mxu1  ;;  %v7208_v56 = vpop.f32.mrb[50].mxu0 }
 0x214   : > { %8659 = vst [vmem:[#allocation78_spill] sm:$0xff] %v7206_v19  ;;  %8660 = vst [vmem:[#allocation79_spill] sm:$0xff] %v7208_v56  ;;  %1579 = vrot.lane.b32.xlu0 %v7002_v29, %s6329_s8  ;;  %2685 = vrot.lane.b32.xlu1 %v7130_v55, %s6329_s8  ;;  %v7214_v62 = vpop.f32.mrb[51].mxu1  ;;  %v7216_v28 = vpop.f32.mrb[51].mxu0 }
 0x215   : > { %8661 = vst [vmem:[#allocation80_spill] sm:$0xff] %v7214_v62  ;;  %8662 = vst [vmem:[#allocation81_spill] sm:$0xff] %v7216_v28 }
 0x217   : > { %v7218_v48 = vpop.f32.mrb[52].mxu1  ;;  %v7220_v58 = vpop.f32.mrb[52].mxu0 }
 0x218   : > { %8663 = vst [vmem:[#allocation82_spill] sm:$0xff] %v7218_v48  ;;  %8664 = vst [vmem:[#allocation83_spill] sm:$0xff] %v7220_v58  ;;  %1419 = vrot.lane.b32.xlu0 %v7006_v30, %s6329_s8  ;;  %2525 = vrot.lane.b32.xlu1 %v7132_v57, %s6329_s8  ;;  %v7226_v56 = vpop.f32.mrb[53].mxu1  ;;  %v7228_v29 = vpop.f32.mrb[53].mxu0 }
 0x219   : > { %8665 = vst [vmem:[#allocation84_spill] sm:$0xff] %v7226_v56  ;;  %8666 = vst [vmem:[#allocation85_spill] sm:$0xff] %v7228_v29 }
 0x21b   : > { %v7230_v19 = vpop.f32.mrb[54].mxu1  ;;  %v7238_v58 = vpop.f32.mrb[54].mxu0 }
 0x21c   : > { %8667 = vst [vmem:[#allocation86_spill] sm:$0xff] %v7230_v19  ;;  %1585 = vrot.lane.b32.xlu0 %v7008_v31, %s6329_s8  ;;  %2691 = vrot.lane.b32.xlu1 %v7134_v52, %s6329_s8  ;;  %v7236_v48 = vpop.f32.mrb[55].mxu1  ;;  %8669 = vst [vmem:[#allocation88_spill] sm:$0xff] %v7238_v58  ;;  %v7240_v30 = vpop.f32.mrb[55].mxu0 }
 0x21d   : > { %8668 = vst [vmem:[#allocation87_spill] sm:$0xff] %v7236_v48  ;;  %8670 = vst [vmem:[#allocation89_spill] sm:$0xff] %v7240_v30 }
 0x220   : > { %1425 = vrot.lane.b32.xlu0 %v7010_v32, %s6329_s8  ;;  %2531 = vrot.lane.b32.xlu1 %v7136_v54, %s6329_s8 }
 0x222   : > { %v1558_v29 = vpop.permute.xlu1 %1557  ;;  %v1398_v19 = vpop.permute.xlu0 %1397 }
 0x223   : > { %v1652_v56 = vadd.f32 %v6938_v4, %v1558_v29  ;;  %v1492_v58 = vmax.f32 %v6936_v3, %v1398_v19  ;;  %v7259_v29 = vpop.f32.mrb[56].mxu1  ;;  %v7270_v19 = vpop.f32.mrb[56].mxu0 }
 0x224   : > { %1583 = vrot.lane.b32.xlu0 %v7012_v33, %s6329_s8  ;;  %2689 = vrot.lane.b32.xlu1 %v7142_v51, %s6329_s8  ;;  %8671 = vst [vmem:[#allocation90_spill] sm:$0xff] %v7259_v29  ;;  %8674 = vst [vmem:[#allocation93_spill] sm:$0xff] %v7270_v19 }
 0x225   : > { %v1684_v48 = vmul.f32 0.25, %v1652_v56  ;;  %v7262_v56 = vpop.f32.mrb[57].mxu1 }
 0x226   : > { %v1556_v30 = vpop.permute.xlu0 %1555  ;;  %8672 = vst [vmem:[#allocation91_spill] sm:$0xff] %v7262_v56 }
 0x227   : > { %v7252_v52 = vadd.f32 %v1684_v48, %v1492_v58  ;;  %v1651_v32 = vadd.f32 %v1556_v30, %v6942_v5  ;;  %v7273_v48 = vpop.f32.mrb[57].mxu0 }
 0x228   : > { %1423 = vrot.lane.b32.xlu0 %v7016_v34, %s6329_s8  ;;  %2529 = vrot.lane.b32.xlu1 %v7144_v53, %s6329_s8  ;;  %8675 = vst [vmem:[#allocation94_spill] sm:$0xff] %v7273_v48 }
 0x229   : > { %v1683_v33 = vmul.f32 0.25, %v1651_v32 }
 0x22a   : > { %v1396_v4 = vpop.permute.xlu0 %1395 }
 0x22b   : > { %v1491_v51 = vmax.f32 %v6946_v6, %v1396_v4 }
 0x22c   : > { %1589 = vrot.lane.b32.xlu0 %v7018_v35, %s6329_s8  ;;  %2695 = vrot.lane.b32.xlu1 %v7146_v61, %s6329_s8 }
 0x22d   : > { %v7268_v3 = vadd.f32 %v1683_v33, %v1491_v51 }
 0x22e   : > { %v1562_v5 = vpop.permute.xlu0 %1561 }
 0x22f   : > { %8673 = vst [vmem:[#allocation92_spill] sm:$0xff] %v7268_v3  ;;  %v1654_v30 = vadd.f32 %v6948_v7, %v1562_v5  ;;  %v7291_v5 = vpop.f32.mrb[58].mxu1 }
 0x230   : > { %1429 = vrot.lane.b32.xlu0 %v7020_v36, %s6329_s8  ;;  %2535 = vrot.lane.b32.xlu1 %v7148_v0, %s6329_s8  ;;  %8676 = vst [vmem:[#allocation95_spill] sm:$0xff] %v7291_v5 }
 0x231   : > { %v1686_v32 = vmul.f32 0.25, %v1654_v30 }
 0x232   : > { %v1402_v6 = vpop.permute.xlu0 %1401 }
 0x233   : > { %v1494_v58 = vmax.f32 %v6950_v8, %v1402_v6  ;;  %v7294_v6 = vpop.f32.mrb[59].mxu1 }
 0x234   : > { %1587 = vrot.lane.b32.xlu0 %v7022_v37, %s6329_s8  ;;  %2693 = vrot.lane.b32.xlu1 %v7154_v22, %s6329_s8  ;;  %8677 = vst [vmem:[#allocation96_spill] sm:$0xff] %v7294_v6 }
 0x235   : > { %v7284_v33 = vadd.f32 %v1686_v32, %v1494_v58  ;;  %v7302_v58 = vpop.f32.mrb[58].mxu0 }
 0x236   : > { %v1560_v7 = vpop.permute.xlu0 %1559  ;;  %8678 = vst [vmem:[#allocation97_spill] sm:$0xff] %v7302_v58  ;;  %v7305_v3 = vpop.f32.mrb[59].mxu0 }
 0x237   : > { %v1653_v51 = vadd.f32 %v1560_v7, %v6952_v9  ;;  %8679 = vst [vmem:[#allocation98_spill] sm:$0xff] %v7305_v3 }
 0x238   : > { %1427 = vrot.lane.b32.xlu0 %v7026_v38, %s6329_s8  ;;  %2533 = vrot.lane.b32.xlu1 %v7156_v23, %s6329_s8 }
 0x239   : > { %v1685_v8 = vmul.f32 0.25, %v1653_v51 }
 0x23a   : > { %v1400_v4 = vpop.permute.xlu0 %1399 }
 0x23b   : > { %v1493_v30 = vmax.f32 %v6956_v10, %v1400_v4 }
 0x23c   : > { %1593 = vrot.lane.b32.xlu0 %v7028_v39, %s6329_s8  ;;  %2699 = vrot.lane.b32.xlu1 %v7158_v50, %s6329_s8 }
 0x23d   : > { %v7300_v9 = vadd.f32 %v1685_v8, %v1493_v30 }
 0x23e   : > { %v1566_v32 = vpop.permute.xlu0 %1565 }
 0x23f   : > { %v1656_v7 = vadd.f32 %v6958_v11, %v1566_v32 }
 0x240   : > { %1433 = vrot.lane.b32.xlu0 %v7030_v40, %s6329_s8  ;;  %2539 = vrot.lane.b32.xlu1 %v7160_v63, %s6329_s8 }
 0x241   : > { %v1688_v51 = vmul.f32 0.25, %v1656_v7  ;;  %v7323_v7 = vpop.f32.mrb[60].mxu1 }
 0x242   : > { %v1406_v10 = vpop.permute.xlu0 %1405  ;;  %8680 = vst [vmem:[#allocation99_spill] sm:$0xff] %v7323_v7  ;;  %v7326_v3 = vpop.f32.mrb[61].mxu1  ;;  %v8691_v7 = vld [vmem:[#allocation23_spill] sm:$0xff] }
 0x243   : > { %v1496_v4 = vmax.f32 %v6960_v12, %v1406_v10  ;;  %8681 = vst [vmem:[#allocation100_spill] sm:$0xff] %v7326_v3  ;;  %v8687_v3 = vld [vmem:[#allocation38_spill] sm:$0xff] }
 0x244   : > { %1591 = vrot.lane.b32.xlu0 %v7032_v41, %s6329_s8  ;;  %2697 = vrot.lane.b32.xlu1 %v7166_v60, %s6329_s8 }
 0x245   : > { %v7316_v8 = vadd.f32 %v1688_v51, %v1496_v4  ;;  %v7334_v4 = vpop.f32.mrb[60].mxu0 }
 0x246   : > { %v1564_v11 = vpop.permute.xlu0 %1563  ;;  %8682 = vst [vmem:[#allocation101_spill] sm:$0xff] %v7334_v4  ;;  %v7337_v6 = vpop.f32.mrb[61].mxu0  ;;  %v8690_v4 = vld [vmem:[#allocation57_spill] sm:$0xff] }
 0x247   : > { %v1655_v30 = vadd.f32 %v1564_v11, %v6962_v13  ;;  %8683 = vst [vmem:[#allocation102_spill] sm:$0xff] %v7337_v6 }
 0x248   : > { %1431 = vrot.lane.b32.xlu0 %v7036_v42, %s6329_s8  ;;  %2537 = vrot.lane.b32.xlu1 %v7168_v24, %s6329_s8 }
 0x249   : > { %v1687_v12 = vmul.f32 0.25, %v1655_v30 }
 0x24a   : > { %v1404_v32 = vpop.permute.xlu0 %1403 }
 0x24b   : > { %v1495_v10 = vmax.f32 %v6966_v14, %v1404_v32 }
 0x24c   : > { %1597 = vrot.lane.b32.xlu0 %v7038_v43, %s6329_s8  ;;  %2703 = vrot.lane.b32.xlu1 %v7170_v21, %s6329_s8 }
 0x24d   : > { %v7332_v13 = vadd.f32 %v1687_v12, %v1495_v10 }
 0x24e   : > { %v1570_v51 = vpop.permute.xlu0 %1569 }
 0x24f   : > { %v1658_v11 = vadd.f32 %v6968_v15, %v1570_v51 }
 0x250   : > { %1437 = vrot.lane.b32.xlu0 %v7040_v44, %s6329_s8  ;;  %2543 = vrot.lane.b32.xlu1 %v7172_v1, %s6329_s8 }
 0x251   : > { %v1690_v30 = vmul.f32 0.25, %v1658_v11  ;;  %v7355_v11 = vpop.f32.mrb[62].mxu1 }
 0x252   : > { %v1410_v14 = vpop.permute.xlu0 %1409  ;;  %8684 = vst [vmem:[#allocation103_spill] sm:$0xff] %v7355_v11  ;;  %v7358_v6 = vpop.f32.mrb[63].mxu1 }
 0x253   : > { %v1498_v32 = vmax.f32 %v6970_v16, %v1410_v14  ;;  %8685 = vst [vmem:[#allocation104_spill] sm:$0xff] %v7358_v6 }
 0x254   : > { %1595 = vrot.lane.b32.xlu0 %v7042_v45, %s6329_s8  ;;  %2701 = vrot.lane.b32.xlu1 %v7178_v49, %s6329_s8 }
 0x255   : > { %v7348_v12 = vadd.f32 %v1690_v30, %v1498_v32  ;;  %v8686_v32 = vld [vmem:[#allocation22_spill] sm:$0xff] }
 0x256   : > { %v1568_v15 = vpop.permute.xlu0 %1567 }
 0x257   : > { %v1657_v10 = vadd.f32 %v1568_v15, %v6972_v17 }
 0x258   : > { %1435 = vrot.lane.b32.xlu0 %v7046_v46, %s6329_s8  ;;  %2541 = vrot.lane.b32.xlu1 %v7180_v25, %s6329_s8 }
 0x259   : > { %v1689_v16 = vmul.f32 0.25, %v1657_v10  ;;  %v8688_v10 = vld [vmem:[#allocation71_spill] sm:$0xff] }
 0x25a   : > { %v1408_v51 = vpop.permute.xlu0 %1407 }
 0x25b   : > { %v1497_v14 = vmax.f32 %v6976_v18, %v1408_v51  ;;  %v7371_v18 = vpop.f32.mrb[62].mxu0 }
 0x25c   : > { %1601 = vrot.lane.b32.xlu0 %v7048_v47, %s6329_s8  ;;  %2707 = vrot.lane.b32.xlu1 %v7182_v20, %s6329_s8  ;;  %8689 = vst [vmem:[#allocation22_spill] sm:$0xff] %v7371_v18 }
 0x25d   : > { %v7364_v17 = vadd.f32 %v1689_v16, %v1497_v14  ;;  %v7375_v16 = vpop.f32.mrb[63].mxu0  ;;  %v8693_v14 = vld [vmem:[#allocation39_spill] sm:$0xff] }
 0x25e   : > { %v1574_v30 = vpop.permute.xlu0 %1573  ;;  %8692 = vst [vmem:[#allocation57_spill] sm:$0xff] %v7375_v16  ;;  %v8704_v16 = vld [vmem:[#allocation26_spill] sm:$0xff] }
 0x25f   : > { %v1660_v15 = vadd.f32 %v8686_v32, %v1574_v30 }
 0x260   : > { %1441 = vrot.lane.b32.xlu0 %v8687_v3, %s6329_s8  ;;  %2547 = vrot.lane.b32.xlu1 %v8688_v10, %s6329_s8  ;;  %v8694_v3 = vld [vmem:[#allocation24_spill] sm:$0xff] }
 0x261   : > { %v1692_v11 = vmul.f32 0.25, %v1660_v15  ;;  %v8695_v15 = vld [vmem:[#allocation58_spill] sm:$0xff] }
 0x262   : > { %v2680_v51 = vpop.permute.xlu1 %2679  ;;  %v1414_v6 = vpop.permute.xlu0 %1413 }
 0x263   : > { %v2774_v47 = vadd.f32 %v8690_v4, %v2680_v51  ;;  %v1500_v20 = vmax.f32 %v8691_v7, %v1414_v6  ;;  %v2901_v4 = vld [vmem:[#allocation9] sm:$0xff]  ;;  %v8696_v6 = vld [vmem:[#allocation40_spill] sm:$0xff] }
 0x264   : > { %1599 = vrot.lane.b32.xlu0 %v8693_v14, %s6329_s8  ;;  %2705 = vrot.lane.b32.xlu1 %v7190_v59, %s6329_s8 }
 0x265   : > { %v7381_v30 = vadd.f32 %v1692_v11, %v1500_v20  ;;  %v2806_v18 = vmul.f32 0.25, %v2774_v47  ;;  %5745 = vmatprep.subr.mxu1 %v2901_v4  ;;  %5695 = vmatprep.subr.mxu0 %v2901_v4  ;;  %v7392_v47 = vmul.f32 0.5, %v7252_v52 }
 0x266   : > { %v1572_v32 = vpop.permute.xlu0 %1571  ;;  %v2520_v10 = vpop.permute.xlu1 %2519  ;;  %5746 = vmatpush3.msra.mxu1 %v2901_v4  ;;  %5696 = vmatpush3.msra.mxu0 %v2901_v4 }
 0x267   : > { %v1659_v25 = vadd.f32 %v1572_v32, %v8694_v3  ;;  %v2614_v46 = vmax.f32 %v8695_v15, %v2520_v10  ;;  %8698 = vst [vmem:[#allocation39_spill] sm:$0xff] %v7392_v47  ;;  %v8700_v10 = vld [vmem:[#allocation25_spill] sm:$0xff]  ;;  %v8701_v15 = vld [vmem:[#allocation59_spill] sm:$0xff] }
 0x268   : > { %1439 = vrot.lane.b32.xlu0 %v8696_v6, %s6329_s8  ;;  %2545 = vrot.lane.b32.xlu1 %v7192_v26, %s6329_s8 }
 0x269   : > { %v2838_v7 = vadd.f32 %v2806_v18, %v2614_v46  ;;  %v1691_v3 = vmul.f32 0.25, %v1659_v25  ;;  %v8702_v46 = vld [vmem:[#allocation74_spill] sm:$0xff] }
 0x26a   : > { %v1412_v51 = vpop.permute.xlu0 %1411  ;;  %v7389_v20 = vpop.permute.xlu1 %2517 }
 0x26b   : > { %8697 = vst [vmem:[#allocation23_spill] sm:$0xff] %v7389_v20  ;;  %v7394_v11 = vmul.f32 0.5, %v2838_v7  ;;  %v1499_v32 = vmax.f32 %v8700_v10, %v1412_v51  ;;  %v8705_v51 = vld [vmem:[#allocation61_spill] sm:$0xff] }
 0x26c   : > { %2677 = vrot.lane.b32.xlu0 %v8701_v15, %s6329_s8  ;;  %2711 = vrot.lane.b32.xlu1 %v8702_v46, %s6329_s8  ;;  %v8706_v15 = vld [vmem:[#allocation43_spill] sm:$0xff] }
 0x26d   : > { %8699 = vst [vmem:[#allocation24_spill] sm:$0xff] %v7394_v11  ;;  %v7405_v4 = vadd.f32 %v7394_v11, %v7392_v47  ;;  %v7407_v52 = vadd.f32 %v1691_v3, %v1499_v32  ;;  %v8707_v46 = vld [vmem:[#allocation75_spill] sm:$0xff]  ;;  %v8709_v3 = vld [vmem:[#allocation62_spill] sm:$0xff]  ;;  %v8710_v47 = vld [vmem:[#allocation41_spill] sm:$0xff] }
 0x26e   : > { %v1578_v25 = vpop.permute.xlu0 %1577  ;;  %v2684_v7 = vpop.permute.xlu1 %2683  ;;  %v8708_v11 = vld [vmem:[#allocation27_spill] sm:$0xff] }
 0x26f   : > { %8703 = vst [vmem:[#allocation58_spill] sm:$0xff] %v7405_v4  ;;  %v1662_v20 = vadd.f32 %v8704_v16, %v1578_v25  ;;  %v2776_v10 = vadd.f32 %v8705_v51, %v2684_v7 }
 0x270   : > { %1603 = vrot.lane.b32.xlu0 %v8706_v15, %s6329_s8  ;;  %2551 = vrot.lane.b32.xlu1 %v8707_v46, %s6329_s8  ;;  %v7424_v15 = vmul.f32 0.5, %v7284_v33 }
 0x271   : > { %v1694_v6 = vmul.f32 0.25, %v1662_v20  ;;  %v2808_v59 = vmul.f32 0.25, %v2776_v10  ;;  %v8713_v10 = vld [vmem:[#allocation28_spill] sm:$0xff] }
 0x272   : > { %v1418_v26 = vpop.permute.xlu0 %1417  ;;  %v2524_v18 = vpop.permute.xlu1 %2523  ;;  %8711 = vst [vmem:[#allocation25_spill] sm:$0xff] %v7424_v15 }
 0x273   : > { %v1502_v4 = vmax.f32 %v8708_v11, %v1418_v26  ;;  %v2616_v32 = vmax.f32 %v8709_v3, %v2524_v18  ;;  %v8714_v11 = vld [vmem:[#allocation63_spill] sm:$0xff]  ;;  %v8715_v3 = vld [vmem:[#allocation44_spill] sm:$0xff] }
 0x274   : > { %1605 = vrot.lane.b32.xlu0 %v8710_v47, %s6329_s8  ;;  %2709 = vrot.lane.b32.xlu1 %v7202_v2, %s6329_s8 }
 0x275   : > { %v7421_v16 = vadd.f32 %v1694_v6, %v1502_v4  ;;  %v2840_v25 = vadd.f32 %v2808_v59, %v2616_v32 }
 0x276   : > { %v1576_v7 = vpop.permute.xlu0 %1575  ;;  %v2682_v51 = vpop.permute.xlu1 %2681 }
 0x277   : > { %v7426_v20 = vmul.f32 0.5, %v2840_v25  ;;  %v1661_v26 = vadd.f32 %v1576_v7, %v8713_v10  ;;  %v2775_v18 = vadd.f32 %v2682_v51, %v8714_v11  ;;  %v8717_v7 = vld [vmem:[#allocation29_spill] sm:$0xff]  ;;  %v8718_v51 = vld [vmem:[#allocation64_spill] sm:$0xff] }
 0x278   : > { %1443 = vrot.lane.b32.xlu0 %v8715_v3, %s6329_s8  ;;  %2549 = vrot.lane.b32.xlu1 %v7204_v27, %s6329_s8  ;;  %v8719_v3 = vld [vmem:[#allocation42_spill] sm:$0xff] }
 0x279   : > { %8712 = vst [vmem:[#allocation26_spill] sm:$0xff] %v7426_v20  ;;  %v7438_v6 = vadd.f32 %v7426_v20, %v7424_v15  ;;  %v1693_v32 = vmul.f32 0.25, %v1661_v26  ;;  %v2807_v25 = vmul.f32 0.25, %v2775_v18  ;;  %v8720_v27 = vld [vmem:[#allocation78_spill] sm:$0xff] }
 0x27a   : > { %v1416_v33 = vpop.permute.xlu0 %1415  ;;  %v2522_v4 = vpop.permute.xlu1 %2521  ;;  %v8721_v18 = vld [vmem:[#allocation30_spill] sm:$0xff] }
 0x27b   : > { %8716 = vst [vmem:[#allocation61_spill] sm:$0xff] %v7438_v6  ;;  %v1501_v10 = vmax.f32 %v8717_v7, %v1416_v33  ;;  %v2615_v11 = vmax.f32 %v8718_v51, %v2522_v4  ;;  %v7449_v6 = vmul.f32 0.5, %v7300_v9  ;;  %v8722_v7 = vld [vmem:[#allocation65_spill] sm:$0xff]  ;;  %v8723_v51 = vld [vmem:[#allocation47_spill] sm:$0xff] }
 0x27c   : > { %1445 = vrot.lane.b32.xlu0 %v8719_v3, %s6329_s8  ;;  %2715 = vrot.lane.b32.xlu1 %v8720_v27, %s6329_s8  ;;  %v8724_v3 = vld [vmem:[#allocation79_spill] sm:$0xff] }
 0x27d   : > { %v7446_v47 = vadd.f32 %v1693_v32, %v1501_v10  ;;  %v2839_v59 = vadd.f32 %v2807_v25, %v2615_v11 }
 0x27e   : > { %v1582_v2 = vpop.permute.xlu0 %1581  ;;  %v2688_v20 = vpop.permute.xlu1 %2687 }
 0x27f   : > { %v7451_v26 = vmul.f32 0.5, %v2839_v59  ;;  %v1664_v33 = vadd.f32 %v8721_v18, %v1582_v2  ;;  %v2778_v4 = vadd.f32 %v8722_v7, %v2688_v20  ;;  %v8726_v2 = vld [vmem:[#allocation31_spill] sm:$0xff]  ;;  %v8727_v20 = vld [vmem:[#allocation66_spill] sm:$0xff] }
 0x280   : > { %1607 = vrot.lane.b32.xlu0 %v8723_v51, %s6329_s8  ;;  %2555 = vrot.lane.b32.xlu1 %v8724_v3, %s6329_s8  ;;  %v8728_v51 = vld [vmem:[#allocation45_spill] sm:$0xff] }
 0x281   : > { %v7463_v25 = vadd.f32 %v7451_v26, %v7449_v6  ;;  %v1696_v10 = vmul.f32 0.25, %v1664_v33  ;;  %v2810_v11 = vmul.f32 0.25, %v2778_v4  ;;  %v8729_v4 = vld [vmem:[#allocation32_spill] sm:$0xff] }
 0x282   : > { %v1422_v9 = vpop.permute.xlu0 %1421  ;;  %v2528_v59 = vpop.permute.xlu1 %2527 }
 0x283   : > { %8725 = vst [vmem:[#allocation75_spill] sm:$0xff] %v7463_v25  ;;  %v1504_v18 = vmax.f32 %v8726_v2, %v1422_v9  ;;  %v2618_v7 = vmax.f32 %v8727_v20, %v2528_v59  ;;  %v7474_v25 = vmul.f32 0.5, %v7316_v8  ;;  %v8730_v2 = vld [vmem:[#allocation48_spill] sm:$0xff] }
 0x284   : > { %1609 = vrot.lane.b32.xlu0 %v8728_v51, %s6329_s8  ;;  %2713 = vrot.lane.b32.xlu1 %v7214_v62, %s6329_s8  ;;  %v7499_v62 = vmul.f32 0.5, %v7332_v13 }
 0x285   : > { %v7471_v3 = vadd.f32 %v1696_v10, %v1504_v18  ;;  %v2842_v32 = vadd.f32 %v2810_v11, %v2618_v7 }
 0x286   : > { %v1580_v27 = vpop.permute.xlu0 %1579  ;;  %v2686_v15 = vpop.permute.xlu1 %2685 }
 0x287   : > { %v7476_v33 = vmul.f32 0.5, %v2842_v32  ;;  %v1663_v9 = vadd.f32 %v1580_v27, %v8729_v4  ;;  %v2777_v59 = vadd.f32 %v2686_v15, %v7130_v55  ;;  %v8732_v27 = vld [vmem:[#allocation33_spill] sm:$0xff]  ;;  %v8733_v15 = vld [vmem:[#allocation46_spill] sm:$0xff] }
 0x288   : > { %1447 = vrot.lane.b32.xlu0 %v8730_v2, %s6329_s8  ;;  %2553 = vrot.lane.b32.xlu1 %v7216_v28, %s6329_s8  ;;  %v8734_v4 = vld [vmem:[#allocation82_spill] sm:$0xff] }
 0x289   : > { %v7488_v11 = vadd.f32 %v7476_v33, %v7474_v25  ;;  %v1695_v18 = vmul.f32 0.25, %v1663_v9  ;;  %v2809_v20 = vmul.f32 0.25, %v2777_v59 }
 0x28a   : > { %v1420_v8 = vpop.permute.xlu0 %1419  ;;  %v2526_v32 = vpop.permute.xlu1 %2525 }
 0x28b   : > { %8731 = vst [vmem:[#allocation27_spill] sm:$0xff] %v7488_v11  ;;  %v1503_v7 = vmax.f32 %v8732_v27, %v1420_v8  ;;  %v2617_v55 = vmax.f32 %v7132_v57, %v2526_v32  ;;  %v8735_v8 = vld [vmem:[#allocation67_spill] sm:$0xff]  ;;  %v7524_v11 = vmul.f32 0.5, %v7348_v12 }
 0x28c   : > { %1449 = vrot.lane.b32.xlu0 %v8733_v15, %s6329_s8  ;;  %2719 = vrot.lane.b32.xlu1 %v8734_v4, %s6329_s8  ;;  %v8736_v32 = vld [vmem:[#allocation51_spill] sm:$0xff] }
 0x28d   : > { %v7496_v28 = vadd.f32 %v1695_v18, %v1503_v7  ;;  %v2841_v10 = vadd.f32 %v2809_v20, %v2617_v55  ;;  %v8737_v27 = vld [vmem:[#allocation83_spill] sm:$0xff] }
 0x28e   : > { %v1586_v2 = vpop.permute.xlu0 %1585  ;;  %v2692_v51 = vpop.permute.xlu1 %2691 }
 0x28f   : > { %v7501_v9 = vmul.f32 0.5, %v2841_v10  ;;  %v1666_v59 = vadd.f32 %v7008_v31, %v1586_v2  ;;  %v2780_v57 = vadd.f32 %v8735_v8, %v2692_v51  ;;  %v8738_v31 = vld [vmem:[#allocation34_spill] sm:$0xff]  ;;  %v8739_v8 = vld [vmem:[#allocation49_spill] sm:$0xff] }
 0x290   : > { %1611 = vrot.lane.b32.xlu0 %v8736_v32, %s6329_s8  ;;  %2559 = vrot.lane.b32.xlu1 %v8737_v27, %s6329_s8  ;;  %v8740_v32 = vld [vmem:[#allocation84_spill] sm:$0xff] }
 0x291   : > { %v7513_v20 = vadd.f32 %v7501_v9, %v7499_v62  ;;  %v1698_v7 = vmul.f32 0.25, %v1666_v59  ;;  %v2812_v55 = vmul.f32 0.25, %v2780_v57  ;;  %v8741_v57 = vld [vmem:[#allocation35_spill] sm:$0xff] }
 0x292   : > { %v1426_v13 = vpop.permute.xlu0 %1425  ;;  %v2532_v10 = vpop.permute.xlu1 %2531 }
 0x293   : > { %v1506_v2 = vmax.f32 %v8738_v31, %v1426_v13  ;;  %v2620_v51 = vmax.f32 %v7136_v54, %v2532_v10  ;;  %v8742_v31 = vld [vmem:[#allocation68_spill] sm:$0xff] }
 0x294   : > { %1613 = vrot.lane.b32.xlu0 %v8739_v8, %s6329_s8  ;;  %2717 = vrot.lane.b32.xlu1 %v8740_v32, %s6329_s8  ;;  %v8743_v10 = vld [vmem:[#allocation52_spill] sm:$0xff]  ;;  %v8744_v8 = vld [vmem:[#allocation85_spill] sm:$0xff] }
 0x295   : > { %v7521_v27 = vadd.f32 %v1698_v7, %v1506_v2  ;;  %v2844_v18 = vadd.f32 %v2812_v55, %v2620_v51 }
 0x296   : > { %v1584_v4 = vpop.permute.xlu0 %1583  ;;  %v2690_v15 = vpop.permute.xlu1 %2689 }
 0x297   : > { %v7526_v59 = vmul.f32 0.5, %v2844_v18  ;;  %v1665_v13 = vadd.f32 %v1584_v4, %v8741_v57  ;;  %v2779_v54 = vadd.f32 %v2690_v15, %v8742_v31  ;;  %v8746_v57 = vld [vmem:[#allocation50_spill] sm:$0xff] }
 0x298   : > { %1451 = vrot.lane.b32.xlu0 %v8743_v10, %s6329_s8  ;;  %2557 = vrot.lane.b32.xlu1 %v8744_v8, %s6329_s8  ;;  %v8747_v31 = vld [vmem:[#allocation86_spill] sm:$0xff] }
 0x299   : > { %v7538_v55 = vadd.f32 %v7526_v59, %v7524_v11  ;;  %v1697_v2 = vmul.f32 0.25, %v1665_v13  ;;  %v2811_v51 = vmul.f32 0.25, %v2779_v54  ;;  %v8748_v54 = vld [vmem:[#allocation55_spill] sm:$0xff] }
 0x29a   : > { %v1424_v12 = vpop.permute.xlu0 %1423  ;;  %v2530_v18 = vpop.permute.xlu1 %2529 }
 0x29b   : > { %8745 = vst [vmem:[#allocation62_spill] sm:$0xff] %v7538_v55  ;;  %v1505_v4 = vmax.f32 %v7016_v34, %v1424_v12  ;;  %v2619_v15 = vmax.f32 %v7144_v53, %v2530_v18  ;;  %v7549_v55 = vmul.f32 0.5, %v7364_v17  ;;  %v8749_v12 = vld [vmem:[#allocation88_spill] sm:$0xff] }
 0x29c   : > { %1453 = vrot.lane.b32.xlu0 %v8746_v57, %s6329_s8  ;;  %2723 = vrot.lane.b32.xlu1 %v8747_v31, %s6329_s8  ;;  %v7574_v31 = vmul.f32 0.5, %v7381_v30 }
 0x29d   : > { %v7546_v8 = vadd.f32 %v1697_v2, %v1505_v4  ;;  %v2843_v7 = vadd.f32 %v2811_v51, %v2619_v15 }
 0x29e   : > { %v1590_v10 = vpop.permute.xlu0 %1589  ;;  %v2696_v32 = vpop.permute.xlu1 %2695 }
 0x29f   : > { %v7551_v13 = vmul.f32 0.5, %v2843_v7  ;;  %v1668_v34 = vadd.f32 %v7018_v35, %v1590_v10  ;;  %v2782_v53 = vadd.f32 %v7146_v61, %v2696_v32  ;;  %v8750_v32 = vld [vmem:[#allocation53_spill] sm:$0xff]  ;;  %v8751_v10 = vld [vmem:[#allocation87_spill] sm:$0xff] }
 0x2a0   : > { %1615 = vrot.lane.b32.xlu0 %v8748_v54, %s6329_s8  ;;  %2563 = vrot.lane.b32.xlu1 %v8749_v12, %s6329_s8 }
 0x2a1   : > { %v7563_v2 = vadd.f32 %v7551_v13, %v7549_v55  ;;  %v1700_v51 = vmul.f32 0.25, %v1668_v34  ;;  %v2814_v4 = vmul.f32 0.25, %v2782_v53  ;;  %v8752_v53 = vld [vmem:[#allocation56_spill] sm:$0xff] }
 0x2a2   : > { %v1430_v17 = vpop.permute.xlu0 %1429  ;;  %v2536_v7 = vpop.permute.xlu1 %2535 }
 0x2a3   : > { %v1508_v35 = vmax.f32 %v7020_v36, %v1430_v17  ;;  %v2622_v61 = vmax.f32 %v7148_v0, %v2536_v7  ;;  %v8753_v17 = vld [vmem:[#allocation89_spill] sm:$0xff] }
 0x2a4   : > { %1617 = vrot.lane.b32.xlu0 %v8750_v32, %s6329_s8  ;;  %2721 = vrot.lane.b32.xlu1 %v8751_v10, %s6329_s8 }
 0x2a5   : > { %v7571_v15 = vadd.f32 %v1700_v51, %v1508_v35  ;;  %v2846_v18 = vadd.f32 %v2814_v4, %v2622_v61 }
 0x2a6   : > { %v1588_v54 = vpop.permute.xlu0 %1587  ;;  %v2694_v12 = vpop.permute.xlu1 %2693 }
 0x2a7   : > { %v7576_v34 = vmul.f32 0.5, %v2846_v18  ;;  %v1667_v36 = vadd.f32 %v1588_v54, %v7022_v37  ;;  %v2781_v0 = vadd.f32 %v2694_v12, %v7154_v22  ;;  %v8754_v54 = vld [vmem:[#allocation54_spill] sm:$0xff] }
 0x2a8   : > { %1455 = vrot.lane.b32.xlu0 %v8752_v53, %s6329_s8  ;;  %2561 = vrot.lane.b32.xlu1 %v8753_v17, %s6329_s8  ;;  %v7599_v53 = vmul.f32 0.5, %v7407_v52 }
 0x2a9   : > { %v7588_v51 = vadd.f32 %v7576_v34, %v7574_v31  ;;  %v1699_v4 = vmul.f32 0.25, %v1667_v36  ;;  %v2813_v35 = vmul.f32 0.25, %v2781_v0 }
 0x2aa   : > { %v1428_v30 = vpop.permute.xlu0 %1427  ;;  %v2534_v18 = vpop.permute.xlu1 %2533 }
 0x2ab   : > { %v1507_v37 = vmax.f32 %v7026_v38, %v1428_v30  ;;  %v2621_v22 = vmax.f32 %v7156_v23, %v2534_v18 }
 0x2ac   : > { %1457 = vrot.lane.b32.xlu0 %v8754_v54, %s6329_s8  ;;  %2727 = vrot.lane.b32.xlu1 %v7259_v29, %s6329_s8  ;;  %v8772_v29 = vld [vmem:[#allocation59_spill] sm:$0xff] }
 0x2ad   : > { %v7596_v12 = vadd.f32 %v1699_v4, %v1507_v37  ;;  %v2845_v61 = vadd.f32 %v2813_v35, %v2621_v22 }
 0x2ae   : > { %v1594_v7 = vpop.permute.xlu0 %1593  ;;  %v2700_v17 = vpop.permute.xlu1 %2699 }
 0x2af   : > { %v7601_v36 = vmul.f32 0.5, %v2845_v61  ;;  %v1670_v38 = vadd.f32 %v7028_v39, %v1594_v7  ;;  %v2784_v23 = vadd.f32 %v7158_v50, %v2700_v17  ;;  %v7620_v61 = vmul.f32 0.5, %v7421_v16 }
 0x2b0   : > { %2567 = vrot.lane.b32.xlu1 %v7270_v19, %s6329_s8 }
 0x2b1   : > { %v7611_v30 = vadd.f32 %v7601_v36, %v7599_v53  ;;  %v1702_v52 = vmul.f32 0.25, %v1670_v38  ;;  %v2816_v35 = vmul.f32 0.25, %v2784_v23 }
 0x2b2   : > { %v1434_v18 = vpop.permute.xlu0 %1433  ;;  %v2540_v4 = vpop.permute.xlu1 %2539 }
 0x2b3   : > { %v1510_v37 = vmax.f32 %v7030_v40, %v1434_v18  ;;  %v2624_v39 = vmax.f32 %v7160_v63, %v2540_v4 }
 0x2b4   : > { %2725 = vrot.lane.b32.xlu1 %v7262_v56, %s6329_s8 }
 0x2b5   : > { %v7617_v50 = vadd.f32 %v1702_v52, %v1510_v37  ;;  %v2848_v17 = vadd.f32 %v2816_v35, %v2624_v39 }
 0x2b6   : > { %v1592_v7 = vpop.permute.xlu0 %1591  ;;  %v2698_v22 = vpop.permute.xlu1 %2697 }
 0x2b7   : > { %v7622_v0 = vmul.f32 0.5, %v2848_v17  ;;  %v1669_v38 = vadd.f32 %v1592_v7, %v7032_v41  ;;  %v2783_v23 = vadd.f32 %v2698_v22, %v7166_v60  ;;  %v7641_v7 = vmul.f32 0.5, %v7446_v47 }
 0x2b8   : > { %2565 = vrot.lane.b32.xlu1 %v7273_v48, %s6329_s8 }
 0x2b9   : > { %v7632_v63 = vadd.f32 %v7622_v0, %v7620_v61  ;;  %v1701_v16 = vmul.f32 0.25, %v1669_v38  ;;  %v2815_v52 = vmul.f32 0.25, %v2783_v23 }
 0x2ba   : > { %v1432_v18 = vpop.permute.xlu0 %1431  ;;  %v2538_v4 = vpop.permute.xlu1 %2537 }
 0x2bb   : > { %v1509_v35 = vmax.f32 %v7036_v42, %v1432_v18  ;;  %v2623_v41 = vmax.f32 %v7168_v24, %v2538_v4 }
 0x2bc   : > { %2731 = vrot.lane.b32.xlu1 %v7291_v5, %s6329_s8 }
 0x2bd   : > { %v7638_v60 = vadd.f32 %v1701_v16, %v1509_v35  ;;  %v2847_v37 = vadd.f32 %v2815_v52, %v2623_v41 }
 0x2be   : > { %v1598_v39 = vpop.permute.xlu0 %1597  ;;  %v2704_v17 = vpop.permute.xlu1 %2703 }
 0x2bf   : > { %v7643_v22 = vmul.f32 0.5, %v2847_v37  ;;  %v1672_v38 = vadd.f32 %v7038_v43, %v1598_v39  ;;  %v2786_v23 = vadd.f32 %v7170_v21, %v2704_v17  ;;  %v8755_v21 = vld [vmem:[#allocation96_spill] sm:$0xff]  ;;  %v7662_v17 = vmul.f32 0.5, %v7471_v3 }
 0x2c0   : > { %2571 = vrot.lane.b32.xlu1 %v7302_v58, %s6329_s8  ;;  %v8760_v58 = vld [vmem:[#allocation37_spill] sm:$0xff] }
 0x2c1   : > { %v7653_v42 = vadd.f32 %v7643_v22, %v7641_v7  ;;  %v1704_v47 = vmul.f32 0.25, %v1672_v38  ;;  %v2818_v16 = vmul.f32 0.25, %v2786_v23 }
 0x2c2   : > { %v1438_v18 = vpop.permute.xlu0 %1437  ;;  %v2544_v4 = vpop.permute.xlu1 %2543 }
 0x2c3   : > { %v1512_v52 = vmax.f32 %v7040_v44, %v1438_v18  ;;  %v2626_v43 = vmax.f32 %v7172_v1, %v2544_v4  ;;  %v8756_v44 = vld [vmem:[#allocation98_spill] sm:$0xff] }
 0x2c4   : > { %2729 = vrot.lane.b32.xlu1 %v8755_v21, %s6329_s8 }
 0x2c5   : > { %v7659_v35 = vadd.f32 %v1704_v47, %v1512_v52  ;;  %v2850_v41 = vadd.f32 %v2818_v16, %v2626_v43  ;;  %v8757_v52 = vld [vmem:[#allocation36_spill] sm:$0xff] }
 0x2c6   : > { %v1596_v37 = vpop.permute.xlu0 %1595  ;;  %v2702_v39 = vpop.permute.xlu1 %2701 }
 0x2c7   : > { %v7664_v40 = vmul.f32 0.5, %v2850_v41  ;;  %v1671_v38 = vadd.f32 %v1596_v37, %v7042_v45  ;;  %v2785_v23 = vadd.f32 %v2702_v39, %v7178_v49  ;;  %v8758_v41 = vld [vmem:[#allocation69_spill] sm:$0xff]  ;;  %v8759_v49 = vld [vmem:[#allocation99_spill] sm:$0xff] }
 0x2c8   : > { %2569 = vrot.lane.b32.xlu1 %v8756_v44, %s6329_s8  ;;  %v7683_v44 = vmul.f32 0.5, %v7496_v28 }
 0x2c9   : > { %v7674_v18 = vadd.f32 %v7664_v40, %v7662_v17  ;;  %v1703_v3 = vmul.f32 0.25, %v1671_v38  ;;  %v2817_v16 = vmul.f32 0.25, %v2785_v23  ;;  %v8761_v23 = vld [vmem:[#allocation70_spill] sm:$0xff] }
 0x2ca   : > { %v1436_v4 = vpop.permute.xlu0 %1435  ;;  %v2542_v47 = vpop.permute.xlu1 %2541 }
 0x2cb   : > { %v1511_v43 = vmax.f32 %v8757_v52, %v1436_v4  ;;  %v2625_v45 = vmax.f32 %v8758_v41, %v2542_v47  ;;  %v8762_v4 = vld [vmem:[#allocation101_spill] sm:$0xff]  ;;  %v8763_v41 = vld [vmem:[#allocation38_spill] sm:$0xff] }
 0x2cc   : > { %2735 = vrot.lane.b32.xlu1 %v8759_v49, %s6329_s8  ;;  %v7704_v49 = vmul.f32 0.5, %v7521_v27 }
 0x2cd   : > { %v7680_v37 = vadd.f32 %v1703_v3, %v1511_v43  ;;  %v2849_v39 = vadd.f32 %v2817_v16, %v2625_v45 }
 0x2ce   : > { %v1602_v24 = vpop.permute.xlu0 %1601  ;;  %v2708_v1 = vpop.permute.xlu1 %2707 }
 0x2cf   : > { %v7685_v21 = vmul.f32 0.5, %v2849_v39  ;;  %v1674_v38 = vadd.f32 %v8760_v58, %v1602_v24  ;;  %v2788_v5 = vadd.f32 %v8761_v23, %v2708_v1  ;;  %v8764_v39 = vld [vmem:[#allocation71_spill] sm:$0xff]  ;;  %v8765_v24 = vld [vmem:[#allocation100_spill] sm:$0xff] }
 0x2d0   : > { %2575 = vrot.lane.b32.xlu1 %v8762_v4, %s6329_s8 }
 0x2d1   : > { %v7695_v3 = vadd.f32 %v7685_v21, %v7683_v44  ;;  %v1706_v28 = vmul.f32 0.25, %v1674_v38  ;;  %v2820_v43 = vmul.f32 0.25, %v2788_v5  ;;  %v8766_v5 = vld [vmem:[#allocation72_spill] sm:$0xff] }
 0x2d2   : > { %v1442_v16 = vpop.permute.xlu0 %1441  ;;  %v2548_v52 = vpop.permute.xlu1 %2547 }
 0x2d3   : > { %v1514_v45 = vmax.f32 %v8763_v41, %v1442_v16  ;;  %v2628_v58 = vmax.f32 %v8764_v39, %v2548_v52  ;;  %v8767_v16 = vld [vmem:[#allocation102_spill] sm:$0xff]  ;;  %v8768_v39 = vld [vmem:[#allocation40_spill] sm:$0xff] }
 0x2d4   : > { %2733 = vrot.lane.b32.xlu1 %v8765_v24, %s6329_s8  ;;  %v7725_v24 = vmul.f32 0.5, %v7546_v8 }
 0x2d5   : > { %v7701_v1 = vadd.f32 %v1706_v28, %v1514_v45  ;;  %v2852_v23 = vadd.f32 %v2820_v43, %v2628_v58 }
 0x2d6   : > { %v1600_v4 = vpop.permute.xlu0 %1599  ;;  %v2706_v47 = vpop.permute.xlu1 %2705 }
 0x2d7   : > { %v7706_v48 = vmul.f32 0.5, %v2852_v23  ;;  %v1673_v38 = vadd.f32 %v1600_v4, %v8693_v14  ;;  %v2787_v56 = vadd.f32 %v2706_v47, %v8766_v5  ;;  %v8769_v23 = vld [vmem:[#allocation73_spill] sm:$0xff]  ;;  %v8770_v4 = vld [vmem:[#allocation103_spill] sm:$0xff] }
 0x2d8   : > { %2573 = vrot.lane.b32.xlu1 %v8767_v16, %s6329_s8 }
 0x2d9   : > { %v7716_v28 = vadd.f32 %v7706_v48, %v7704_v49  ;;  %v1705_v27 = vmul.f32 0.25, %v1673_v38  ;;  %v2819_v45 = vmul.f32 0.25, %v2787_v56  ;;  %v8773_v56 = vld [vmem:[#allocation74_spill] sm:$0xff] }
 0x2da   : > { %v1440_v43 = vpop.permute.xlu0 %1439  ;;  %v2546_v41 = vpop.permute.xlu1 %2545 }
 0x2db   : > { %v1513_v58 = vmax.f32 %v8768_v39, %v1440_v43  ;;  %v2627_v14 = vmax.f32 %v8769_v23, %v2546_v41  ;;  %v8774_v43 = vld [vmem:[#allocation104_spill] sm:$0xff]  ;;  %v8775_v41 = vld [vmem:[#allocation23_spill] sm:$0xff] }
 0x2dc   : > { %2739 = vrot.lane.b32.xlu1 %v8770_v4, %s6329_s8  ;;  %v8776_v39 = vld [vmem:[#allocation60_spill] sm:$0xff] }
 0x2dd   : > { %v7722_v47 = vadd.f32 %v1705_v27, %v1513_v58  ;;  %v2851_v5 = vadd.f32 %v2819_v45, %v2627_v14  ;;  %v2613_v23 = vmax.f32 %v8776_v39, %v8775_v41 }
 0x2de   : > { %v2678_v16 = vpop.permute.xlu0 %2677  ;;  %v2712_v52 = vpop.permute.xlu1 %2711 }
 0x2df   : > { %8771 = vst [vmem:[#allocation28_spill] sm:$0xff] %v7722_v47  ;;  %v7727_v19 = vmul.f32 0.5, %v2851_v5  ;;  %v2773_v38 = vadd.f32 %v2678_v16, %v8772_v29  ;;  %v2790_v54 = vadd.f32 %v8773_v56, %v2712_v52  ;;  %v8777_v52 = vld [vmem:[#allocation57_spill] sm:$0xff]  ;;  %v8778_v56 = vld [vmem:[#allocation92_spill] sm:$0xff] }
 0x2e0   : > { %2737 = vrot.lane.b32.xlu1 %v8774_v43, %s6329_s8  ;;  %v1747_v4 = vmul.f32 0.5, %v8778_v56  ;;  %v8779_v43 = vld [vmem:[#allocation43_spill] sm:$0xff] }
 0x2e1   : > { %v7739_v45 = vadd.f32 %v7727_v19, %v7725_v24  ;;  %v2805_v8 = vmul.f32 0.25, %v2773_v38  ;;  %v2822_v29 = vmul.f32 0.25, %v2790_v54  ;;  %v7747_v38 = vmul.f32 0.5, %v7571_v15 }
 0x2e2   : > { %v1604_v58 = vpop.permute.xlu0 %1603  ;;  %v2552_v14 = vpop.permute.xlu1 %2551 }
 0x2e3   : > { %v2837_v5 = vadd.f32 %v2805_v8, %v2613_v23  ;;  %v2630_v16 = vmax.f32 %v8707_v46, %v2552_v14  ;;  %v1675_v27 = vadd.f32 %v1604_v58, %v8779_v43  ;;  %v8780_v46 = vld [vmem:[#allocation76_spill] sm:$0xff]  ;;  %v8781_v14 = vld [vmem:[#allocation22_spill] sm:$0xff]  ;;  %v8782_v58 = vld [vmem:[#allocation39_spill] sm:$0xff] }
 0x2e4   : > { %2577 = vrot.lane.b32.xlu1 %v8777_v52, %s6329_s8  ;;  %v8788_v52 = vld [vmem:[#allocation77_spill] sm:$0xff] }
 0x2e5   : > { %v2869_v41 = vmul.f32 0.5, %v2837_v5  ;;  %v2854_v39 = vadd.f32 %v2822_v29, %v2630_v16  ;;  %v1707_v15 = vmul.f32 0.25, %v1675_v27  ;;  %v8783_v29 = vld [vmem:[#allocation24_spill] sm:$0xff]  ;;  %v8789_v27 = vmax.f32 %v7449_v6, %v7451_v26 }
 0x2e6   : > { %v1606_v47 = vpop.permute.xlu0 %1605  ;;  %v2710_v32 = vpop.permute.xlu1 %2709  ;;  %v8784_v16 = vmax.f32 %v8782_v58, %v8783_v29  ;;  %v8787_v5 = vld [vmem:[#allocation44_spill] sm:$0xff] }
 0x2e7   : > { %v2902_v10 = vmax.f32 %v1747_v4, %v2869_v41  ;;  %v2934_v23 = vadd.f32 %v2869_v41, %v1747_v4  ;;  %v7749_v54 = vmul.f32 0.5, %v2854_v39  ;;  %v2789_v8 = vadd.f32 %v2710_v32, %v8780_v46  ;;  %v8785_v32 = vld [vmem:[#allocation58_spill] sm:$0xff]  ;;  %v8786_v41 = vld [vmem:[#allocation41_spill] sm:$0xff] }
 0x2e8   : > { %2579 = vrot.lane.b32.xlu1 %v8781_v14, %s6329_s8  ;;  %v1676_v39 = vadd.f32 %v8786_v41, %v1606_v47  ;;  %s6224_s8 = scalar_lea.vmem %s8417_s1, 256 }
 0x2e9   : > { %v7758_v43 = vadd.f32 %v7749_v54, %v7747_v38  ;;  %5697 = vmatprep.mubr.msk.f32.mxu0 %vm2966_vm1, %v2902_v10  ;;  %5747 = vmatprep.mubr.msk.f32.mxu1 %vm2966_vm1, %v2934_v23  ;;  %v2821_v46 = vmul.f32 0.25, %v2789_v8  ;;  %v8790_v23 = vld [vmem:[#allocation75_spill] sm:$0xff]  ;;  %v8791_v8 = vld [vmem:[#allocation25_spill] sm:$0xff]  ;;  %p6225_p2 = scmp.ne.s32.totalorder %s8417_s1, %s6224_s8 }
 0x2ea   : > { %v1444_v4 = vpop.permute.xlu0 %1443  ;;  %5698 = vmatmul.mubr.msk.f32.vlgmr.msra.gmra.mrb[64].mxu0 %vm2966_vm1, %v8784_v16  ;;  %5748 = vmatmul.mubr.msk.f32.vlgmr.msra.gmra.mrb[64].mxu1 %vm2966_vm1, %v8785_v32  ;;  %v2550_v56 = vpop.permute.xlu1 %2549  ;;  %v7780_v16 = vmul.f32 0.5, %v7596_v12  ;;  %v8792_v32 = vld [vmem:[#allocation26_spill] sm:$0xff]  ;;  %v1708_v26 = vmul.f32 0.25, %v1676_v39  ;;  %v8797_v12 = vmax.f32 %v7499_v62, %v7501_v9  ;;  %v8799_v62 = vld [vmem:[#allocation27_spill] sm:$0xff] }
 0x2eb   : > { %v1515_v14 = vmax.f32 %v8787_v5, %v1444_v4  ;;  %v2629_v10 = vmax.f32 %v8788_v52, %v2550_v56  ;;  %5700 = vmatprep.mubr.msk.f32.mxu0 %vm2966_vm1, %v8789_v27  ;;  %5750 = vmatprep.mubr.msk.f32.mxu1 %vm2966_vm1, %v8790_v23  ;;  %v8793_v5 = vmax.f32 %v8791_v8, %v8792_v32  ;;  %v8794_v52 = vld [vmem:[#allocation61_spill] sm:$0xff]  ;;  %v8795_v56 = vld [vmem:[#allocation42_spill] sm:$0xff]  ;;  %p6226_p10 = pnand %p6225_p2, %p8872_p9 }
 0x2ec   : > { %v8798_v23 = vmax.f32 %v7474_v25, %v7476_v33  ;;  %v8801_v8 = vmax.f32 %v7549_v55, %v7551_v13  ;;  %v7827_v55 = vmul.f32 0.5, %v7617_v50 }
 0x2ed   : > { %v7777_v58 = vadd.f32 %v1707_v15, %v1515_v14  ;;  %v2853_v29 = vadd.f32 %v2821_v46, %v2629_v10  ;;  %v8796_v15 = vld [vmem:[#allocation78_spill] sm:$0xff]  ;;  %p6227_p12 = pneg %p6226_p10 }
 0x2ee   : > { %v1446_v47 = vpop.permute.xlu0 %1445  ;;  %5701 = vmatmul.mubr.msk.f32.gmra.mrb[66].mxu0 %vm2966_vm1, %v8793_v5  ;;  %5751 = vmatmul.mubr.msk.f32.gmra.mrb[66].mxu1 %vm2966_vm1, %v8794_v52  ;;  %v2716_v6 = vpop.permute.xlu1 %2715  ;;  %v8802_v5 = vld [vmem:[#allocation47_spill] sm:$0xff]  ;;  %v8803_v52 = vmax.f32 %v7524_v11, %v7526_v59 }
 0x2ef   : > { %v7788_v4 = vmul.f32 0.5, %v2853_v29  ;;  %v1516_v14 = vmax.f32 %v8795_v56, %v1446_v47  ;;  %v2792_v41 = vadd.f32 %v8796_v15, %v2716_v6  ;;  %5703 = vmatprep.mubr.msk.f32.mxu0 %vm2966_vm1, %v8797_v12  ;;  %5753 = vmatprep.mubr.msk.f32.mxu1 %vm2966_vm1, %v7513_v20  ;;  %v8800_v29 = vld [vmem:[#allocation79_spill] sm:$0xff]  ;;  %v8804_v6 = vld [vmem:[#allocation62_spill] sm:$0xff]  ;;  %v8805_v56 = vld [vmem:[#allocation80_spill] sm:$0xff] }
 0x2f1   : > { %v2918_v46 = vmax.f32 %v7780_v16, %v7788_v4  ;;  %v7802_v39 = vadd.f32 %v7788_v4, %v7780_v16  ;;  %v7804_v10 = vadd.f32 %v1708_v26, %v1516_v14  ;;  %v2824_v20 = vmul.f32 0.25, %v2792_v41 }
 0x2f2   : > { %v1608_v27 = vpop.permute.xlu0 %1607  ;;  %5704 = vmatmul.mubr.msk.f32.gmra.mrb[68].mxu0 %vm2966_vm1, %v8798_v23  ;;  %5754 = vmatmul.mubr.msk.f32.gmra.mrb[68].mxu1 %vm2966_vm1, %v8799_v62  ;;  %v2556_v9 = vpop.permute.xlu1 %2555  ;;  %v8806_v14 = vmax.f32 %v7599_v53, %v7601_v36  ;;  %v8807_v41 = vmax.f32 %v7574_v31, %v7576_v34  ;;  %v8808_v36 = vld [vmem:[#allocation45_spill] sm:$0xff] }
 0x2f3   : > { %v2632_v47 = vmax.f32 %v8800_v29, %v2556_v9  ;;  %5706 = vmatprep.mubr.msk.f32.mxu0 %vm2966_vm1, %v8801_v8  ;;  %5756 = vmatprep.mubr.msk.f32.mxu1 %vm2966_vm1, %v7563_v2  ;;  %v1677_v25 = vadd.f32 %v1608_v27, %v8802_v5  ;;  %v8809_v27 = vld [vmem:[#allocation48_spill] sm:$0xff]  ;;  %v8810_v62 = vld [vmem:[#allocation81_spill] sm:$0xff] }
 0x2f5   : > { %v2856_v32 = vadd.f32 %v2824_v20, %v2632_v47  ;;  %v1709_v50 = vmul.f32 0.25, %v1677_v25  ;;  %v8811_v20 = vmax.f32 %v7641_v7, %v7643_v22  ;;  %v8812_v47 = vmax.f32 %v7620_v61, %v7622_v0 }
 0x2f6   : > { %v1610_v33 = vpop.permute.xlu0 %1609  ;;  %5707 = vmatmul.mubr.msk.f32.gmra.mrb[70].mxu0 %vm2966_vm1, %v8803_v52  ;;  %5757 = vmatmul.mubr.msk.f32.gmra.mrb[70].mxu1 %vm2966_vm1, %v8804_v6  ;;  %v2714_v26 = vpop.permute.xlu1 %2713  ;;  %v8816_v52 = vmax.f32 %v7662_v17, %v7664_v40 }
 0x2f7   : > { %v7829_v13 = vmul.f32 0.5, %v2856_v32  ;;  %v2791_v2 = vadd.f32 %v2714_v26, %v8805_v56  ;;  %5709 = vmatprep.mubr.msk.f32.mxu0 %vm2966_vm1, %v8806_v14  ;;  %5759 = vmatprep.mubr.msk.f32.mxu1 %vm2966_vm1, %v7611_v30  ;;  %v1678_v30 = vadd.f32 %v8808_v36, %v1610_v33  ;;  %v8813_v32 = vld [vmem:[#allocation46_spill] sm:$0xff]  ;;  %v8815_v33 = vmax.f32 %v7683_v44, %v7685_v21  ;;  %v8817_v44 = vld [vmem:[#allocation83_spill] sm:$0xff] }
 0x2f8   : > { %v8820_v14 = vmax.f32 %v7704_v49, %v7706_v48 }
 0x2f9   : > { %v2921_v11 = vmax.f32 %v7827_v55, %v7829_v13  ;;  %v7842_v59 = vadd.f32 %v7829_v13, %v7827_v55  ;;  %v2823_v12 = vmul.f32 0.25, %v2791_v2  ;;  %v1710_v22 = vmul.f32 0.25, %v1678_v30  ;;  %v8819_v2 = vld [vmem:[#allocation51_spill] sm:$0xff]  ;;  %v8825_v30 = vld [vmem:[#allocation85_spill] sm:$0xff]  ;;  %v8827_v55 = vld [vmem:[#allocation88_spill] sm:$0xff] }
 0x2fa   : > { %v1448_v15 = vpop.permute.xlu0 %1447  ;;  %5710 = vmatmul.mubr.msk.f32.gmra.mrb[72].mxu0 %vm2966_vm1, %v8807_v41  ;;  %5760 = vmatmul.mubr.msk.f32.gmra.mrb[72].mxu1 %vm2966_vm1, %v7588_v51  ;;  %v2554_v53 = vpop.permute.xlu1 %2553  ;;  %v1765_v51 = vmul.f32 0.5, %v7638_v60 }
 0x2fb   : > { %v1517_v23 = vmax.f32 %v8809_v27, %v1448_v15  ;;  %v2631_v9 = vmax.f32 %v8810_v62, %v2554_v53  ;;  %5712 = vmatprep.mubr.msk.f32.mxu0 %vm2966_vm1, %v8811_v20  ;;  %5762 = vmatprep.mubr.msk.f32.mxu1 %vm2966_vm1, %v7653_v42  ;;  %v8814_v42 = vld [vmem:[#allocation82_spill] sm:$0xff]  ;;  %v8823_v53 = vld [vmem:[#allocation49_spill] sm:$0xff] }
 0x2fc   : > { %v8826_v20 = vld [vmem:[#allocation86_spill] sm:$0xff] }
 0x2fd   : > { %v7859_v31 = vadd.f32 %v1709_v50, %v1517_v23  ;;  %v2855_v34 = vadd.f32 %v2823_v12, %v2631_v9  ;;  %v8821_v50 = vld [vmem:[#allocation84_spill] sm:$0xff] }
 0x2fe   : > { %v1450_v29 = vpop.permute.xlu0 %1449  ;;  %5713 = vmatmul.mubr.msk.f32.gmra.mrb[74].mxu0 %vm2966_vm1, %v8812_v47  ;;  %5763 = vmatmul.mubr.msk.f32.gmra.mrb[74].mxu1 %vm2966_vm1, %v7632_v63  ;;  %v2720_v7 = vpop.permute.xlu1 %2719 }
 0x2ff   : > { %v2887_v8 = vmul.f32 0.5, %v2855_v34  ;;  %v1518_v5 = vmax.f32 %v8813_v32, %v1450_v29  ;;  %v2794_v25 = vadd.f32 %v8814_v42, %v2720_v7  ;;  %5715 = vmatprep.mubr.msk.f32.mxu0 %vm2966_vm1, %v8815_v33  ;;  %5765 = vmatprep.mubr.msk.f32.mxu1 %vm2966_vm1, %v7695_v3  ;;  %v8818_v3 = vmax.f32 %v7725_v24, %v7727_v19 }
 0x300   : > { %v1768_v19 = vmul.f32 0.5, %v7659_v35 }
 0x301   : > { %v2920_v0 = vmax.f32 %v1765_v51, %v2887_v8  ;;  %v2952_v61 = vadd.f32 %v2887_v8, %v1765_v51  ;;  %v7876_v60 = vadd.f32 %v1710_v22, %v1518_v5  ;;  %v2826_v21 = vmul.f32 0.25, %v2794_v25  ;;  %v8829_v25 = vld [vmem:[#allocation87_spill] sm:$0xff] }
 0x302   : > { %v1612_v63 = vpop.permute.xlu0 %1611  ;;  %5716 = vmatmul.mubr.msk.f32.gmra.mrb[76].mxu0 %vm2966_vm1, %v8816_v52  ;;  %5766 = vmatmul.mubr.msk.f32.gmra.mrb[76].mxu1 %vm2966_vm1, %v7674_v18  ;;  %v2560_v6 = vpop.permute.xlu1 %2559  ;;  %v1770_v5 = vmul.f32 0.5, %v7701_v1 }
 0x303   : > { %v2634_v26 = vmax.f32 %v8817_v44, %v2560_v6  ;;  %5718 = vmatprep.mubr.msk.f32.mxu0 %vm2966_vm1, %v8818_v3  ;;  %5768 = vmatprep.mubr.msk.f32.mxu1 %vm2966_vm1, %v7739_v45  ;;  %v1679_v40 = vadd.f32 %v1612_v63, %v8819_v2  ;;  %v8831_v3 = vld [vmem:[#allocation56_spill] sm:$0xff]  ;;  %v8832_v2 = vld [vmem:[#allocation89_spill] sm:$0xff] }
 0x305   : > { %v2858_v56 = vadd.f32 %v2826_v21, %v2634_v26  ;;  %v1711_v45 = vmul.f32 0.25, %v1679_v40  ;;  %v8830_v21 = vld [vmem:[#allocation53_spill] sm:$0xff] }
 0x306   : > { %v1614_v17 = vpop.permute.xlu0 %1613  ;;  %5719 = vmatmul.mubr.msk.f32.gmra.mrb[78].mxu0 %vm2966_vm1, %v8820_v14  ;;  %5769 = vmatmul.mubr.msk.f32.gmra.mrb[78].mxu1 %vm2966_vm1, %v7716_v28  ;;  %v2718_v18 = vpop.permute.xlu1 %2717  ;;  %v8822_v28 = vmax.f32 %v7747_v38, %v7749_v54  ;;  %v1767_v54 = vmul.f32 0.5, %v7680_v37 }
 0x307   : > { %v2890_v24 = vmul.f32 0.5, %v2858_v56  ;;  %v2793_v15 = vadd.f32 %v2718_v18, %v8821_v50  ;;  %5721 = vmatprep.mubr.msk.f32.mxu0 %vm2966_vm1, %v2918_v46  ;;  %5771 = vmatprep.mubr.msk.f32.mxu1 %vm2966_vm1, %v7802_v39  ;;  %v1680_v16 = vadd.f32 %v8823_v53, %v1614_v17  ;;  %v8824_v46 = vld [vmem:[#allocation52_spill] sm:$0xff] }
 0x308   : > { %v8833_v18 = vld [vmem:[#allocation28_spill] sm:$0xff] }
 0x309   : > { %v2923_v48 = vmax.f32 %v1768_v19, %v2890_v24  ;;  %v2955_v49 = vadd.f32 %v2890_v24, %v1768_v19  ;;  %v2825_v4 = vmul.f32 0.25, %v2793_v15  ;;  %v1712_v23 = vmul.f32 0.25, %v1680_v16 }
 0x30a   : > { %v1452_v41 = vpop.permute.xlu0 %1451  ;;  %5722 = vmatmul.mubr.msk.f32.gmra.mrb[80].mxu0 %vm2966_vm1, %v8822_v28  ;;  %5772 = vmatmul.mubr.msk.f32.gmra.mrb[80].mxu1 %vm2966_vm1, %v7758_v43  ;;  %v2558_v35 = vpop.permute.xlu1 %2557  ;;  %v1769_v1 = vmul.f32 0.5, %v8833_v18 }
 0x30b   : > { %v1519_v36 = vmax.f32 %v8824_v46, %v1452_v41  ;;  %v2633_v39 = vmax.f32 %v8825_v30, %v2558_v35  ;;  %5724 = vmatprep.mubr.msk.f32.mxu0 %vm2966_vm1, %v2920_v0  ;;  %5774 = vmatprep.mubr.msk.f32.mxu1 %vm2966_vm1, %v2952_v61  ;;  %v8836_v46 = vld [vmem:[#allocation93_spill] sm:$0xff] }
 0x30d   : > { %v7917_v12 = vadd.f32 %v1711_v45, %v1519_v36  ;;  %v2857_v38 = vadd.f32 %v2825_v4, %v2633_v39  ;;  %v8835_v45 = vld [vmem:[#allocation90_spill] sm:$0xff] }
 0x30e   : > { %v1454_v27 = vpop.permute.xlu0 %1453  ;;  %5725 = vmatmul.mubr.msk.f32.gmra.mrb[82].mxu0 %vm2966_vm1, %v2921_v11  ;;  %5775 = vmatmul.mubr.msk.f32.gmra.mrb[82].mxu1 %vm2966_vm1, %v7842_v59  ;;  %v2724_v43 = vpop.permute.xlu1 %2723  ;;  %v8828_v11 = vld [vmem:[#allocation55_spill] sm:$0xff] }
 0x30f   : > { %v2889_v62 = vmul.f32 0.5, %v2857_v38  ;;  %v1520_v9 = vmax.f32 %v8746_v57, %v1454_v27  ;;  %v2796_v34 = vadd.f32 %v8826_v20, %v2724_v43  ;;  %v1772_v38 = vmul.f32 0.5, %v7804_v10  ;;  %v8837_v27 = vld [vmem:[#allocation91_spill] sm:$0xff] }
 0x311   : > { %v2922_v51 = vmax.f32 %v1767_v54, %v2889_v62  ;;  %v2954_v29 = vadd.f32 %v2889_v62, %v1767_v54  ;;  %v7928_v47 = vadd.f32 %v1712_v23, %v1520_v9  ;;  %v2828_v22 = vmul.f32 0.25, %v2796_v34  ;;  %v8838_v34 = vld [vmem:[#allocation94_spill] sm:$0xff] }
 0x312   : > { %v1616_v37 = vpop.permute.xlu0 %1615  ;;  %v2564_v7 = vpop.permute.xlu1 %2563 }
 0x313   : > { %v2636_v13 = vmax.f32 %v8827_v55, %v2564_v7  ;;  %5727 = vmatprep.mubr.msk.f32.mxu0 %vm2966_vm1, %v2922_v51  ;;  %5777 = vmatprep.mubr.msk.f32.mxu1 %vm2966_vm1, %v2954_v29  ;;  %v1681_v59 = vadd.f32 %v1616_v37, %v8828_v11  ;;  %v1771_v7 = vmul.f32 0.5, %v7777_v58  ;;  %v8839_v55 = vld [vmem:[#allocation95_spill] sm:$0xff]  ;;  %v1774_v58 = vmul.f32 0.5, %v7876_v60 }
 0x314   : > { %5728 = vmatmul.mubr.msk.f32.gmra.mrb[84].mxu0 %vm2966_vm1, %v2923_v48  ;;  %5778 = vmatmul.mubr.msk.f32.gmra.mrb[84].mxu1 %vm2966_vm1, %v2955_v49  ;;  %v8834_v48 = vld [vmem:[#allocation54_spill] sm:$0xff] }
 0x315   : > { %v2860_v57 = vadd.f32 %v2828_v22, %v2636_v13  ;;  %v1713_v63 = vmul.f32 0.25, %v1681_v59 }
 0x316   : > { %v1618_v8 = vpop.permute.xlu0 %1617  ;;  %v2722_v32 = vpop.permute.xlu1 %2721 }
 0x317   : > { %v2892_v42 = vmul.f32 0.5, %v2860_v57  ;;  %v2795_v33 = vadd.f32 %v2722_v32, %v8829_v25  ;;  %v1682_v44 = vadd.f32 %v8830_v21, %v1618_v8  ;;  %v8840_v8 = vld [vmem:[#allocation97_spill] sm:$0xff]  ;;  %v8842_v21 = vld [vmem:[#allocation98_spill] sm:$0xff] }
 0x319   : > { %v2925_v0 = vmax.f32 %v1770_v5, %v2892_v42  ;;  %v2957_v61 = vadd.f32 %v2892_v42, %v1770_v5  ;;  %v2827_v26 = vmul.f32 0.25, %v2795_v33  ;;  %v1714_v50 = vmul.f32 0.25, %v1682_v44  ;;  %v8841_v33 = vld [vmem:[#allocation96_spill] sm:$0xff] }
 0x31a   : > { %v1456_v52 = vpop.permute.xlu0 %1455  ;;  %v2562_v6 = vpop.permute.xlu1 %2561 }
 0x31b   : > { %v1521_v56 = vmax.f32 %v8831_v3, %v1456_v52  ;;  %v2635_v40 = vmax.f32 %v8832_v2, %v2562_v6 }
 0x31d   : > { %v7941_v17 = vadd.f32 %v1713_v63, %v1521_v56  ;;  %v2859_v14 = vadd.f32 %v2827_v26, %v2635_v40  ;;  %v1773_v56 = vmul.f32 0.5, %v7859_v31  ;;  %v8843_v40 = vld [vmem:[#allocation99_spill] sm:$0xff]  ;;  %v1776_v31 = vmul.f32 0.5, %v7928_v47 }
 0x31e   : > { %v1458_v19 = vpop.permute.xlu0 %1457  ;;  %v2728_v24 = vpop.permute.xlu1 %2727 }
 0x31f   : > { %v2891_v15 = vmul.f32 0.5, %v2859_v14  ;;  %v1522_v49 = vmax.f32 %v8834_v48, %v1458_v19  ;;  %v2798_v41 = vadd.f32 %v8835_v45, %v2728_v24  ;;  %v8844_v24 = vld [vmem:[#allocation101_spill] sm:$0xff]  ;;  %v8845_v45 = vld [vmem:[#allocation100_spill] sm:$0xff] }
 0x321   : > { %v2924_v28 = vmax.f32 %v1769_v1, %v2891_v15  ;;  %v2956_v35 = vadd.f32 %v2891_v15, %v1769_v1  ;;  %v7946_v53 = vadd.f32 %v1714_v50, %v1522_v49  ;;  %v2830_v4 = vmul.f32 0.25, %v2798_v41 }
 0x322   : > { %v2568_v16 = vpop.permute.xlu1 %2567 }
 0x323   : > { %v2638_v36 = vmax.f32 %v8836_v46, %v2568_v16  ;;  %5730 = vmatprep.mubr.msk.f32.mxu0 %vm2966_vm1, %v2924_v28  ;;  %5780 = vmatprep.mubr.msk.f32.mxu1 %vm2966_vm1, %v2956_v35  ;;  %v8846_v46 = vld [vmem:[#allocation102_spill] sm:$0xff] }
 0x324   : > { %5731 = vmatmul.mubr.msk.f32.gmra.mrb[86].mxu0 %vm2966_vm1, %v2925_v0  ;;  %5781 = vmatmul.mubr.msk.f32.gmra.mrb[86].mxu1 %vm2966_vm1, %v2957_v61 }
 0x325   : > { %v2862_v30 = vadd.f32 %v2830_v4, %v2638_v36 }
 0x326   : > { %v2726_v39 = vpop.permute.xlu1 %2725 }
 0x327   : > { %v2894_v54 = vmul.f32 0.5, %v2862_v30  ;;  %v2797_v43 = vadd.f32 %v2726_v39, %v8837_v27 }
 0x329   : > { %v2927_v23 = vmax.f32 %v1772_v38, %v2894_v54  ;;  %v2959_v62 = vadd.f32 %v2894_v54, %v1772_v38  ;;  %v2829_v20 = vmul.f32 0.25, %v2797_v43  ;;  %v1775_v38 = vmul.f32 0.5, %v7917_v12 }
 0x32a   : > { %v2566_v9 = vpop.permute.xlu1 %2565 }
 0x32b   : > { %v2637_v51 = vmax.f32 %v8838_v34, %v2566_v9 }
 0x32d   : > { %v2861_v29 = vadd.f32 %v2829_v20, %v2637_v51  ;;  %v8848_v20 = vld [vmem:[#allocation103_spill] sm:$0xff] }
 0x32e   : > { %v2732_v37 = vpop.permute.xlu1 %2731 }
 0x32f   : > { %v2893_v22 = vmul.f32 0.5, %v2861_v29  ;;  %v2800_v13 = vadd.f32 %v8839_v55, %v2732_v37  ;;  %v8849_v29 = vld [vmem:[#allocation57_spill] sm:$0xff] }
 0x331   : > { %v2926_v57 = vmax.f32 %v1771_v7, %v2893_v22  ;;  %v2958_v11 = vadd.f32 %v2893_v22, %v1771_v7  ;;  %v2832_v10 = vmul.f32 0.25, %v2800_v13  ;;  %v1777_v22 = vmul.f32 0.5, %v7941_v17 }
 0x332   : > { %v2572_v59 = vpop.permute.xlu1 %2571 }
 0x333   : > { %v2640_v32 = vmax.f32 %v8840_v8, %v2572_v59  ;;  %5733 = vmatprep.mubr.msk.f32.mxu0 %vm2966_vm1, %v2926_v57  ;;  %5783 = vmatprep.mubr.msk.f32.mxu1 %vm2966_vm1, %v2958_v11  ;;  %v8850_v57 = vld [vmem:[#allocation22_spill] sm:$0xff] }
 0x334   : > { %5734 = vmatmul.mubr.msk.f32.gmra.mrb[88].mxu0 %vm2966_vm1, %v2927_v23  ;;  %5784 = vmatmul.mubr.msk.f32.gmra.mrb[88].mxu1 %vm2966_vm1, %v2959_v62  ;;  %v8847_v62 = vld [vmem:[#allocation104_spill] sm:$0xff] }
 0x335   : > { %v2864_v5 = vadd.f32 %v2832_v10, %v2640_v32  ;;  %v1778_v32 = vmul.f32 0.5, %v7946_v53 }
 0x336   : > { %v2730_v42 = vpop.permute.xlu1 %2729 }
 0x337   : > { %v2896_v25 = vmul.f32 0.5, %v2864_v5  ;;  %v2799_v0 = vadd.f32 %v2730_v42, %v8841_v33 }
 0x339   : > { %v2929_v61 = vmax.f32 %v1774_v58, %v2896_v25  ;;  %v2961_v63 = vadd.f32 %v2896_v25, %v1774_v58  ;;  %v2831_v6 = vmul.f32 0.25, %v2799_v0 }
 0x33a   : > { %v2570_v52 = vpop.permute.xlu1 %2569 }
 0x33b   : > { %v2639_v44 = vmax.f32 %v8842_v21, %v2570_v52 }
 0x33d   : > { %v2863_v26 = vadd.f32 %v2831_v6, %v2639_v44 }
 0x33e   : > { %v2736_v3 = vpop.permute.xlu1 %2735 }
 0x33f   : > { %v2895_v2 = vmul.f32 0.5, %v2863_v26  ;;  %v2802_v14 = vadd.f32 %v8843_v40, %v2736_v3 }
 0x341   : > { %v2928_v18 = vmax.f32 %v1773_v56, %v2895_v2  ;;  %v2960_v1 = vadd.f32 %v2895_v2, %v1773_v56  ;;  %v2834_v60 = vmul.f32 0.25, %v2802_v14 }
 0x342   : > { %v2576_v19 = vpop.permute.xlu1 %2575 }
 0x343   : > { %v2642_v50 = vmax.f32 %v8844_v24, %v2576_v19  ;;  %5736 = vmatprep.mubr.msk.f32.mxu0 %vm2966_vm1, %v2928_v18  ;;  %5786 = vmatprep.mubr.msk.f32.mxu1 %vm2966_vm1, %v2960_v1 }
 0x344   : > { %5737 = vmatmul.mubr.msk.f32.gmra.mrb[90].mxu0 %vm2966_vm1, %v2929_v61  ;;  %5787 = vmatmul.mubr.msk.f32.gmra.mrb[90].mxu1 %vm2966_vm1, %v2961_v63 }
 0x345   : > { %v2866_v15 = vadd.f32 %v2834_v60, %v2642_v50 }
 0x346   : > { %v2734_v48 = vpop.permute.xlu1 %2733 }
 0x347   : > { %v2898_v49 = vmul.f32 0.5, %v2866_v15  ;;  %v2801_v41 = vadd.f32 %v2734_v48, %v8845_v45 }
 0x349   : > { %v2931_v28 = vmax.f32 %v1776_v31, %v2898_v49  ;;  %v2963_v35 = vadd.f32 %v2898_v49, %v1776_v31  ;;  %v2833_v4 = vmul.f32 0.25, %v2801_v41 }
 0x34a   : > { %v2574_v16 = vpop.permute.xlu1 %2573 }
 0x34b   : > { %v2641_v36 = vmax.f32 %v8846_v46, %v2574_v16 }
 0x34d   : > { %v2865_v30 = vadd.f32 %v2833_v4, %v2641_v36 }
 0x34e   : > { %v2740_v39 = vpop.permute.xlu1 %2739 }
 0x34f   : > { %v2897_v54 = vmul.f32 0.5, %v2865_v30  ;;  %v2804_v34 = vadd.f32 %v8848_v20, %v2740_v39 }
 0x351   : > { %v2930_v27 = vmax.f32 %v1775_v38, %v2897_v54  ;;  %v2962_v43 = vadd.f32 %v2897_v54, %v1775_v38  ;;  %v2836_v55 = vmul.f32 0.25, %v2804_v34 }
 0x352   : > { %v2738_v23 = vpop.permute.xlu1 %2737 }
 0x353   : > { %v2803_v9 = vadd.f32 %v2738_v23, %v8847_v62  ;;  %5739 = vmatprep.mubr.msk.f32.mxu0 %vm2966_vm1, %v2930_v27  ;;  %5789 = vmatprep.mubr.msk.f32.mxu1 %vm2966_vm1, %v2962_v43 }
 0x354   : > { %5740 = vmatmul.mubr.msk.f32.gmra.mrb[92].mxu0 %vm2966_vm1, %v2931_v28  ;;  %5790 = vmatmul.mubr.msk.f32.gmra.mrb[92].mxu1 %vm2966_vm1, %v2963_v35 }
 0x355   : > { %v2835_v51 = vmul.f32 0.25, %v2803_v9 }
 0x356   : > { %v2578_v47 = vpop.permute.xlu1 %2577 }
 0x357   : > { %v2643_v12 = vmax.f32 %v8849_v29, %v2578_v47 }
 0x359   : > { %v2867_v37 = vadd.f32 %v2835_v51, %v2643_v12 }
 0x35a   : > { %v2580_v7 = vpop.permute.xlu1 %2579 }
 0x35b   : > { %v2899_v13 = vmul.f32 0.5, %v2867_v37  ;;  %v2644_v11 = vmax.f32 %v8850_v57, %v2580_v7 }
 0x35d   : > { %v2932_v59 = vmax.f32 %v1777_v22, %v2899_v13  ;;  %v2964_v10 = vadd.f32 %v2899_v13, %v1777_v22  ;;  %v2868_v8 = vadd.f32 %v2836_v55, %v2644_v11 }
 0x35f   : > { %v2900_v5 = vmul.f32 0.5, %v2868_v8  ;;  %5742 = vmatprep.mubr.msk.f32.mxu0 %vm2966_vm1, %v2932_v59  ;;  %5792 = vmatprep.mubr.msk.f32.mxu1 %vm2966_vm1, %v2964_v10 }
 0x361   : > { %v2933_v42 = vmax.f32 %v1778_v32, %v2900_v5  ;;  %v2965_v58 = vadd.f32 %v2900_v5, %v1778_v32 }
 0x363   : > { %5743 = vmatmul.mubr.msk.f32.gmra.mrb[94].mxu0 %vm2966_vm1, %v2933_v42  ;;  %5793 = vmatmul.mubr.msk.f32.gmra.mrb[94].mxu1 %vm2966_vm1, %v2965_v58 }
 0x3bd   : > { %v7991_v17 = vpop.f32.mrb[64].mxu0  ;;  %v7993_v25 = vpop.f32.mrb[64].mxu1 }
 0x3be   : > { %v7995_v33 = vpop.f32.mrb[65].mxu1  ;;  %3803 = vrot.lane.b32.xlu1 %v7993_v25, %s6330_s9  ;;  %v7999_v53 = vpop.f32.mrb[65].mxu0 }
 0x3bf   : > { %3801 = vrot.lane.b32.xlu0 %v7995_v33, %s6330_s9 }
 0x3c1   : > { %v8003_v0 = vpop.f32.mrb[66].mxu0  ;;  %v8005_v61 = vpop.f32.mrb[66].mxu1 }
 0x3c2   : > { %v8007_v63 = vpop.f32.mrb[67].mxu1  ;;  %3643 = vrot.lane.b32.xlu1 %v7991_v17, %s6330_s9  ;;  %v8011_v52 = vpop.f32.mrb[67].mxu0 }
 0x3c3   : > { %3641 = vrot.lane.b32.xlu0 %v7999_v53, %s6330_s9 }
 0x3c5   : > { %v8015_v6 = vpop.f32.mrb[68].mxu0  ;;  %v8017_v21 = vpop.f32.mrb[68].mxu1 }
 0x3c6   : > { %v8019_v44 = vpop.f32.mrb[69].mxu1  ;;  %3807 = vrot.lane.b32.xlu1 %v8005_v61, %s6330_s9  ;;  %v8023_v26 = vpop.f32.mrb[69].mxu0 }
 0x3c7   : > { %3805 = vrot.lane.b32.xlu0 %v8007_v63, %s6330_s9 }
 0x3c9   : > { %v8027_v3 = vpop.f32.mrb[70].mxu0  ;;  %v8029_v56 = vpop.f32.mrb[70].mxu1 }
 0x3ca   : > { %v8031_v2 = vpop.f32.mrb[71].mxu1  ;;  %3647 = vrot.lane.b32.xlu1 %v8003_v0, %s6330_s9  ;;  %v8035_v40 = vpop.f32.mrb[71].mxu0 }
 0x3cb   : > { %3645 = vrot.lane.b32.xlu0 %v8011_v52, %s6330_s9 }
 0x3cd   : > { %v8039_v14 = vpop.f32.mrb[72].mxu0  ;;  %v8041_v18 = vpop.f32.mrb[72].mxu1 }
 0x3ce   : > { %v8043_v1 = vpop.f32.mrb[73].mxu1  ;;  %3811 = vrot.lane.b32.xlu1 %v8017_v21, %s6330_s9  ;;  %v8047_v19 = vpop.f32.mrb[73].mxu0 }
 0x3cf   : > { %3809 = vrot.lane.b32.xlu0 %v8019_v44, %s6330_s9 }
 0x3d1   : > { %v8051_v60 = vpop.f32.mrb[74].mxu0  ;;  %v8053_v24 = vpop.f32.mrb[74].mxu1 }
 0x3d2   : > { %v8055_v50 = vpop.f32.mrb[75].mxu1  ;;  %3651 = vrot.lane.b32.xlu1 %v8015_v6, %s6330_s9  ;;  %v8059_v15 = vpop.f32.mrb[75].mxu0 }
 0x3d3   : > { %3649 = vrot.lane.b32.xlu0 %v8023_v26, %s6330_s9 }
 0x3d5   : > { %v8063_v48 = vpop.f32.mrb[76].mxu0  ;;  %v8065_v31 = vpop.f32.mrb[76].mxu1 }
 0x3d6   : > { %v8067_v49 = vpop.f32.mrb[77].mxu1  ;;  %3815 = vrot.lane.b32.xlu1 %v8029_v56, %s6330_s9  ;;  %v8071_v45 = vpop.f32.mrb[77].mxu0 }
 0x3d7   : > { %3813 = vrot.lane.b32.xlu0 %v8031_v2, %s6330_s9 }
 0x3d9   : > { %v8075_v41 = vpop.f32.mrb[78].mxu0  ;;  %v8077_v28 = vpop.f32.mrb[78].mxu1 }
 0x3da   : > { %v8079_v35 = vpop.f32.mrb[79].mxu1  ;;  %3655 = vrot.lane.b32.xlu1 %v8027_v3, %s6330_s9  ;;  %v8083_v16 = vpop.f32.mrb[79].mxu0 }
 0x3db   : > { %3653 = vrot.lane.b32.xlu0 %v8035_v40, %s6330_s9 }
 0x3dd   : > { %v8087_v4 = vpop.f32.mrb[80].mxu0  ;;  %v8089_v46 = vpop.f32.mrb[80].mxu1 }
 0x3de   : > { %v8091_v36 = vpop.f32.mrb[81].mxu1  ;;  %3819 = vrot.lane.b32.xlu1 %v8041_v18, %s6330_s9  ;;  %v8095_v30 = vpop.f32.mrb[81].mxu0 }
 0x3df   : > { %3817 = vrot.lane.b32.xlu0 %v8043_v1, %s6330_s9 }
 0x3e1   : > { %v8099_v39 = vpop.f32.mrb[82].mxu0  ;;  %v8101_v38 = vpop.f32.mrb[82].mxu1 }
 0x3e2   : > { %v8103_v54 = vpop.f32.mrb[83].mxu1  ;;  %3659 = vrot.lane.b32.xlu1 %v8039_v14, %s6330_s9  ;;  %v8107_v27 = vpop.f32.mrb[83].mxu0 }
 0x3e3   : > { %3657 = vrot.lane.b32.xlu0 %v8047_v19, %s6330_s9 }
 0x3e6   : > { %3823 = vrot.lane.b32.xlu1 %v8053_v24, %s6330_s9 }
 0x3e7   : > { %v8113_v43 = vpop.f32.mrb[84].mxu1  ;;  %3821 = vrot.lane.b32.xlu0 %v8055_v50, %s6330_s9  ;;  %v8117_v23 = vpop.f32.mrb[84].mxu0 }
 0x3e8   : > { %v8119_v62 = vpop.f32.mrb[85].mxu0  ;;  %v8121_v9 = vpop.f32.mrb[85].mxu1 }
 0x3ea   : > { %3663 = vrot.lane.b32.xlu1 %v8051_v60, %s6330_s9 }
 0x3eb   : > { %3661 = vrot.lane.b32.xlu0 %v8059_v15, %s6330_s9 }
 0x3ee   : > { %3827 = vrot.lane.b32.xlu1 %v8065_v31, %s6330_s9 }
 0x3ef   : > { %3825 = vrot.lane.b32.xlu0 %v8067_v49, %s6330_s9 }
 0x3f2   : > { %3667 = vrot.lane.b32.xlu1 %v8063_v48, %s6330_s9 }
 0x3f3   : > { %3665 = vrot.lane.b32.xlu0 %v8071_v45, %s6330_s9 }
 0x3f6   : > { %3831 = vrot.lane.b32.xlu1 %v8077_v28, %s6330_s9 }
 0x3f7   : > { %v8137_v47 = vpop.f32.mrb[86].mxu1  ;;  %3829 = vrot.lane.b32.xlu0 %v8079_v35, %s6330_s9  ;;  %v8141_v20 = vpop.f32.mrb[86].mxu0 }
 0x3f8   : > { %v8143_v34 = vpop.f32.mrb[87].mxu0  ;;  %v8145_v51 = vpop.f32.mrb[87].mxu1 }
 0x3fa   : > { %3671 = vrot.lane.b32.xlu1 %v8075_v41, %s6330_s9 }
 0x3fb   : > { %3669 = vrot.lane.b32.xlu0 %v8083_v16, %s6330_s9 }
 0x3fe   : > { %3835 = vrot.lane.b32.xlu1 %v8089_v46, %s6330_s9 }
 0x3ff   : > { %3833 = vrot.lane.b32.xlu0 %v8091_v36, %s6330_s9 }
 0x402   : > { %3675 = vrot.lane.b32.xlu1 %v8087_v4, %s6330_s9 }
 0x403   : > { %3673 = vrot.lane.b32.xlu0 %v8095_v30, %s6330_s9 }
 0x406   : > { %3839 = vrot.lane.b32.xlu1 %v8101_v38, %s6330_s9 }
 0x407   : > { %v8161_v29 = vpop.f32.mrb[88].mxu1  ;;  %3837 = vrot.lane.b32.xlu0 %v8103_v54, %s6330_s9  ;;  %v8165_v12 = vpop.f32.mrb[88].mxu0 }
 0x408   : > { %v8167_v37 = vpop.f32.mrb[89].mxu0  ;;  %v8169_v7 = vpop.f32.mrb[89].mxu1 }
 0x409   : > { %8851 = vst [vmem:[#allocation63_spill] sm:$0xff] %v8167_v37 }
 0x40a   : > { %3679 = vrot.lane.b32.xlu1 %v8099_v39, %s6330_s9 }
 0x40b   : > { %3677 = vrot.lane.b32.xlu0 %v8107_v27, %s6330_s9 }
 0x40e   : > { %3843 = vrot.lane.b32.xlu1 %v8113_v43, %s6330_s9 }
 0x40f   : > { %3841 = vrot.lane.b32.xlu0 %v8121_v9, %s6330_s9 }
 0x412   : > { %3683 = vrot.lane.b32.xlu1 %v8117_v23, %s6330_s9 }
 0x413   : > { %3681 = vrot.lane.b32.xlu0 %v8119_v62, %s6330_s9 }
 0x416   : > { %3847 = vrot.lane.b32.xlu1 %v8137_v47, %s6330_s9 }
 0x417   : > { %v8185_v22 = vpop.f32.mrb[90].mxu1  ;;  %3845 = vrot.lane.b32.xlu0 %v8145_v51, %s6330_s9  ;;  %v8189_v55 = vpop.f32.mrb[90].mxu0 }
 0x418   : > { %8852 = vst [vmem:[#allocation29_spill] sm:$0xff] %v8185_v22  ;;  %8853 = vst [vmem:[#allocation64_spill] sm:$0xff] %v8189_v55  ;;  %v8191_v13 = vpop.f32.mrb[91].mxu0  ;;  %v8193_v57 = vpop.f32.mrb[91].mxu1 }
 0x419   : > { %8854 = vst [vmem:[#allocation30_spill] sm:$0xff] %v8191_v13  ;;  %8855 = vst [vmem:[#allocation65_spill] sm:$0xff] %v8193_v57 }
 0x41a   : > { %3687 = vrot.lane.b32.xlu1 %v8141_v20, %s6330_s9 }
 0x41b   : > { %3685 = vrot.lane.b32.xlu0 %v8143_v34, %s6330_s9 }
 0x41e   : > { %3851 = vrot.lane.b32.xlu1 %v8161_v29, %s6330_s9 }
 0x41f   : > { %3849 = vrot.lane.b32.xlu0 %v8169_v7, %s6330_s9 }
 0x422   : > { %3691 = vrot.lane.b32.xlu1 %v8165_v12, %s6330_s9 }
 0x423   : > { %3689 = vrot.lane.b32.xlu0 %v8167_v37, %s6330_s9 }
 0x426   : > { %3855 = vrot.lane.b32.xlu1 %v8185_v22, %s6330_s9 }
 0x427   : > { %v8209_v11 = vpop.f32.mrb[92].mxu1  ;;  %3853 = vrot.lane.b32.xlu0 %v8193_v57, %s6330_s9  ;;  %v8213_v59 = vpop.f32.mrb[92].mxu0 }
 0x428   : > { %8856 = vst [vmem:[#allocation31_spill] sm:$0xff] %v8209_v11  ;;  %v8215_v10 = vpop.f32.mrb[93].mxu0  ;;  %v8217_v8 = vpop.f32.mrb[93].mxu1 }
 0x429   : > { %8857 = vst [vmem:[#allocation66_spill] sm:$0xff] %v8215_v10  ;;  %8858 = vst [vmem:[#allocation32_spill] sm:$0xff] %v8217_v8 }
 0x42a   : > { %3695 = vrot.lane.b32.xlu1 %v8189_v55, %s6330_s9 }
 0x42b   : > { %3693 = vrot.lane.b32.xlu0 %v8191_v13, %s6330_s9 }
 0x42e   : > { %3859 = vrot.lane.b32.xlu1 %v8209_v11, %s6330_s9 }
 0x42f   : > { %3857 = vrot.lane.b32.xlu0 %v8217_v8, %s6330_s9 }
 0x430   : > { %v3804_v32 = vpop.permute.xlu1 %3803 }
 0x431   : > { %v3898_v5 = vadd.f32 %v7993_v25, %v3804_v32  ;;  %v3802_v42 = vpop.permute.xlu0 %3801 }
 0x432   : > { %v3897_v58 = vadd.f32 %v3802_v42, %v7995_v33  ;;  %3699 = vrot.lane.b32.xlu1 %v8213_v59, %s6330_s9 }
 0x433   : > { %3697 = vrot.lane.b32.xlu0 %v8215_v10, %s6330_s9  ;;  %v3930_v13 = vmul.f32 0.25, %v3898_v5 }
 0x434   : > { %v3644_v55 = vpop.permute.xlu1 %3643  ;;  %v3929_v22 = vmul.f32 0.25, %v3897_v58 }
 0x435   : > { %v3738_v57 = vmax.f32 %v7991_v17, %v3644_v55  ;;  %v3642_v11 = vpop.permute.xlu0 %3641 }
 0x436   : > { %v3737_v8 = vmax.f32 %v7999_v53, %v3642_v11  ;;  %v8235_v37 = vpop.f32.mrb[94].mxu0  ;;  %v8237_v25 = vpop.f32.mrb[94].mxu1 }
 0x437   : > { %8859 = vst [vmem:[#allocation33_spill] sm:$0xff] %v8235_v37  ;;  %v3962_v32 = vadd.f32 %v3930_v13, %v3738_v57  ;;  %v8239_v33 = vpop.f32.mrb[95].mxu1  ;;  %3863 = vrot.lane.b32.xlu1 %v8237_v25, %s6330_s9  ;;  %v8243_v42 = vpop.f32.mrb[95].mxu0 }
 0x438   : > { %8860 = vst [vmem:[#allocation67_spill] sm:$0xff] %v8239_v33  ;;  %v3961_v5 = vadd.f32 %v3929_v22, %v3737_v8  ;;  %v3808_v10 = vpop.permute.xlu1 %3807  ;;  %3861 = vrot.lane.b32.xlu0 %v8239_v33, %s6330_s9 }
 0x439   : > { %v3994_v17 = vmul.f32 0.5, %v3962_v32  ;;  %v3900_v53 = vadd.f32 %v8005_v61, %v3808_v10  ;;  %v3806_v55 = vpop.permute.xlu0 %3805 }
 0x43a   : > { %v3993_v11 = vmul.f32 0.5, %v3961_v5  ;;  %v3899_v13 = vadd.f32 %v3806_v55, %v8007_v63 }
 0x43b   : > { %4027 = vst.msk [vmem:[#allocation2 + $0x8] sm:$0xff] %vm4025_vm2, %v3994_v17  ;;  %3703 = vrot.lane.b32.xlu1 %v8235_v37, %s6330_s9  ;;  %v3932_v22 = vmul.f32 0.25, %v3900_v53 }
 0x43c   : > { %4026 = vst.msk [vmem:[#allocation2] sm:$0xff] %vm4025_vm2, %v3993_v11  ;;  %v3648_v57 = vpop.permute.xlu1 %3647  ;;  %3701 = vrot.lane.b32.xlu0 %v8243_v42, %s6330_s9  ;;  %v3931_v61 = vmul.f32 0.25, %v3899_v13  ;;  %s6228_s9 = sshll.u32 %s6336_s27, 4  ;;  %s6229_s9 = int_to_ptr.vmem [resolvable:$false] %s6228_s9 }
 0x43d   : > { %v3740_v8 = vmax.f32 %v8003_v0, %v3648_v57  ;;  %v3646_v58 = vpop.permute.xlu0 %3645  ;;  %p6231_p0 = scmp.lt.s32.totalorder %s8417_s1, %s6229_s9 }
 0x43e   : > { %v3739_v10 = vmax.f32 %v8011_v52, %v3646_v58 }
 0x43f   : > { %v3964_v32 = vadd.f32 %v3932_v22, %v3740_v8 }
 0x440   : > { %v3963_v63 = vadd.f32 %v3931_v61, %v3739_v10  ;;  %v3812_v5 = vpop.permute.xlu1 %3811 }
 0x441   : > { %v3996_v17 = vmul.f32 0.5, %v3964_v32  ;;  %v3902_v55 = vadd.f32 %v8017_v21, %v3812_v5  ;;  %v3810_v37 = vpop.permute.xlu0 %3809 }
 0x442   : > { %v3995_v33 = vmul.f32 0.5, %v3963_v63  ;;  %v3901_v11 = vadd.f32 %v3810_v37, %v8019_v44 }
 0x443   : > { %4029 = vst.msk [vmem:[#allocation2 + $0x18] sm:$0xff] %vm4025_vm2, %v3996_v17  ;;  %v3934_v0 = vmul.f32 0.25, %v3902_v55 }
 0x444   : > { %4028 = vst.msk [vmem:[#allocation2 + $0x10] sm:$0xff] %vm4025_vm2, %v3995_v33  ;;  %v3652_v53 = vpop.permute.xlu1 %3651  ;;  %v3933_v52 = vmul.f32 0.25, %v3901_v11 }
 0x445   : > { %v3742_v13 = vmax.f32 %v8015_v6, %v3652_v53  ;;  %v3650_v57 = vpop.permute.xlu0 %3649 }
 0x446   : > { %v3741_v22 = vmax.f32 %v8023_v26, %v3650_v57 }
 0x447   : > { %v3966_v8 = vadd.f32 %v3934_v0, %v3742_v13 }
 0x448   : > { %v3965_v58 = vadd.f32 %v3933_v52, %v3741_v22  ;;  %v3816_v61 = vpop.permute.xlu1 %3815 }
 0x449   : > { %v3998_v21 = vmul.f32 0.5, %v3966_v8  ;;  %v3904_v10 = vadd.f32 %v8029_v56, %v3816_v61  ;;  %v3814_v32 = vpop.permute.xlu0 %3813 }
 0x44a   : > { %v3997_v44 = vmul.f32 0.5, %v3965_v58  ;;  %v3903_v37 = vadd.f32 %v3814_v32, %v8031_v2 }
 0x44b   : > { %4031 = vst.msk [vmem:[#allocation2 + $0x28] sm:$0xff] %vm4025_vm2, %v3998_v21  ;;  %v4082_v33 = vld [vmem:[#allocation2 + $0x1] ss:$4 sm:$0xff]  ;;  %v4058_v26 = vld [vmem:[#allocation2] ss:$4 sm:$0xff]  ;;  %v3936_v63 = vmul.f32 0.25, %v3904_v10 }
 0x44c   : > { %4030 = vst.msk [vmem:[#allocation2 + $0x20] sm:$0xff] %vm4025_vm2, %v3997_v44  ;;  %v3656_v6 = vpop.permute.xlu1 %3655  ;;  %4105 = vrot.lane.b32.xlu0 %v4082_v33, %s6331_s15  ;;  %4073 = vst.msk [vmem:[#allocation3] sm:$0xff] %vm4025_vm2, %v4058_v26  ;;  %v3935_v56 = vmul.f32 0.25, %v3903_v37  ;;  %v4139_v11 = vld [vmem:[#allocation2 + $0x2] ss:$4 sm:$0xff] }
 0x44d   : > { %v3744_v5 = vmax.f32 %v8027_v3, %v3656_v6  ;;  %v3654_v17 = vpop.permute.xlu0 %3653  ;;  %v4196_v8 = vld [vmem:[#allocation2 + $0x3] ss:$4 sm:$0xff] }
 0x44e   : > { %v3743_v55 = vmax.f32 %v8035_v40, %v3654_v17 }
 0x44f   : > { %v3968_v2 = vadd.f32 %v3936_v63, %v3744_v5 }
 0x450   : > { %v3967_v53 = vadd.f32 %v3935_v56, %v3743_v55  ;;  %v3820_v0 = vpop.permute.xlu1 %3819  ;;  %4162 = vrot.lane.b32.xlu0 %v4139_v11, %s6332_s17 }
 0x451   : > { %v4000_v13 = vmul.f32 0.5, %v3968_v2  ;;  %v3906_v57 = vadd.f32 %v8041_v18, %v3820_v0  ;;  %v3818_v52 = vpop.permute.xlu0 %3817 }
 0x452   : > { %v3999_v22 = vmul.f32 0.5, %v3967_v53  ;;  %v3905_v3 = vadd.f32 %v3818_v52, %v8043_v1 }
 0x453   : > { %4033 = vst.msk [vmem:[#allocation2 + $0x38] sm:$0xff] %vm4025_vm2, %v4000_v13  ;;  %v3938_v58 = vmul.f32 0.25, %v3906_v57 }
 0x454   : > { %4032 = vst.msk [vmem:[#allocation2 + $0x30] sm:$0xff] %vm4025_vm2, %v3999_v22  ;;  %v3660_v40 = vpop.permute.xlu1 %3659  ;;  %4219 = vrot.lane.b32.xlu0 %v4196_v8, %s6333_s19  ;;  %v3937_v10 = vmul.f32 0.25, %v3905_v3 }
 0x455   : > { %v3746_v61 = vmax.f32 %v8039_v14, %v3660_v40  ;;  %v3658_v21 = vpop.permute.xlu0 %3657 }
 0x456   : > { %v3745_v18 = vmax.f32 %v8047_v19, %v3658_v21 }
 0x457   : > { %v3970_v32 = vadd.f32 %v3938_v58, %v3746_v61 }
 0x458   : > { %v3969_v44 = vadd.f32 %v3937_v10, %v3745_v18  ;;  %v3824_v37 = vpop.permute.xlu1 %3823 }
 0x459   : > { %v4002_v1 = vmul.f32 0.5, %v3970_v32  ;;  %v3908_v33 = vadd.f32 %v8053_v24, %v3824_v37  ;;  %v3822_v6 = vpop.permute.xlu0 %3821 }
 0x45a   : > { %v4001_v26 = vmul.f32 0.5, %v3969_v44  ;;  %v3907_v63 = vadd.f32 %v3822_v6, %v8055_v50 }
 0x45b   : > { %4035 = vst.msk [vmem:[#allocation2 + $0x48] sm:$0xff] %vm4025_vm2, %v4002_v1  ;;  %v4084_v5 = vld [vmem:[#allocation2 + $0x21] ss:$4 sm:$0xff]  ;;  %v4060_v17 = vld [vmem:[#allocation2 + $0x20] ss:$4 sm:$0xff]  ;;  %v3940_v19 = vmul.f32 0.25, %v3908_v33 }
 0x45c   : > { %4034 = vst.msk [vmem:[#allocation2 + $0x40] sm:$0xff] %vm4025_vm2, %v4001_v26  ;;  %v3664_v14 = vpop.permute.xlu1 %3663  ;;  %4107 = vrot.lane.b32.xlu1 %v4084_v5, %s6331_s15  ;;  %4074 = vst.msk [vmem:[#allocation3 + $0x8] sm:$0xff] %vm4025_vm2, %v4060_v17  ;;  %v3939_v24 = vmul.f32 0.25, %v3907_v63  ;;  %v4141_v50 = vld [vmem:[#allocation2 + $0x22] ss:$4 sm:$0xff] }
 0x45d   : > { %v3748_v56 = vmax.f32 %v8051_v60, %v3664_v14  ;;  %v3662_v55 = vpop.permute.xlu0 %3661  ;;  %v4198_v60 = vld [vmem:[#allocation2 + $0x23] ss:$4 sm:$0xff] }
 0x45e   : > { %v3747_v2 = vmax.f32 %v8059_v15, %v3662_v55 }
 0x45f   : > { %v3972_v11 = vadd.f32 %v3940_v19, %v3748_v56 }
 0x460   : > { %v3971_v53 = vadd.f32 %v3939_v24, %v3747_v2  ;;  %v3828_v0 = vpop.permute.xlu1 %3827  ;;  %4164 = vrot.lane.b32.xlu1 %v4141_v50, %s6332_s17 }
 0x461   : > { %v4004_v13 = vmul.f32 0.5, %v3972_v11  ;;  %v3910_v57 = vadd.f32 %v8065_v31, %v3828_v0  ;;  %v3826_v52 = vpop.permute.xlu0 %3825 }
 0x462   : > { %v4003_v22 = vmul.f32 0.5, %v3971_v53  ;;  %v3909_v3 = vadd.f32 %v3826_v52, %v8067_v49 }
 0x463   : > { %4037 = vst.msk [vmem:[#allocation2 + $0x58] sm:$0xff] %vm4025_vm2, %v4004_v13  ;;  %v3942_v15 = vmul.f32 0.25, %v3910_v57 }
 0x464   : > { %4036 = vst.msk [vmem:[#allocation2 + $0x50] sm:$0xff] %vm4025_vm2, %v4003_v22  ;;  %v3668_v8 = vpop.permute.xlu1 %3667  ;;  %4221 = vrot.lane.b32.xlu1 %v4198_v60, %s6333_s19  ;;  %v3941_v61 = vmul.f32 0.25, %v3909_v3 }
 0x465   : > { %v3750_v40 = vmax.f32 %v8063_v48, %v3668_v8  ;;  %v3666_v58 = vpop.permute.xlu0 %3665 }
 0x466   : > { %v3749_v21 = vmax.f32 %v8071_v45, %v3666_v58 }
 0x467   : > { %v3974_v31 = vadd.f32 %v3942_v15, %v3750_v40 }
 0x468   : > { %v3973_v10 = vadd.f32 %v3941_v61, %v3749_v21  ;;  %v3832_v18 = vpop.permute.xlu1 %3831 }
 0x469   : > { %v4006_v32 = vmul.f32 0.5, %v3974_v31  ;;  %v3912_v49 = vadd.f32 %v8077_v28, %v3832_v18  ;;  %v3830_v44 = vpop.permute.xlu0 %3829 }
 0x46a   : > { %v4005_v37 = vmul.f32 0.5, %v3973_v10  ;;  %v3911_v1 = vadd.f32 %v3830_v44, %v8079_v35 }
 0x46b   : > { %4039 = vst.msk [vmem:[#allocation2 + $0x68] sm:$0xff] %vm4025_vm2, %v4006_v32  ;;  %v4086_v33 = vld [vmem:[#allocation2 + $0x41] ss:$4 sm:$0xff]  ;;  %v4062_v6 = vld [vmem:[#allocation2 + $0x40] ss:$4 sm:$0xff]  ;;  %v3944_v45 = vmul.f32 0.25, %v3912_v49 }
 0x46c   : > { %4038 = vst.msk [vmem:[#allocation2 + $0x60] sm:$0xff] %vm4025_vm2, %v4005_v37  ;;  %v3672_v48 = vpop.permute.xlu1 %3671  ;;  %4109 = vrot.lane.b32.xlu0 %v4086_v33, %s6331_s15  ;;  %4075 = vst.msk [vmem:[#allocation3 + $0x10] sm:$0xff] %vm4025_vm2, %v4062_v6  ;;  %v3943_v28 = vmul.f32 0.25, %v3911_v1  ;;  %v4143_v35 = vld [vmem:[#allocation2 + $0x42] ss:$4 sm:$0xff] }
 0x46d   : > { %v3752_v26 = vmax.f32 %v8075_v41, %v3672_v48  ;;  %v3670_v63 = vpop.permute.xlu0 %3669  ;;  %v4200_v41 = vld [vmem:[#allocation2 + $0x43] ss:$4 sm:$0xff] }
 0x46e   : > { %v3751_v5 = vmax.f32 %v8083_v16, %v3670_v63 }
 0x46f   : > { %v3976_v14 = vadd.f32 %v3944_v45, %v3752_v26 }
 0x470   : > { %v3975_v17 = vadd.f32 %v3943_v28, %v3751_v5  ;;  %v3836_v19 = vpop.permute.xlu1 %3835  ;;  %4166 = vrot.lane.b32.xlu0 %v4143_v35, %s6332_s17 }
 0x471   : > { %v4008_v56 = vmul.f32 0.5, %v3976_v14  ;;  %v3914_v55 = vadd.f32 %v8089_v46, %v3836_v19  ;;  %v3834_v24 = vpop.permute.xlu0 %3833 }
 0x472   : > { %v4007_v2 = vmul.f32 0.5, %v3975_v17  ;;  %v3913_v11 = vadd.f32 %v3834_v24, %v8091_v36 }
 0x473   : > { %4041 = vst.msk [vmem:[#allocation2 + $0x78] sm:$0xff] %vm4025_vm2, %v4008_v56  ;;  %v3946_v16 = vmul.f32 0.25, %v3914_v55 }
 0x474   : > { %4040 = vst.msk [vmem:[#allocation2 + $0x70] sm:$0xff] %vm4025_vm2, %v4007_v2  ;;  %v3676_v50 = vpop.permute.xlu1 %3675  ;;  %4223 = vrot.lane.b32.xlu0 %v4200_v41, %s6333_s19  ;;  %v3945_v13 = vmul.f32 0.25, %v3913_v11 }
 0x475   : > { %v3754_v53 = vmax.f32 %v8087_v4, %v3676_v50  ;;  %v3674_v0 = vpop.permute.xlu0 %3673 }
 0x476   : > { %v3753_v57 = vmax.f32 %v8095_v30, %v3674_v0 }
 0x477   : > { %v3978_v46 = vadd.f32 %v3946_v16, %v3754_v53 }
 0x478   : > { %v3977_v52 = vadd.f32 %v3945_v13, %v3753_v57  ;;  %v3840_v22 = vpop.permute.xlu1 %3839 }
 0x479   : > { %v4010_v3 = vmul.f32 0.5, %v3978_v46  ;;  %v3916_v36 = vadd.f32 %v8101_v38, %v3840_v22  ;;  %v3838_v60 = vpop.permute.xlu0 %3837 }
 0x47a   : > { %v4009_v8 = vmul.f32 0.5, %v3977_v52  ;;  %v3915_v15 = vadd.f32 %v3838_v60, %v8103_v54  ;;  %v8861_v60 = vld [vmem:[#allocation63_spill] sm:$0xff] }
 0x47b   : > { %4043 = vst.msk [vmem:[#allocation2 + $0x88] sm:$0xff] %vm4025_vm2, %v4010_v3  ;;  %v4088_v40 = vld [vmem:[#allocation2 + $0x61] ss:$4 sm:$0xff]  ;;  %v4064_v58 = vld [vmem:[#allocation2 + $0x60] ss:$4 sm:$0xff]  ;;  %v3948_v30 = vmul.f32 0.25, %v3916_v36 }
 0x47c   : > { %4042 = vst.msk [vmem:[#allocation2 + $0x80] sm:$0xff] %vm4025_vm2, %v4009_v8  ;;  %v3680_v4 = vpop.permute.xlu1 %3679  ;;  %4111 = vrot.lane.b32.xlu1 %v4088_v40, %s6331_s15  ;;  %4076 = vst.msk [vmem:[#allocation3 + $0x18] sm:$0xff] %vm4025_vm2, %v4064_v58  ;;  %v3947_v38 = vmul.f32 0.25, %v3915_v15  ;;  %v4145_v54 = vld [vmem:[#allocation2 + $0x62] ss:$4 sm:$0xff] }
 0x47d   : > { %v3756_v61 = vmax.f32 %v8099_v39, %v3680_v4  ;;  %v3678_v21 = vpop.permute.xlu0 %3677  ;;  %v4202_v39 = vld [vmem:[#allocation2 + $0x63] ss:$4 sm:$0xff] }
 0x47e   : > { %v3755_v31 = vmax.f32 %v8107_v27, %v3678_v21  ;;  %v8863_v21 = vld [vmem:[#allocation65_spill] sm:$0xff] }
 0x47f   : > { %v3980_v10 = vadd.f32 %v3948_v30, %v3756_v61 }
 0x480   : > { %v3979_v18 = vadd.f32 %v3947_v38, %v3755_v31  ;;  %v3844_v32 = vpop.permute.xlu1 %3843  ;;  %4168 = vrot.lane.b32.xlu1 %v4145_v54, %s6332_s17 }
 0x481   : > { %v4012_v49 = vmul.f32 0.5, %v3980_v10  ;;  %v3918_v44 = vadd.f32 %v8113_v43, %v3844_v32  ;;  %v3842_v37 = vpop.permute.xlu0 %3841 }
 0x482   : > { %v4011_v1 = vmul.f32 0.5, %v3979_v18  ;;  %v3917_v33 = vadd.f32 %v3842_v37, %v8121_v9  ;;  %v8864_v18 = vld [vmem:[#allocation64_spill] sm:$0xff]  ;;  %v8865_v37 = vld [vmem:[#allocation30_spill] sm:$0xff] }
 0x483   : > { %4045 = vst.msk [vmem:[#allocation2 + $0x98] sm:$0xff] %vm4025_vm2, %v4012_v49  ;;  %v3950_v27 = vmul.f32 0.25, %v3918_v44 }
 0x484   : > { %4044 = vst.msk [vmem:[#allocation2 + $0x90] sm:$0xff] %vm4025_vm2, %v4011_v1  ;;  %v3684_v48 = vpop.permute.xlu1 %3683  ;;  %4225 = vrot.lane.b32.xlu1 %v4202_v39, %s6333_s19  ;;  %v3949_v26 = vmul.f32 0.25, %v3917_v33 }
 0x485   : > { %v3758_v6 = vmax.f32 %v8117_v23, %v3684_v48  ;;  %v3682_v45 = vpop.permute.xlu0 %3681 }
 0x486   : > { %v3757_v63 = vmax.f32 %v8119_v62, %v3682_v45  ;;  %v8866_v45 = vld [vmem:[#allocation31_spill] sm:$0xff] }
 0x487   : > { %v3982_v43 = vadd.f32 %v3950_v27, %v3758_v6 }
 0x488   : > { %v3981_v28 = vadd.f32 %v3949_v26, %v3757_v63  ;;  %v3848_v5 = vpop.permute.xlu1 %3847 }
 0x489   : > { %v4014_v14 = vmul.f32 0.5, %v3982_v43  ;;  %v3920_v9 = vadd.f32 %v8137_v47, %v3848_v5  ;;  %v3846_v35 = vpop.permute.xlu0 %3845 }
 0x48a   : > { %v4013_v17 = vmul.f32 0.5, %v3981_v28  ;;  %v3919_v19 = vadd.f32 %v3846_v35, %v8145_v51  ;;  %v8867_v28 = vld [vmem:[#allocation32_spill] sm:$0xff] }
 0x48b   : > { %4047 = vst.msk [vmem:[#allocation2 + $0xa8] sm:$0xff] %vm4025_vm2, %v4014_v14  ;;  %v4090_v56 = vld [vmem:[#allocation2 + $0x81] ss:$4 sm:$0xff]  ;;  %v4066_v55 = vld [vmem:[#allocation2 + $0x80] ss:$4 sm:$0xff]  ;;  %v3952_v62 = vmul.f32 0.25, %v3920_v9 }
 0x48c   : > { %4046 = vst.msk [vmem:[#allocation2 + $0xa0] sm:$0xff] %vm4025_vm2, %v4013_v17  ;;  %v3688_v23 = vpop.permute.xlu1 %3687  ;;  %4113 = vrot.lane.b32.xlu0 %v4090_v56, %s6331_s15  ;;  %4077 = vst.msk [vmem:[#allocation3 + $0x20] sm:$0xff] %vm4025_vm2, %v4066_v55  ;;  %v3951_v47 = vmul.f32 0.25, %v3919_v19  ;;  %v4147_v51 = vld [vmem:[#allocation2 + $0x82] ss:$4 sm:$0xff] }
 0x48d   : > { %v3760_v24 = vmax.f32 %v8141_v20, %v3688_v23  ;;  %v3686_v2 = vpop.permute.xlu0 %3685  ;;  %v4204_v20 = vld [vmem:[#allocation2 + $0x83] ss:$4 sm:$0xff] }
 0x48e   : > { %v3759_v11 = vmax.f32 %v8143_v34, %v3686_v2  ;;  %v8868_v23 = vld [vmem:[#allocation66_spill] sm:$0xff] }
 0x48f   : > { %v3984_v41 = vadd.f32 %v3952_v62, %v3760_v24 }
 0x490   : > { %v3983_v50 = vadd.f32 %v3951_v47, %v3759_v11  ;;  %v3852_v16 = vpop.permute.xlu1 %3851  ;;  %4170 = vrot.lane.b32.xlu0 %v4147_v51, %s6332_s17 }
 0x491   : > { %v4016_v53 = vmul.f32 0.5, %v3984_v41  ;;  %v3922_v0 = vadd.f32 %v8161_v29, %v3852_v16  ;;  %v3850_v13 = vpop.permute.xlu0 %3849 }
 0x492   : > { %v4015_v57 = vmul.f32 0.5, %v3983_v50  ;;  %v3921_v46 = vadd.f32 %v3850_v13, %v8169_v7  ;;  %v8862_v7 = vld [vmem:[#allocation29_spill] sm:$0xff]  ;;  %v8869_v50 = vld [vmem:[#allocation67_spill] sm:$0xff] }
 0x493   : > { %4049 = vst.msk [vmem:[#allocation2 + $0xb8] sm:$0xff] %vm4025_vm2, %v4016_v53  ;;  %v3954_v34 = vmul.f32 0.25, %v3922_v0 }
 0x494   : > { %4048 = vst.msk [vmem:[#allocation2 + $0xb0] sm:$0xff] %vm4025_vm2, %v4015_v57  ;;  %v3692_v52 = vpop.permute.xlu1 %3691  ;;  %4227 = vrot.lane.b32.xlu0 %v4204_v20, %s6333_s19  ;;  %v3953_v36 = vmul.f32 0.25, %v3921_v46  ;;  %v8870_v57 = vld [vmem:[#allocation33_spill] sm:$0xff] }
 0x495   : > { %v3762_v22 = vmax.f32 %v8165_v12, %v3692_v52  ;;  %v3690_v3 = vpop.permute.xlu0 %3689 }
 0x496   : > { %v3761_v8 = vmax.f32 %v8861_v60, %v3690_v3 }
 0x497   : > { %v3986_v29 = vadd.f32 %v3954_v34, %v3762_v22 }
 0x498   : > { %v3985_v15 = vadd.f32 %v3953_v36, %v3761_v8  ;;  %v3856_v40 = vpop.permute.xlu1 %3855 }
 0x499   : > { %v4018_v4 = vmul.f32 0.5, %v3986_v29  ;;  %v3924_v58 = vadd.f32 %v8862_v7, %v3856_v40  ;;  %v3854_v30 = vpop.permute.xlu0 %3853  ;;  %v4260_v7 = vld [vmem:[#allocation10] sm:$0xff] }
 0x49a   : > { %v4017_v61 = vmul.f32 0.5, %v3985_v15  ;;  %v3923_v38 = vadd.f32 %v3854_v30, %v8863_v21  ;;  %5811 = vmatprep.mubr.msk.f32.mxu0 %vm4268_vm5, %v4260_v7 }
 0x49b   : > { %4051 = vst.msk [vmem:[#allocation2 + $0xc8] sm:$0xff] %vm4025_vm2, %v4018_v4  ;;  %v4092_v31 = vld [vmem:[#allocation2 + $0xa1] ss:$4 sm:$0xff]  ;;  %v4068_v10 = vld [vmem:[#allocation2 + $0xa0] ss:$4 sm:$0xff]  ;;  %v3956_v54 = vmul.f32 0.25, %v3924_v58 }
 0x49c   : > { %4050 = vst.msk [vmem:[#allocation2 + $0xc0] sm:$0xff] %vm4025_vm2, %v4017_v61  ;;  %v3696_v12 = vpop.permute.xlu1 %3695  ;;  %4115 = vrot.lane.b32.xlu1 %v4092_v31, %s6331_s15  ;;  %4078 = vst.msk [vmem:[#allocation3 + $0x28] sm:$0xff] %vm4025_vm2, %v4068_v10  ;;  %v3955_v44 = vmul.f32 0.25, %v3923_v38  ;;  %v4149_v39 = vld [vmem:[#allocation2 + $0xa2] ss:$4 sm:$0xff] }
 0x49d   : > { %v3764_v32 = vmax.f32 %v8864_v18, %v3696_v12  ;;  %v3694_v49 = vpop.permute.xlu0 %3693  ;;  %v4206_v14 = vld [vmem:[#allocation2 + $0xa3] ss:$4 sm:$0xff] }
 0x49e   : > { %v3763_v1 = vmax.f32 %v8865_v37, %v3694_v49 }
 0x49f   : > { %v3988_v33 = vadd.f32 %v3956_v54, %v3764_v32 }
 0x4a0   : > { %v3987_v48 = vadd.f32 %v3955_v44, %v3763_v1  ;;  %v3860_v27 = vpop.permute.xlu1 %3859  ;;  %4172 = vrot.lane.b32.xlu1 %v4149_v39, %s6332_s17 }
 0x4a1   : > { %v4020_v6 = vmul.f32 0.5, %v3988_v33  ;;  %v3926_v26 = vadd.f32 %v8866_v45, %v3860_v27  ;;  %v3858_v63 = vpop.permute.xlu0 %3857 }
 0x4a2   : > { %v4019_v43 = vmul.f32 0.5, %v3987_v48  ;;  %v3925_v5 = vadd.f32 %v3858_v63, %v8867_v28 }
 0x4a3   : > { %4053 = vst.msk [vmem:[#allocation2 + $0xd8] sm:$0xff] %vm4025_vm2, %v4020_v6  ;;  %v3958_v35 = vmul.f32 0.25, %v3926_v26 }
 0x4a4   : > { %4052 = vst.msk [vmem:[#allocation2 + $0xd0] sm:$0xff] %vm4025_vm2, %v4019_v43  ;;  %v3700_v9 = vpop.permute.xlu1 %3699  ;;  %4229 = vrot.lane.b32.xlu1 %v4206_v14, %s6333_s19  ;;  %v3957_v56 = vmul.f32 0.25, %v3925_v5 }
 0x4a5   : > { %v3766_v17 = vmax.f32 %v8213_v59, %v3700_v9  ;;  %v3698_v19 = vpop.permute.xlu0 %3697 }
 0x4a6   : > { %v3765_v55 = vmax.f32 %v8868_v23, %v3698_v19 }
 0x4a7   : > { %v3990_v62 = vadd.f32 %v3958_v35, %v3766_v17 }
 0x4a8   : > { %v3989_v24 = vadd.f32 %v3957_v56, %v3765_v55 }
 0x4a9   : > { %v4022_v2 = vmul.f32 0.5, %v3990_v62  ;;  %v3864_v47 = vpop.permute.xlu1 %3863 }
 0x4aa   : > { %v4021_v11 = vmul.f32 0.5, %v3989_v24  ;;  %v3928_v41 = vadd.f32 %v8237_v25, %v3864_v47  ;;  %v3862_v51 = vpop.permute.xlu0 %3861  ;;  %v4261_v24 = vld [vmem:[#allocation10 + $0x8] sm:$0xff]  ;;  %v4263_v47 = vld [vmem:[#allocation10 + $0x18] sm:$0xff] }
 0x4ab   : > { %4055 = vst.msk [vmem:[#allocation2 + $0xe8] sm:$0xff] %vm4025_vm2, %v4022_v2  ;;  %v3927_v16 = vadd.f32 %v3862_v51, %v8869_v50  ;;  %v4094_v53 = vld [vmem:[#allocation2 + $0xc1] ss:$4 sm:$0xff]  ;;  %v4070_v59 = vld [vmem:[#allocation2 + $0xc0] ss:$4 sm:$0xff] }
 0x4ac   : > { %4054 = vst.msk [vmem:[#allocation2 + $0xe0] sm:$0xff] %vm4025_vm2, %v4021_v11  ;;  %4117 = vrot.lane.b32.xlu0 %v4094_v53, %s6331_s15  ;;  %4079 = vst.msk [vmem:[#allocation3 + $0x30] sm:$0xff] %vm4025_vm2, %v4070_v59  ;;  %v3960_v13 = vmul.f32 0.25, %v3928_v41  ;;  %v4151_v34 = vld [vmem:[#allocation2 + $0xc2] ss:$4 sm:$0xff] }
 0x4ad   : > { %v3704_v0 = vpop.permute.xlu1 %3703  ;;  %v3959_v52 = vmul.f32 0.25, %v3927_v16  ;;  %v4208_v8 = vld [vmem:[#allocation2 + $0xc3] ss:$4 sm:$0xff] }
 0x4ae   : > { %v3768_v46 = vmax.f32 %v8870_v57, %v3704_v0  ;;  %v3702_v20 = vpop.permute.xlu0 %3701  ;;  %v4262_v2 = vld [vmem:[#allocation10 + $0x10] sm:$0xff]  ;;  %v4264_v11 = vld [vmem:[#allocation10 + $0x20] sm:$0xff]  ;;  %v4265_v41 = vld [vmem:[#allocation10 + $0x28] sm:$0xff] }
 0x4af   : > { %v3767_v25 = vmax.f32 %v8243_v42, %v3702_v20  ;;  %v4266_v51 = vld [vmem:[#allocation10 + $0x30] sm:$0xff]  ;;  %v4267_v50 = vld [vmem:[#allocation10 + $0x38] sm:$0xff]  ;;  %v4418_v16 = vld [vmem:[#allocation12] sm:$0xff] }
 0x4b0   : > { %v3992_v22 = vadd.f32 %v3960_v13, %v3768_v46  ;;  %4174 = vrot.lane.b32.xlu0 %v4151_v34, %s6332_s17  ;;  %5831 = vmatprep.mubr.msk.f32.mxu1 %vm4422_vm7, %v4418_v16 }
 0x4b1   : > { %v3991_v3 = vadd.f32 %v3959_v52, %v3767_v25 }
 0x4b2   : > { %v4024_v36 = vmul.f32 0.5, %v3992_v22 }
 0x4b3   : > { %v4023_v60 = vmul.f32 0.5, %v3991_v3 }
 0x4b4   : > { %4057 = vst.msk [vmem:[#allocation2 + $0xf8] sm:$0xff] %vm4025_vm2, %v4024_v36  ;;  %4231 = vrot.lane.b32.xlu0 %v4208_v8, %s6333_s19 }
 0x4b5   : > { %4056 = vst.msk [vmem:[#allocation2 + $0xf0] sm:$0xff] %vm4025_vm2, %v4023_v60 }
 0x4bc   : > { %v4096_v29 = vld [vmem:[#allocation2 + $0xe1] ss:$4 sm:$0xff]  ;;  %v4072_v15 = vld [vmem:[#allocation2 + $0xe0] ss:$4 sm:$0xff]  ;;  %v4153_v40 = vld [vmem:[#allocation2 + $0xe2] ss:$4 sm:$0xff] }
 0x4bd   : > { %4119 = vrot.lane.b32.xlu1 %v4096_v29, %s6331_s15  ;;  %4080 = vst.msk [vmem:[#allocation3 + $0x38] sm:$0xff] %vm4025_vm2, %v4072_v15  ;;  %v4210_v58 = vld [vmem:[#allocation2 + $0xe3] ss:$4 sm:$0xff]  ;;  %s6230_s15 = scalar_lea.vmem %s6229_s9, 512 }
 0x4be   : > { %v4106_v42 = vpop.permute.xlu0 %4105  ;;  %p6232_p7 = scmp.lt.s32.totalorder %s6230_s15, %s6224_s8 }
 0x4bf   : > { %4130 = vst.msk [vmem:[#allocation3] sm:$0xff] %vm4129_vm3, %v4106_v42 }
 0x4c0   : > { %p6233_p5 = por %p6232_p7, %p6231_p0 }
 0x4c1   : > { %4176 = vrot.lane.b32.xlu1 %v4153_v40, %s6332_s17 }
 0x4c2   : > { %v4163_v4 = vpop.permute.xlu0 %4162  ;;  %p6234_p8 = pnand %p6233_p5, %p6227_p12 }
 0x4c3   : > { %4187 = vst.msk [vmem:[#allocation3] sm:$0xff] %vm4186_vm4, %v4163_v4 }
 0x4c5   : > { %4233 = vrot.lane.b32.xlu1 %v4210_v58, %s6333_s19 }
 0x4c6   : > { %v4220_v30 = vpop.permute.xlu0 %4219 }
 0x4c7   : > { %4244 = vst.msk [vmem:[#allocation3] sm:$0xff] %vm4243_vm6, %v4220_v30 }
 0x4ce   : > { %v4108_v61 = vpop.permute.xlu1 %4107  ;;  %v4252_v12 = vld [vmem:[#allocation3] sm:$0xff] }
 0x4cf   : > { %4131 = vst.msk [vmem:[#allocation3 + $0x8] sm:$0xff] %vm4129_vm3, %v4108_v61 }
 0x4d2   : > { %v4165_v21 = vpop.permute.xlu1 %4164 }
 0x4d3   : > { %4188 = vst.msk [vmem:[#allocation3 + $0x8] sm:$0xff] %vm4186_vm4, %v4165_v21 }
 0x4d6   : > { %v4222_v38 = vpop.permute.xlu1 %4221 }
 0x4d7   : > { %4245 = vst.msk [vmem:[#allocation3 + $0x8] sm:$0xff] %vm4243_vm6, %v4222_v38 }
 0x4de   : > { %v4110_v31 = vpop.permute.xlu0 %4109  ;;  %v4253_v10 = vld [vmem:[#allocation3 + $0x8] sm:$0xff] }
 0x4df   : > { %4132 = vst.msk [vmem:[#allocation3 + $0x10] sm:$0xff] %vm4129_vm3, %v4110_v31  ;;  %v5865_v54 = vpack.c.bf16 %v4253_v10, %v4252_v12 }
 0x4e1   : > { %5866 = vmatprep.subr.bf16.mxu0 %v5865_v54 }
 0x4e2   : > { %5868 = vmatpush3.bf16.msra.mxu0 %v5865_v54  ;;  %v4167_v18 = vpop.permute.xlu0 %4166 }
 0x4e3   : > { %4189 = vst.msk [vmem:[#allocation3 + $0x10] sm:$0xff] %vm4186_vm4, %v4167_v18  ;;  %v4419_v18 = vld [vmem:[#allocation12 + $0x8] sm:$0xff] }
 0x4e6   : > { %v4224_v32 = vpop.permute.xlu0 %4223 }
 0x4e7   : > { %4246 = vst.msk [vmem:[#allocation3 + $0x10] sm:$0xff] %vm4243_vm6, %v4224_v32  ;;  %v4420_v32 = vld [vmem:[#allocation12 + $0x10] sm:$0xff] }
 0x4ee   : > { %v4112_v49 = vpop.permute.xlu1 %4111  ;;  %v4254_v33 = vld [vmem:[#allocation3 + $0x10] sm:$0xff] }
 0x4ef   : > { %4133 = vst.msk [vmem:[#allocation3 + $0x18] sm:$0xff] %vm4129_vm3, %v4112_v49  ;;  %v4421_v49 = vld [vmem:[#allocation12 + $0x18] sm:$0xff] }
 0x4f2   : > { %v4169_v44 = vpop.permute.xlu1 %4168 }
 0x4f3   : > { %4190 = vst.msk [vmem:[#allocation3 + $0x18] sm:$0xff] %vm4186_vm4, %v4169_v44  ;;  %v4530_v44 = vld [vmem:[#allocation13] sm:$0xff] }
 0x4f6   : > { %v4226_v37 = vpop.permute.xlu1 %4225 }
 0x4f7   : > { %4247 = vst.msk [vmem:[#allocation3 + $0x18] sm:$0xff] %vm4243_vm6, %v4226_v37 }
 0x4fe   : > { %v4114_v1 = vpop.permute.xlu0 %4113  ;;  %v4255_v39 = vld [vmem:[#allocation3 + $0x18] sm:$0xff] }
 0x4ff   : > { %4134 = vst.msk [vmem:[#allocation3 + $0x20] sm:$0xff] %vm4129_vm3, %v4114_v1  ;;  %v5869_v48 = vpack.c.bf16 %v4255_v39, %v4254_v33 }
 0x501   : > { %5870 = vmatprep.subr.bf16.mxu0 %v5869_v48 }
 0x502   : > { %5872 = vmatpush3.bf16.msra.mxu0 %v5869_v48  ;;  %v4171_v27 = vpop.permute.xlu0 %4170 }
 0x503   : > { %4191 = vst.msk [vmem:[#allocation3 + $0x20] sm:$0xff] %vm4186_vm4, %v4171_v27 }
 0x506   : > { %v4228_v6 = vpop.permute.xlu0 %4227 }
 0x507   : > { %4248 = vst.msk [vmem:[#allocation3 + $0x20] sm:$0xff] %vm4243_vm6, %v4228_v6 }
 0x50e   : > { %v4116_v45 = vpop.permute.xlu1 %4115  ;;  %v4256_v28 = vld [vmem:[#allocation3 + $0x20] sm:$0xff] }
 0x50f   : > { %4135 = vst.msk [vmem:[#allocation3 + $0x28] sm:$0xff] %vm4129_vm3, %v4116_v45 }
 0x512   : > { %v4173_v26 = vpop.permute.xlu1 %4172 }
 0x513   : > { %4192 = vst.msk [vmem:[#allocation3 + $0x28] sm:$0xff] %vm4186_vm4, %v4173_v26 }
 0x516   : > { %v4230_v63 = vpop.permute.xlu1 %4229 }
 0x517   : > { %4249 = vst.msk [vmem:[#allocation3 + $0x28] sm:$0xff] %vm4243_vm6, %v4230_v63 }
 0x51e   : > { %v4118_v43 = vpop.permute.xlu0 %4117  ;;  %v4257_v5 = vld [vmem:[#allocation3 + $0x28] sm:$0xff] }
 0x51f   : > { %4136 = vst.msk [vmem:[#allocation3 + $0x30] sm:$0xff] %vm4129_vm3, %v4118_v43  ;;  %v5873_v14 = vpack.c.bf16 %v4257_v5, %v4256_v28 }
 0x521   : > { %5874 = vmatprep.subr.bf16.mxu0 %v5873_v14 }
 0x522   : > { %5876 = vmatpush3.bf16.msra.mxu0 %v5873_v14  ;;  %v4175_v9 = vpop.permute.xlu0 %4174 }
 0x523   : > { %4193 = vst.msk [vmem:[#allocation3 + $0x30] sm:$0xff] %vm4186_vm4, %v4175_v9 }
 0x526   : > { %v4232_v35 = vpop.permute.xlu0 %4231 }
 0x527   : > { %4250 = vst.msk [vmem:[#allocation3 + $0x30] sm:$0xff] %vm4243_vm6, %v4232_v35  ;;  %v4531_v35 = vld [vmem:[#allocation13 + $0x8] sm:$0xff] }
 0x52e   : > { %v4258_v23 = vld [vmem:[#allocation3 + $0x30] sm:$0xff] }
 0x52f   : > { %v4120_v17 = vpop.permute.xlu1 %4119 }
 0x530   : > { %4137 = vst.msk [vmem:[#allocation3 + $0x38] sm:$0xff] %vm4129_vm3, %v4120_v17  ;;  %v6334_v17 = vmov 0.0  }
 0x533   : > { %v4177_v19 = vpop.permute.xlu1 %4176 }
 0x534   : > { %4194 = vst.msk [vmem:[#allocation3 + $0x38] sm:$0xff] %vm4186_vm4, %v4177_v19 }
 0x537   : > { %v4234_v56 = vpop.permute.xlu1 %4233 }
 0x538   : > { %4251 = vst.msk [vmem:[#allocation3 + $0x38] sm:$0xff] %vm4243_vm6, %v4234_v56 }
 0x53f   : > { %v4259_v55 = vld [vmem:[#allocation3 + $0x38] sm:$0xff] }
 0x540   : > { %v5877_v62 = vpack.c.bf16 %v4259_v55, %v4258_v23 }
 0x542   : > { %5878 = vmatprep.subr.bf16.mxu0 %v5877_v62 }
 0x543   : > { %5880 = vmatpush3.bf16.msra.mxu0 %v5877_v62 }
 0x546   : > { %5812 = vmatmul.mubr.msk.f32.vlgmr.msra.gmra.mrb[96].mxu0 %vm4268_vm5, %v4261_v24 }
 0x547   : > { %5814 = vmatprep.mubr.msk.f32.mxu0 %vm4268_vm5, %v4262_v2 }
 0x54a   : > { %5815 = vmatmul.mubr.msk.f32.gmra.mrb[98].mxu0 %vm4268_vm5, %v4263_v47  ;;  %v4618_v47 = vld [vmem:[#allocation15] sm:$0xff] }
 0x54b   : > { %5817 = vmatprep.mubr.msk.f32.mxu0 %vm4268_vm5, %v4264_v11 }
 0x54e   : > { %5818 = vmatmul.mubr.msk.f32.gmra.mrb[100].mxu0 %vm4268_vm5, %v4265_v41 }
 0x54f   : > { %5820 = vmatprep.mubr.msk.f32.mxu0 %vm4268_vm5, %v4266_v51 }
 0x552   : > { %5821 = vmatmul.mubr.msk.f32.gmra.mrb[102].mxu0 %vm4268_vm5, %v4267_v50 }
 0x619   : > { %v5813_v53 = vpop.f32.mrb[96].mxu0 }
 0x61a   : > { %v4359_v59 = vpop.f32.mrb[97].mxu0 }
 0x61d   : > { %v5816_v0 = vpop.f32.mrb[98].mxu0 }
 0x61e   : > { %v4369_v13 = vpop.f32.mrb[99].mxu0 }
 0x621   : > { %v5819_v57 = vpop.f32.mrb[100].mxu0 }
 0x622   : > { %v4399_v46 = vadd.f32 %v5819_v57, %v5813_v53  ;;  %v4407_v20 = vmax.f32 %v5813_v53, %v5819_v57  ;;  %v4379_v52 = vpop.f32.mrb[101].mxu0 }
 0x623   : > { %v4398_v25 = vadd.f32 %v4379_v52, %v4359_v59  ;;  %v4406_v34 = vmax.f32 %v4359_v59, %v4379_v52 }
 0x624   : > { %v4403_v22 = vmul.f32 0.5, %v4399_v46 }
 0x625   : > { %v4402_v3 = vmul.f32 0.5, %v4398_v25  ;;  %v5822_v36 = vpop.f32.mrb[102].mxu0 }
 0x626   : > { %v4411_v60 = vadd.f32 %v4407_v20, %v4403_v22  ;;  %v4401_v8 = vadd.f32 %v5822_v36, %v5816_v0  ;;  %v4409_v29 = vmax.f32 %v5816_v0, %v5822_v36  ;;  %v4389_v15 = vpop.f32.mrb[103].mxu0 }
 0x627   : > { %v4410_v42 = vadd.f32 %v4406_v34, %v4402_v3  ;;  %v4400_v40 = vadd.f32 %v4389_v15, %v4369_v13  ;;  %v4408_v4 = vmax.f32 %v4369_v13, %v4389_v15 }
 0x628   : > { %v4415_v7 = vmul.f32 0.5, %v4411_v60  ;;  %v4405_v58 = vmul.f32 0.5, %v4401_v8 }
 0x629   : > { %v4414_v30 = vmul.f32 0.5, %v4410_v42  ;;  %v4404_v61 = vmul.f32 0.5, %v4400_v40 }
 0x62a   : > { %v4413_v21 = vadd.f32 %v4409_v29, %v4405_v58 }
 0x62b   : > { %v4412_v38 = vadd.f32 %v4408_v4, %v4404_v61  ;;  %v5881_v31 = vpack.c.bf16 %v4415_v7, %v4414_v30 }
 0x62c   : > { %v4417_v12 = vmul.f32 0.5, %v4413_v21 }
 0x62d   : > { %v4416_v10 = vmul.f32 0.5, %v4412_v38  ;;  %5882 = vmatprep.subr.bf16.mxu1 %v5881_v31 }
 0x62e   : > { %5884 = vmatpush3.bf16.msra.mxu1 %v5881_v31 }
 0x62f   : > { %v5885_v54 = vpack.c.bf16 %v4417_v12, %v4416_v10 }
 0x631   : > { %5886 = vmatprep.subr.bf16.mxu1 %v5885_v54 }
 0x632   : > { %5888 = vmatpush3.bf16.msra.mxu1 %v5885_v54 }
 0x635   : > { %5832 = vmatmul.mubr.msk.f32.vlgmr.msra.gmra.mrb[96].mxu1 %vm4422_vm7, %v4419_v18 }
 0x636   : > { %5834 = vmatprep.mubr.msk.f32.mxu1 %vm4422_vm7, %v4420_v32 }
 0x639   : > { %5835 = vmatmul.mubr.msk.f32.gmra.mrb[98].mxu1 %vm4422_vm7, %v4421_v49 }
 0x63a   : > { %5841 = vmatprep.mubr.msk.f32.mxu1 %vm720_vm0, %v4530_v44 }
 0x708   : > { %v5833_v37 = vpop.f32.mrb[96].mxu1 }
 0x709   : > { %v4501_v1 = vpop.f32.mrb[97].mxu1 }
 0x70c   : > { %v5836_v33 = vpop.f32.mrb[98].mxu1 }
 0x70d   : > { %v4521_v39 = vadd.f32 %v5836_v33, %v5833_v37  ;;  %v4525_v48 = vmax.f32 %v5833_v37, %v5836_v33  ;;  %v4511_v27 = vpop.f32.mrb[99].mxu1 }
 0x70e   : > { %v4520_v6 = vadd.f32 %v4511_v27, %v4501_v1  ;;  %v4524_v45 = vmax.f32 %v4501_v1, %v4511_v27 }
 0x70f   : > { %v4523_v26 = vmul.f32 0.5, %v4521_v39 }
 0x710   : > { %v4522_v63 = vmul.f32 0.5, %v4520_v6 }
 0x711   : > { %v4527_v43 = vadd.f32 %v4525_v48, %v4523_v26 }
 0x712   : > { %v4526_v28 = vadd.f32 %v4524_v45, %v4522_v63 }
 0x713   : > { %v4529_v5 = vmul.f32 0.5, %v4527_v43 }
 0x714   : > { %v4528_v14 = vmul.f32 0.5, %v4526_v28 }
 0x716   : > { %v5889_v9 = vpack.c.bf16 %v4529_v5, %v4528_v14 }
 0x718   : > { %5890 = vmatprep.subr.bf16.mxu1 %v5889_v9 }
 0x719   : > { %5892 = vmatpush3.bf16.msra.mxu1 %v5889_v9 }
 0x71a   : > { %5844 = vmatprep.subr.mxu1 %v6334_v17 }
 0x71c   : > { %5842 = vmatmul.mubr.msk.f32.vlgmr.msra.gmra.mrb[100].mxu1 %vm720_vm0, %v4531_v35 }
 0x71d   : > { %5846 = vmatprep.mubr.msk.f32.mxu1 %vm6335_vm8, %v6334_v17 }
 0x7ef   : > { %v5843_v19 = vpop.f32.mrb[100].mxu1 }
 0x7f0   : > { %v4604_v56 = vpop.f32.mrb[101].mxu1 }
 0x7f1   : > { %v4613_v23 = vadd.f32 %v5843_v19, %v4604_v56  ;;  %v4615_v55 = vmax.f32 %v4604_v56, %v5843_v19 }
 0x7f3   : > { %v4614_v62 = vmul.f32 0.5, %v4613_v23 }
 0x7f5   : > { %v4616_v24 = vadd.f32 %v4615_v55, %v4614_v62 }
 0x7f7   : > { %v4617_v2 = vmul.f32 0.5, %v4616_v24 }
 0x7f9   : > { %5845 = vmatpush3.msra.mxu1 %v4617_v2 }
 0x7fa   : > { %5847 = vmatmul.mubr.msk.f32.vlgmr.msra.gmra.mrb[102].mxu1 %vm2966_vm1, %v4618_v47 }
 0x8cd   : > { %v4688_v11 = vpop.f32.mrb[102].mxu1 }
 0x8ce   : > { %v4693_v41 = vrot.slane %v4688_v11, 4  ;;  %v5848_v51 = vpop.f32.mrb[103].mxu1 }
 0x8d0   : > { %v4695_v50 = vadd.f32 %v4693_v41, %v4688_v11  ;;  %v4697_v53 = vmax.f32 %v4688_v11, %v4693_v41 }
 0x8d2   : > { %v4696_v16 = vmul.f32 0.5, %v4695_v50 }
 0x8d4   : > { %v4698_v59 = vadd.f32 %v4697_v53, %v4696_v16 }
 0x8d6   : > { %v4699_v0 = vmul.f32 0.5, %v4698_v59 }
 0x8d8   : > { %4700 = vxpose.xlu0.b32.start.end [1/1] (short) (narrow) %v4699_v0, 16 }
 0x958   : > { %v4716_v13 = vpop.trf.xlu0 }
 0x959   : > { %4732 = vst.msk [vmem:[%s397_s12] sm:$0xff] %vm4025_vm2, %v4716_v13 }
 0x95c   : > { %v4717_v57 = vpop.trf.xlu0 }
 0x95d   : > { %4733 = vst.msk [vmem:[%s397_s12 + $0x8] sm:$0xff] %vm4025_vm2, %v4717_v57 }
 0x95e   : > { %6237 = shalt.err (!%p6234_p8)
}
 0x95f   : > { %s6238_s19 = scalar_lea.hbm %s8422_s13, 256  ;;  %s6242_s7 = scalar_lea.hbm %s8871_s22, 512 }
 0x960   : > { %p6239_p3 = scmp.ne.s32.totalorder %s8422_s13, %s6238_s19  ;;  %p6243_p13 = scmp.lt.u32.totalorder %s8422_s13, %s8871_s22 }
 0x961   : > { %p6244_p1 = scmp.lt.u32.totalorder %s6242_s7, %s6238_s19  ;;  %p6246_p2 = scmp.lt.u32.totalorder %s6238_s19, %s8422_s13 }
 0x962   : > { %p6240_p11 = pnand %p6239_p3, %p8872_p9 }
 0x963   : > { %p6245_p4 = por %p6244_p1, %p6243_p13 }
 0x964   : > { %p6241_p6 = pneg %p6240_p11 }
 0x965   : > { %p6247_p10 = por %p6246_p2, %p6245_p4 }
 0x967   : > { %p6248_p12 = pnand %p6247_p10, %p6241_p6 }
 0x969   : > { %6251 = shalt.err (!%p6248_p12)
}
 0x96a   : > { %s6337_s8 = smov 128  }
 0x96b   : > { %5919 = dma.vmem_to_hbm [thread:$0]  (%p8872_p9), %s8417_s1, 256, %s8422_s13, %s4735_s11, %s6337_s8, %s6337_s8, %s6332_s17  }
 0x96c PF: > { %s4764_s27 = sand.u32 1, %s6298_s24   ;;  %p8873_p0 = scmp.ne.s32.totalorder %s8598_s10, 0 }
 0x96d   : > { %p8874_p7 = scmp.ge.s32.totalorder %s6318_s29, 2  ;;  %s4765_s9 = scalar_lea.sflag [#allocation6], %s4764_s27 }
 0x96f   : > { %p5945_p5 = pnand %p8874_p7, %p8873_p0 }
 0x971   : > { %6293 = dma.done.wait (!%p5945_p5), %s4765_s9, 256  }
 0x972   : > { %6295 = vsyncadd (!%p5945_p5), %s4765_s9, 4294967040  ;;  %s26_s29 = sadd.s32 1, %s6318_s29   ;;  %s8875_s24 = smov %s6302_s25 }
 0x973   : > { %p23_p8 = scmp.ge.s32.totalorder %s26_s29, 4   ;;  %s8876_s25 = smov %s6306_s26 }
 0x974   : > { %s8877_s26 = smov %s6602_s23  ;;  %s8878_s27 = smov %s6314_s28 }
 0x975   : > { %s8879_s28 = smov %s8881_s16  ;;  %25 = sbr.rel (!%p23_p8) target bundleno = 12 (0xc), region = 275 }
 0x97c   :  { %4770 = vsyncpa [#allocation5], 1 }
 0x97d   :  { %4772 = vsyncpa [#allocation5 + $0x1], 1 }
 0x97e   :  { %4773 = vsyncpa [#allocation8], 1 }
 0x97f   :  { %4774 = vsyncpa [#allocation11], 1 }
 0x980   :  { %4775 = vsyncpa [#allocation14], 1 }
 0x981   :  { %4776 = vsyncpa [#allocation6], 1 }
 0x982   :  { %4778 = vsyncpa [#allocation6 + $0x1], 1 }

</bundles_post_ra>
